<compile_context>
chip_gen: v7x
topology: tpu7x:2x2x1
jax: 0.10.0
libtpu: 0.0.40
codegen_flags: <defaults>
</compile_context>

<pallas_src>
import functools
import numpy as np
import jax
import jax.numpy as jnp
from jax.experimental import pallas as pl
from jax.experimental.pallas import tpu as pltpu


def _full_spec(shape):
    """BlockSpec covering the whole array (grid=() -> index_map takes no args)."""
    ndim = len(shape)

    def index_map():
        return (0,) * ndim

    return pl.BlockSpec(shape, index_map)


# ------------------------------ fused Net kernel ------------------------------
def _net_kernel(num_layers, hidden_pad, x_ref, *args):
    """
    Ref layout (inputs, then outputs, then scratch):
      x_ref                      : (T, B, D_in)            time-major input
      args[0 .. 3L-1]            : per layer (W, U, b) = (D_l, 4Hp), (Hp, 4Hp), (1, 4Hp)
      args[3L], args[3L+1]       : fc_w (Hp, O), fc_b (1, O)
      args[3L+2]                 : out_ref (B, O)
      args[3L+3 ...]             : min(2, L-1) inter-layer sequence buffers (T, B, Hp)
    """
    nw = 3 * num_layers
    layer_refs = args[:nw]
    fc_w_ref = args[nw]
    fc_b_ref = args[nw + 1]
    out_ref = args[nw + 2]
    seq_bufs = args[nw + 3:]

    T, B, _ = x_ref.shape
    Hp = hidden_pad

    in_ref = x_ref          # current layer's input sequence (time-major)
    buf_idx = 0
    last_h = None
    for l in range(num_layers):
        W = layer_refs[3 * l][...]        # (D_l, 4Hp) fused, lane-aligned gates (i,f,g,o)
        U = layer_refs[3 * l + 1][...]    # (Hp, 4Hp)
        b = layer_refs[3 * l + 2][...]    # (1, 4Hp)   pre-summed b_ih + b_hh

        is_last = (l == num_layers - 1)
        out_seq = None if is_last else seq_bufs[buf_idx % max(len(seq_bufs), 1)]

        def step(t, carry, in_ref=in_ref, out_seq=out_seq, W=W, U=U, b=b):
            h_prev, c_prev = carry
            x_t = in_ref[t]                                        # (B, D_l)
            # Fused gate matmuls (bias added once); output lanes are 128-aligned.
            gates = (jnp.dot(x_t, W, preferred_element_type=jnp.float32)
                     + jnp.dot(h_prev, U, preferred_element_type=jnp.float32)
                     + b)                                          # (B, 4Hp)
            # PyTorch gate order: i, f, g, o — each slot is a full 128-lane slice.
            i_g = jax.nn.sigmoid(gates[:, 0 * Hp:1 * Hp])
            f_g = jax.nn.sigmoid(gates[:, 1 * Hp:2 * Hp])
            g_g = jnp.tanh(gates[:, 2 * Hp:3 * Hp])
            o_g = jax.nn.sigmoid(gates[:, 3 * Hp:4 * Hp])
            c_new = f_g * c_prev + i_g * g_g
            h_new = o_g * jnp.tanh(c_new)
            if out_seq is not None:        # last layer only needs the carried h
                out_seq[t] = h_new
            return (h_new, c_new)

        init = (jnp.zeros((B, Hp), jnp.float32),
                jnp.zeros((B, Hp), jnp.float32))
        h_T, _ = jax.lax.fori_loop(0, T, step, init, unroll=True)

        if is_last:
            last_h = h_T
        else:
            in_ref = out_seq               # this layer's output feeds the next layer
            buf_idx += 1

    # Final Linear on the last timestep of the last layer (fused epilogue).
    out_ref[...] = (jnp.dot(last_h, fc_w_ref[...],
                            preferred_element_type=jnp.float32)
                    + fc_b_ref[...])


def net_forward(x, params):
    """Equivalent of Net.forward: LSTM stack -> last timestep -> Linear (one kernel)."""
    B, T, _ = x.shape
    Hp = params["hidden_pad"]
    O = params["fc_w_t"].shape[-1]
    L = len(params["lstm_layers"])

    x_tm = jnp.transpose(x, (1, 0, 2))              # time-major (T, B, D_in)

    inputs = [x_tm]
    in_specs = [_full_spec(x_tm.shape)]
    for lp in params["lstm_layers"]:
        for name in ("W", "U", "b"):
            arr = lp[name]
            inputs.append(arr)
            in_specs.append(_full_spec(arr.shape))
    inputs += [params["fc_w_t"], params["fc_b"]]
    in_specs += [_full_spec(params["fc_w_t"].shape),
                 _full_spec(params["fc_b"].shape)]

    num_seq_bufs = 0 if L <= 1 else min(2, L - 1)
    scratch = [pltpu.VMEM((T, B, Hp), jnp.float32) for _ in range(num_seq_bufs)]

    kernel = functools.partial(_net_kernel, L, Hp)

    return pl.pallas_call(
        kernel,
        out_shape=jax.ShapeDtypeStruct((B, O), jnp.float32),
        grid=(),
        in_specs=in_specs,
        out_specs=_full_spec((B, O)),
        scratch_shapes=scratch,
    )(*inputs)


# ---------------------------- deterministic params ----------------------------
def init_params(key, input_dim, hidden_dim, output_dim, layers):
    H = hidden_dim
    Hp = ((H + 127) // 128) * 128          # lane-aligned gate slot width
    params = {"lstm_layers": [], "hidden_dim": H, "hidden_pad": Hp}
    k = 1.0 / np.sqrt(H)
    for l in range(layers):
        d_in = input_dim if l == 0 else H
        key, k1, k2, k3, k4 = jax.random.split(key, 5)
        # PyTorch layout: weight_ih (4H, d_in), weight_hh (4H, H), gate order i,f,g,o.
        w_ih = jax.random.uniform(k1, (4 * H, d_in), jnp.float32, -k, k)
        w_hh = jax.random.uniform(k2, (4 * H, H), jnp.float32, -k, k)
        b_ih = jax.random.uniform(k3, (4 * H,), jnp.float32, -k, k)
        b_hh = jax.random.uniform(k4, (4 * H,), jnp.float32, -k, k)

        # Fused + lane-aligned packing for a single gate-matmul pair per step:
        #   x_t @ W + h @ U + b  with gate g occupying cols [g*Hp, g*Hp + H).
        # Padded columns/rows are zero, so padded lanes of c/h stay exactly 0.
        d_in_pad = d_in if l == 0 else Hp   # layer>0 consumes the padded h
        w_ih_t = w_ih.T                     # (d_in, 4H)
        w_hh_t = w_hh.T                     # (H, 4H)
        bias = b_ih + b_hh
        W = jnp.zeros((d_in_pad, 4 * Hp), jnp.float32)
        U = jnp.zeros((Hp, 4 * Hp), jnp.float32)
        b = jnp.zeros((1, 4 * Hp), jnp.float32)
        for g in range(4):
            W = W.at[:d_in, g * Hp:g * Hp + H].set(w_ih_t[:, g * H:(g + 1) * H])
            U = U.at[:H, g * Hp:g * Hp + H].set(w_hh_t[:, g * H:(g + 1) * H])
            b = b.at[0, g * Hp:g * Hp + H].set(bias[g * H:(g + 1) * H])
        params["lstm_layers"].append({"W": W, "U": U, "b": b,
                                      "w_ih": w_ih, "w_hh": w_hh,
                                      "b_ih": b_ih, "b_hh": b_hh})

    key, k5, k6 = jax.random.split(key, 3)
    fc_w = jax.random.uniform(k5, (output_dim, H), jnp.float32, -k, k)
    fc_b = jax.random.uniform(k6, (output_dim,), jnp.float32, -k, k)
    params["fc_w_raw"] = fc_w                       # (O, H)   for the reference
    params["fc_b_raw"] = fc_b                       # (O,)
    params["fc_w_t"] = jnp.zeros((Hp, output_dim), jnp.float32).at[:H].set(fc_w.T)
    params["fc_b"] = fc_b.reshape(1, output_dim)    # (1, O)
    return params


# ------------------------------ pure-JAX reference -----------------------------
def reference_forward(x, params):
    h_seq = x
    H = params["hidden_dim"]
    for lp in params["lstm_layers"]:
        B, T, _ = h_seq.shape
        w_ih, w_hh = lp["w_ih"], lp["w_hh"]
        bias = lp["b_ih"] + lp["b_hh"]

        def step(carry, x_t):
            h, c = carry
            gates = x_t @ w_ih.T + h @ w_hh.T + bias
            i, f, g, o = jnp.split(gates, 4, axis=-1)
            c = jax.nn.sigmoid(f) * c + jax.nn.sigmoid(i) * jnp.tanh(g)
            h = jax.nn.sigmoid(o) * jnp.tanh(c)
            return (h, c), h

        init = (jnp.zeros((B, H), jnp.float32), jnp.zeros((B, H), jnp.float32))
        _, hs = jax.lax.scan(step, init, jnp.transpose(h_seq, (1, 0, 2)))
        h_seq = jnp.transpose(hs, (1, 0, 2))
    return h_seq[:, -1, :] @ params["fc_w_raw"].T + params["fc_b_raw"]


if __name__ == "__main__":
    # Small shapes consistent with the module: (batch, seq, input_dim)
    B, T, INPUT_DIM = 2, 8, 4
    HIDDEN_DIM, OUTPUT_DIM, LAYERS = 10, 1, 2

    key = jax.random.PRNGKey(0)
    key, kx = jax.random.split(key)
    x = jax.random.normal(kx, (B, T, INPUT_DIM), jnp.float32)

    params = init_params(key, INPUT_DIM, HIDDEN_DIM, OUTPUT_DIM, LAYERS)

    out = net_forward(x, params)
    out = jax.block_until_ready(out)
    assert out.shape == (B, OUTPUT_DIM), out.shape

    ref = reference_forward(x, params)
    np.testing.assert_allclose(np.asarray(out), np.asarray(ref), rtol=1e-3, atol=1e-3)

    print("KERNEL_OK")
</pallas_src>

<mosaic_0001>
module attributes {stable_mosaic.version = 11 : i64} {
  func.func @_net_kernel(%arg0: memref<8x2x4xf32, #tpu.memory_space<vmem>>, %arg1: memref<4x512xf32, #tpu.memory_space<vmem>>, %arg2: memref<128x512xf32, #tpu.memory_space<vmem>>, %arg3: memref<1x512xf32, #tpu.memory_space<vmem>>, %arg4: memref<128x512xf32, #tpu.memory_space<vmem>>, %arg5: memref<128x512xf32, #tpu.memory_space<vmem>>, %arg6: memref<1x512xf32, #tpu.memory_space<vmem>>, %arg7: memref<128x1xf32, #tpu.memory_space<vmem>>, %arg8: memref<1x1xf32, #tpu.memory_space<vmem>>, %arg9: memref<2x1xf32, #tpu.memory_space<vmem>>, %arg10: memref<8x2x128xf32, #tpu.memory_space<vmem>>) attributes {dimension_semantics = [], scalar_prefetch = 0 : i64, scratch_operands = 1 : i64, tpu.core_type = #tpu.core_type<tc>} {
    %c0 = arith.constant 0 : index
    %c0_0 = arith.constant 0 : index
    %0 = vector.load %arg1[%c0, %c0_0] : memref<4x512xf32, #tpu.memory_space<vmem>>, vector<4x512xf32>
    %c0_1 = arith.constant 0 : index
    %c0_2 = arith.constant 0 : index
    %1 = vector.load %arg2[%c0_1, %c0_2] : memref<128x512xf32, #tpu.memory_space<vmem>>, vector<128x512xf32>
    %c0_3 = arith.constant 0 : index
    %c0_4 = arith.constant 0 : index
    %2 = vector.load %arg3[%c0_3, %c0_4] : memref<1x512xf32, #tpu.memory_space<vmem>>, vector<1x512xf32>
    %cst = arith.constant 0.000000e+00 : f32
    %3 = vector.broadcast %cst : f32 to vector<2x128xf32>
    %cst_5 = arith.constant 0.000000e+00 : f32
    %4 = vector.broadcast %cst_5 : f32 to vector<2x128xf32>
    %c0_i32 = arith.constant 0 : i32
    %5 = arith.index_cast %c0_i32 : i32 to index
    %c0_6 = arith.constant 0 : index
    %c0_7 = arith.constant 0 : index
    %6 = vector.load %arg0[%5, %c0_6, %c0_7] : memref<8x2x4xf32, #tpu.memory_space<vmem>>, vector<1x2x4xf32>
    %7 = vector.shape_cast %6 : vector<1x2x4xf32> to vector<2x4xf32>
    %cst_8 = arith.constant dense<0.000000e+00> : vector<2x512xf32>
    %8 = tpu.matmul %7, %0, %cst_8 {dimension_numbers = #tpu.dot_dimension_numbers<[1], [0], [0], [1], [0, 0, 1, 1], [], []>} : vector<2x4xf32>, vector<4x512xf32>, vector<2x512xf32> -> vector<2x512xf32>
    %cst_9 = arith.constant dense<0.000000e+00> : vector<2x512xf32>
    %9 = tpu.matmul %3, %1, %cst_9 {dimension_numbers = #tpu.dot_dimension_numbers<[1], [0], [0], [1], [0, 0, 1, 1], [], []>} : vector<2x128xf32>, vector<128x512xf32>, vector<2x512xf32> -> vector<2x512xf32>
    %10 = arith.addf %8, %9 : vector<2x512xf32>
    %11 = vector.broadcast %2 : vector<1x512xf32> to vector<2x512xf32>
    %12 = arith.addf %10, %11 : vector<2x512xf32>
    %13 = vector.extract_strided_slice %12 {offsets = [0, 0], sizes = [2, 128], strides = [1, 1]} : vector<2x512xf32> to vector<2x128xf32>
    %14 = arith.negf %13 : vector<2x128xf32>
    %15 = math.exp %14 : vector<2x128xf32>
    %cst_10 = arith.constant 1.000000e+00 : f32
    %16 = vector.broadcast %cst_10 : f32 to vector<2x128xf32>
    %17 = arith.addf %16, %15 : vector<2x128xf32>
    %18 = arith.divf %16, %17 : vector<2x128xf32>
    %19 = vector.extract_strided_slice %12 {offsets = [0, 128], sizes = [2, 128], strides = [1, 1]} : vector<2x512xf32> to vector<2x128xf32>
    %20 = arith.negf %19 : vector<2x128xf32>
    %21 = math.exp %20 : vector<2x128xf32>
    %cst_11 = arith.constant 1.000000e+00 : f32
    %22 = vector.broadcast %cst_11 : f32 to vector<2x128xf32>
    %23 = arith.addf %22, %21 : vector<2x128xf32>
    %24 = arith.divf %22, %23 : vector<2x128xf32>
    %25 = vector.extract_strided_slice %12 {offsets = [0, 256], sizes = [2, 128], strides = [1, 1]} : vector<2x512xf32> to vector<2x128xf32>
    %26 = math.tanh %25 : vector<2x128xf32>
    %27 = vector.extract_strided_slice %12 {offsets = [0, 384], sizes = [2, 128], strides = [1, 1]} : vector<2x512xf32> to vector<2x128xf32>
    %28 = arith.negf %27 : vector<2x128xf32>
    %29 = math.exp %28 : vector<2x128xf32>
    %cst_12 = arith.constant 1.000000e+00 : f32
    %30 = vector.broadcast %cst_12 : f32 to vector<2x128xf32>
    %31 = arith.addf %30, %29 : vector<2x128xf32>
    %32 = arith.divf %30, %31 : vector<2x128xf32>
    %33 = arith.mulf %24, %4 : vector<2x128xf32>
    %34 = arith.mulf %18, %26 : vector<2x128xf32>
    %35 = arith.addf %33, %34 : vector<2x128xf32>
    %36 = math.tanh %35 : vector<2x128xf32>
    %37 = arith.mulf %32, %36 : vector<2x128xf32>
    %38 = arith.index_cast %c0_i32 : i32 to index
    %c0_13 = arith.constant 0 : index
    %c0_14 = arith.constant 0 : index
    %39 = vector.load %arg10[%38, %c0_13, %c0_14] : memref<8x2x128xf32, #tpu.memory_space<vmem>>, vector<1x2x128xf32>
    %40 = vector.shape_cast %39 : vector<1x2x128xf32> to vector<2x128xf32>
    %41 = vector.shape_cast %37 : vector<2x128xf32> to vector<1x2x128xf32>
    tpu.vector_store %arg10[%38, %c0_13, %c0_14], %41 {strides = array<i32>} : memref<8x2x128xf32, #tpu.memory_space<vmem>>, vector<1x2x128xf32>,
    %c1_i32 = arith.constant 1 : i32
    %42 = arith.index_cast %c1_i32 : i32 to index
    %c0_15 = arith.constant 0 : index
    %c0_16 = arith.constant 0 : index
    %43 = vector.load %arg0[%42, %c0_15, %c0_16] : memref<8x2x4xf32, #tpu.memory_space<vmem>>, vector<1x2x4xf32>
    %44 = vector.shape_cast %43 : vector<1x2x4xf32> to vector<2x4xf32>
    %cst_17 = arith.constant dense<0.000000e+00> : vector<2x512xf32>
    %45 = tpu.matmul %44, %0, %cst_17 {dimension_numbers = #tpu.dot_dimension_numbers<[1], [0], [0], [1], [0, 0, 1, 1], [], []>} : vector<2x4xf32>, vector<4x512xf32>, vector<2x512xf32> -> vector<2x512xf32>
    %cst_18 = arith.constant dense<0.000000e+00> : vector<2x512xf32>
    %46 = tpu.matmul %37, %1, %cst_18 {dimension_numbers = #tpu.dot_dimension_numbers<[1], [0], [0], [1], [0, 0, 1, 1], [], []>} : vector<2x128xf32>, vector<128x512xf32>, vector<2x512xf32> -> vector<2x512xf32>
    %47 = arith.addf %45, %46 : vector<2x512xf32>
    %48 = vector.broadcast %2 : vector<1x512xf32> to vector<2x512xf32>
    %49 = arith.addf %47, %48 : vector<2x512xf32>
    %50 = vector.extract_strided_slice %49 {offsets = [0, 0], sizes = [2, 128], strides = [1, 1]} : vector<2x512xf32> to vector<2x128xf32>
    %51 = arith.negf %50 : vector<2x128xf32>
    %52 = math.exp %51 : vector<2x128xf32>
    %cst_19 = arith.constant 1.000000e+00 : f32
    %53 = vector.broadcast %cst_19 : f32 to vector<2x128xf32>
    %54 = arith.addf %53, %52 : vector<2x128xf32>
    %55 = arith.divf %53, %54 : vector<2x128xf32>
    %56 = vector.extract_strided_slice %49 {offsets = [0, 128], sizes = [2, 128], strides = [1, 1]} : vector<2x512xf32> to vector<2x128xf32>
    %57 = arith.negf %56 : vector<2x128xf32>
    %58 = math.exp %57 : vector<2x128xf32>
    %cst_20 = arith.constant 1.000000e+00 : f32
    %59 = vector.broadcast %cst_20 : f32 to vector<2x128xf32>
    %60 = arith.addf %59, %58 : vector<2x128xf32>
    %61 = arith.divf %59, %60 : vector<2x128xf32>
    %62 = vector.extract_strided_slice %49 {offsets = [0, 256], sizes = [2, 128], strides = [1, 1]} : vector<2x512xf32> to vector<2x128xf32>
    %63 = math.tanh %62 : vector<2x128xf32>
    %64 = vector.extract_strided_slice %49 {offsets = [0, 384], sizes = [2, 128], strides = [1, 1]} : vector<2x512xf32> to vector<2x128xf32>
    %65 = arith.negf %64 : vector<2x128xf32>
    %66 = math.exp %65 : vector<2x128xf32>
    %cst_21 = arith.constant 1.000000e+00 : f32
    %67 = vector.broadcast %cst_21 : f32 to vector<2x128xf32>
    %68 = arith.addf %67, %66 : vector<2x128xf32>
    %69 = arith.divf %67, %68 : vector<2x128xf32>
    %70 = arith.mulf %61, %35 : vector<2x128xf32>
    %71 = arith.mulf %55, %63 : vector<2x128xf32>
    %72 = arith.addf %70, %71 : vector<2x128xf32>
    %73 = math.tanh %72 : vector<2x128xf32>
    %74 = arith.mulf %69, %73 : vector<2x128xf32>
    %75 = arith.index_cast %c1_i32 : i32 to index
    %c0_22 = arith.constant 0 : index
    %c0_23 = arith.constant 0 : index
    %76 = vector.load %arg10[%75, %c0_22, %c0_23] : memref<8x2x128xf32, #tpu.memory_space<vmem>>, vector<1x2x128xf32>
    %77 = vector.shape_cast %76 : vector<1x2x128xf32> to vector<2x128xf32>
    %78 = vector.shape_cast %74 : vector<2x128xf32> to vector<1x2x128xf32>
    tpu.vector_store %arg10[%75, %c0_22, %c0_23], %78 {strides = array<i32>} : memref<8x2x128xf32, #tpu.memory_space<vmem>>, vector<1x2x128xf32>,
    %c2_i32 = arith.constant 2 : i32
    %79 = arith.index_cast %c2_i32 : i32 to index
    %c0_24 = arith.constant 0 : index
    %c0_25 = arith.constant 0 : index
    %80 = vector.load %arg0[%79, %c0_24, %c0_25] : memref<8x2x4xf32, #tpu.memory_space<vmem>>, vector<1x2x4xf32>
    %81 = vector.shape_cast %80 : vector<1x2x4xf32> to vector<2x4xf32>
    %cst_26 = arith.constant dense<0.000000e+00> : vector<2x512xf32>
    %82 = tpu.matmul %81, %0, %cst_26 {dimension_numbers = #tpu.dot_dimension_numbers<[1], [0], [0], [1], [0, 0, 1, 1], [], []>} : vector<2x4xf32>, vector<4x512xf32>, vector<2x512xf32> -> vector<2x512xf32>
    %cst_27 = arith.constant dense<0.000000e+00> : vector<2x512xf32>
    %83 = tpu.matmul %74, %1, %cst_27 {dimension_numbers = #tpu.dot_dimension_numbers<[1], [0], [0], [1], [0, 0, 1, 1], [], []>} : vector<2x128xf32>, vector<128x512xf32>, vector<2x512xf32> -> vector<2x512xf32>
    %84 = arith.addf %82, %83 : vector<2x512xf32>
    %85 = vector.broadcast %2 : vector<1x512xf32> to vector<2x512xf32>
    %86 = arith.addf %84, %85 : vector<2x512xf32>
    %87 = vector.extract_strided_slice %86 {offsets = [0, 0], sizes = [2, 128], strides = [1, 1]} : vector<2x512xf32> to vector<2x128xf32>
    %88 = arith.negf %87 : vector<2x128xf32>
    %89 = math.exp %88 : vector<2x128xf32>
    %cst_28 = arith.constant 1.000000e+00 : f32
    %90 = vector.broadcast %cst_28 : f32 to vector<2x128xf32>
    %91 = arith.addf %90, %89 : vector<2x128xf32>
    %92 = arith.divf %90, %91 : vector<2x128xf32>
    %93 = vector.extract_strided_slice %86 {offsets = [0, 128], sizes = [2, 128], strides = [1, 1]} : vector<2x512xf32> to vector<2x128xf32>
    %94 = arith.negf %93 : vector<2x128xf32>
    %95 = math.exp %94 : vector<2x128xf32>
    %cst_29 = arith.constant 1.000000e+00 : f32
    %96 = vector.broadcast %cst_29 : f32 to vector<2x128xf32>
    %97 = arith.addf %96, %95 : vector<2x128xf32>
    %98 = arith.divf %96, %97 : vector<2x128xf32>
    %99 = vector.extract_strided_slice %86 {offsets = [0, 256], sizes = [2, 128], strides = [1, 1]} : vector<2x512xf32> to vector<2x128xf32>
    %100 = math.tanh %99 : vector<2x128xf32>
    %101 = vector.extract_strided_slice %86 {offsets = [0, 384], sizes = [2, 128], strides = [1, 1]} : vector<2x512xf32> to vector<2x128xf32>
    %102 = arith.negf %101 : vector<2x128xf32>
    %103 = math.exp %102 : vector<2x128xf32>
    %cst_30 = arith.constant 1.000000e+00 : f32
    %104 = vector.broadcast %cst_30 : f32 to vector<2x128xf32>
    %105 = arith.addf %104, %103 : vector<2x128xf32>
    %106 = arith.divf %104, %105 : vector<2x128xf32>
    %107 = arith.mulf %98, %72 : vector<2x128xf32>
    %108 = arith.mulf %92, %100 : vector<2x128xf32>
    %109 = arith.addf %107, %108 : vector<2x128xf32>
    %110 = math.tanh %109 : vector<2x128xf32>
    %111 = arith.mulf %106, %110 : vector<2x128xf32>
    %112 = arith.index_cast %c2_i32 : i32 to index
    %c0_31 = arith.constant 0 : index
    %c0_32 = arith.constant 0 : index
    %113 = vector.load %arg10[%112, %c0_31, %c0_32] : memref<8x2x128xf32, #tpu.memory_space<vmem>>, vector<1x2x128xf32>
    %114 = vector.shape_cast %113 : vector<1x2x128xf32> to vector<2x128xf32>
    %115 = vector.shape_cast %111 : vector<2x128xf32> to vector<1x2x128xf32>
    tpu.vector_store %arg10[%112, %c0_31, %c0_32], %115 {strides = array<i32>} : memref<8x2x128xf32, #tpu.memory_space<vmem>>, vector<1x2x128xf32>,
    %c3_i32 = arith.constant 3 : i32
    %116 = arith.index_cast %c3_i32 : i32 to index
    %c0_33 = arith.constant 0 : index
    %c0_34 = arith.constant 0 : index
    %117 = vector.load %arg0[%116, %c0_33, %c0_34] : memref<8x2x4xf32, #tpu.memory_space<vmem>>, vector<1x2x4xf32>
    %118 = vector.shape_cast %117 : vector<1x2x4xf32> to vector<2x4xf32>
    %cst_35 = arith.constant dense<0.000000e+00> : vector<2x512xf32>
    %119 = tpu.matmul %118, %0, %cst_35 {dimension_numbers = #tpu.dot_dimension_numbers<[1], [0], [0], [1], [0, 0, 1, 1], [], []>} : vector<2x4xf32>, vector<4x512xf32>, vector<2x512xf32> -> vector<2x512xf32>
    %cst_36 = arith.constant dense<0.000000e+00> : vector<2x512xf32>
    %120 = tpu.matmul %111, %1, %cst_36 {dimension_numbers = #tpu.dot_dimension_numbers<[1], [0], [0], [1], [0, 0, 1, 1], [], []>} : vector<2x128xf32>, vector<128x512xf32>, vector<2x512xf32> -> vector<2x512xf32>
    %121 = arith.addf %119, %120 : vector<2x512xf32>
    %122 = vector.broadcast %2 : vector<1x512xf32> to vector<2x512xf32>
    %123 = arith.addf %121, %122 : vector<2x512xf32>
    %124 = vector.extract_strided_slice %123 {offsets = [0, 0], sizes = [2, 128], strides = [1, 1]} : vector<2x512xf32> to vector<2x128xf32>
    %125 = arith.negf %124 : vector<2x128xf32>
    %126 = math.exp %125 : vector<2x128xf32>
    %cst_37 = arith.constant 1.000000e+00 : f32
    %127 = vector.broadcast %cst_37 : f32 to vector<2x128xf32>
    %128 = arith.addf %127, %126 : vector<2x128xf32>
    %129 = arith.divf %127, %128 : vector<2x128xf32>
    %130 = vector.extract_strided_slice %123 {offsets = [0, 128], sizes = [2, 128], strides = [1, 1]} : vector<2x512xf32> to vector<2x128xf32>
    %131 = arith.negf %130 : vector<2x128xf32>
    %132 = math.exp %131 : vector<2x128xf32>
    %cst_38 = arith.constant 1.000000e+00 : f32
    %133 = vector.broadcast %cst_38 : f32 to vector<2x128xf32>
    %134 = arith.addf %133, %132 : vector<2x128xf32>
    %135 = arith.divf %133, %134 : vector<2x128xf32>
    %136 = vector.extract_strided_slice %123 {offsets = [0, 256], sizes = [2, 128], strides = [1, 1]} : vector<2x512xf32> to vector<2x128xf32>
    %137 = math.tanh %136 : vector<2x128xf32>
    %138 = vector.extract_strided_slice %123 {offsets = [0, 384], sizes = [2, 128], strides = [1, 1]} : vector<2x512xf32> to vector<2x128xf32>
    %139 = arith.negf %138 : vector<2x128xf32>
    %140 = math.exp %139 : vector<2x128xf32>
    %cst_39 = arith.constant 1.000000e+00 : f32
    %141 = vector.broadcast %cst_39 : f32 to vector<2x128xf32>
    %142 = arith.addf %141, %140 : vector<2x128xf32>
    %143 = arith.divf %141, %142 : vector<2x128xf32>
    %144 = arith.mulf %135, %109 : vector<2x128xf32>
    %145 = arith.mulf %129, %137 : vector<2x128xf32>
    %146 = arith.addf %144, %145 : vector<2x128xf32>
    %147 = math.tanh %146 : vector<2x128xf32>
    %148 = arith.mulf %143, %147 : vector<2x128xf32>
    %149 = arith.index_cast %c3_i32 : i32 to index
    %c0_40 = arith.constant 0 : index
    %c0_41 = arith.constant 0 : index
    %150 = vector.load %arg10[%149, %c0_40, %c0_41] : memref<8x2x128xf32, #tpu.memory_space<vmem>>, vector<1x2x128xf32>
    %151 = vector.shape_cast %150 : vector<1x2x128xf32> to vector<2x128xf32>
    %152 = vector.shape_cast %148 : vector<2x128xf32> to vector<1x2x128xf32>
    tpu.vector_store %arg10[%149, %c0_40, %c0_41], %152 {strides = array<i32>} : memref<8x2x128xf32, #tpu.memory_space<vmem>>, vector<1x2x128xf32>,
    %c4_i32 = arith.constant 4 : i32
    %153 = arith.index_cast %c4_i32 : i32 to index
    %c0_42 = arith.constant 0 : index
    %c0_43 = arith.constant 0 : index
    %154 = vector.load %arg0[%153, %c0_42, %c0_43] : memref<8x2x4xf32, #tpu.memory_space<vmem>>, vector<1x2x4xf32>
    %155 = vector.shape_cast %154 : vector<1x2x4xf32> to vector<2x4xf32>
    %cst_44 = arith.constant dense<0.000000e+00> : vector<2x512xf32>
    %156 = tpu.matmul %155, %0, %cst_44 {dimension_numbers = #tpu.dot_dimension_numbers<[1], [0], [0], [1], [0, 0, 1, 1], [], []>} : vector<2x4xf32>, vector<4x512xf32>, vector<2x512xf32> -> vector<2x512xf32>
    %cst_45 = arith.constant dense<0.000000e+00> : vector<2x512xf32>
    %157 = tpu.matmul %148, %1, %cst_45 {dimension_numbers = #tpu.dot_dimension_numbers<[1], [0], [0], [1], [0, 0, 1, 1], [], []>} : vector<2x128xf32>, vector<128x512xf32>, vector<2x512xf32> -> vector<2x512xf32>
    %158 = arith.addf %156, %157 : vector<2x512xf32>
    %159 = vector.broadcast %2 : vector<1x512xf32> to vector<2x512xf32>
    %160 = arith.addf %158, %159 : vector<2x512xf32>
    %161 = vector.extract_strided_slice %160 {offsets = [0, 0], sizes = [2, 128], strides = [1, 1]} : vector<2x512xf32> to vector<2x128xf32>
    %162 = arith.negf %161 : vector<2x128xf32>
    %163 = math.exp %162 : vector<2x128xf32>
    %cst_46 = arith.constant 1.000000e+00 : f32
    %164 = vector.broadcast %cst_46 : f32 to vector<2x128xf32>
    %165 = arith.addf %164, %163 : vector<2x128xf32>
    %166 = arith.divf %164, %165 : vector<2x128xf32>
    %167 = vector.extract_strided_slice %160 {offsets = [0, 128], sizes = [2, 128], strides = [1, 1]} : vector<2x512xf32> to vector<2x128xf32>
    %168 = arith.negf %167 : vector<2x128xf32>
    %169 = math.exp %168 : vector<2x128xf32>
    %cst_47 = arith.constant 1.000000e+00 : f32
    %170 = vector.broadcast %cst_47 : f32 to vector<2x128xf32>
    %171 = arith.addf %170, %169 : vector<2x128xf32>
    %172 = arith.divf %170, %171 : vector<2x128xf32>
    %173 = vector.extract_strided_slice %160 {offsets = [0, 256], sizes = [2, 128], strides = [1, 1]} : vector<2x512xf32> to vector<2x128xf32>
    %174 = math.tanh %173 : vector<2x128xf32>
    %175 = vector.extract_strided_slice %160 {offsets = [0, 384], sizes = [2, 128], strides = [1, 1]} : vector<2x512xf32> to vector<2x128xf32>
    %176 = arith.negf %175 : vector<2x128xf32>
    %177 = math.exp %176 : vector<2x128xf32>
    %cst_48 = arith.constant 1.000000e+00 : f32
    %178 = vector.broadcast %cst_48 : f32 to vector<2x128xf32>
    %179 = arith.addf %178, %177 : vector<2x128xf32>
    %180 = arith.divf %178, %179 : vector<2x128xf32>
    %181 = arith.mulf %172, %146 : vector<2x128xf32>
    %182 = arith.mulf %166, %174 : vector<2x128xf32>
    %183 = arith.addf %181, %182 : vector<2x128xf32>
    %184 = math.tanh %183 : vector<2x128xf32>
    %185 = arith.mulf %180, %184 : vector<2x128xf32>
    %186 = arith.index_cast %c4_i32 : i32 to index
    %c0_49 = arith.constant 0 : index
    %c0_50 = arith.constant 0 : index
    %187 = vector.load %arg10[%186, %c0_49, %c0_50] : memref<8x2x128xf32, #tpu.memory_space<vmem>>, vector<1x2x128xf32>
    %188 = vector.shape_cast %187 : vector<1x2x128xf32> to vector<2x128xf32>
    %189 = vector.shape_cast %185 : vector<2x128xf32> to vector<1x2x128xf32>
    tpu.vector_store %arg10[%186, %c0_49, %c0_50], %189 {strides = array<i32>} : memref<8x2x128xf32, #tpu.memory_space<vmem>>, vector<1x2x128xf32>,
    %c5_i32 = arith.constant 5 : i32
    %190 = arith.index_cast %c5_i32 : i32 to index
    %c0_51 = arith.constant 0 : index
    %c0_52 = arith.constant 0 : index
    %191 = vector.load %arg0[%190, %c0_51, %c0_52] : memref<8x2x4xf32, #tpu.memory_space<vmem>>, vector<1x2x4xf32>
    %192 = vector.shape_cast %191 : vector<1x2x4xf32> to vector<2x4xf32>
    %cst_53 = arith.constant dense<0.000000e+00> : vector<2x512xf32>
    %193 = tpu.matmul %192, %0, %cst_53 {dimension_numbers = #tpu.dot_dimension_numbers<[1], [0], [0], [1], [0, 0, 1, 1], [], []>} : vector<2x4xf32>, vector<4x512xf32>, vector<2x512xf32> -> vector<2x512xf32>
    %cst_54 = arith.constant dense<0.000000e+00> : vector<2x512xf32>
    %194 = tpu.matmul %185, %1, %cst_54 {dimension_numbers = #tpu.dot_dimension_numbers<[1], [0], [0], [1], [0, 0, 1, 1], [], []>} : vector<2x128xf32>, vector<128x512xf32>, vector<2x512xf32> -> vector<2x512xf32>
    %195 = arith.addf %193, %194 : vector<2x512xf32>
    %196 = vector.broadcast %2 : vector<1x512xf32> to vector<2x512xf32>
    %197 = arith.addf %195, %196 : vector<2x512xf32>
    %198 = vector.extract_strided_slice %197 {offsets = [0, 0], sizes = [2, 128], strides = [1, 1]} : vector<2x512xf32> to vector<2x128xf32>
    %199 = arith.negf %198 : vector<2x128xf32>
    %200 = math.exp %199 : vector<2x128xf32>
    %cst_55 = arith.constant 1.000000e+00 : f32
    %201 = vector.broadcast %cst_55 : f32 to vector<2x128xf32>
    %202 = arith.addf %201, %200 : vector<2x128xf32>
    %203 = arith.divf %201, %202 : vector<2x128xf32>
    %204 = vector.extract_strided_slice %197 {offsets = [0, 128], sizes = [2, 128], strides = [1, 1]} : vector<2x512xf32> to vector<2x128xf32>
    %205 = arith.negf %204 : vector<2x128xf32>
    %206 = math.exp %205 : vector<2x128xf32>
    %cst_56 = arith.constant 1.000000e+00 : f32
    %207 = vector.broadcast %cst_56 : f32 to vector<2x128xf32>
    %208 = arith.addf %207, %206 : vector<2x128xf32>
    %209 = arith.divf %207, %208 : vector<2x128xf32>
    %210 = vector.extract_strided_slice %197 {offsets = [0, 256], sizes = [2, 128], strides = [1, 1]} : vector<2x512xf32> to vector<2x128xf32>
    %211 = math.tanh %210 : vector<2x128xf32>
    %212 = vector.extract_strided_slice %197 {offsets = [0, 384], sizes = [2, 128], strides = [1, 1]} : vector<2x512xf32> to vector<2x128xf32>
    %213 = arith.negf %212 : vector<2x128xf32>
    %214 = math.exp %213 : vector<2x128xf32>
    %cst_57 = arith.constant 1.000000e+00 : f32
    %215 = vector.broadcast %cst_57 : f32 to vector<2x128xf32>
    %216 = arith.addf %215, %214 : vector<2x128xf32>
    %217 = arith.divf %215, %216 : vector<2x128xf32>
    %218 = arith.mulf %209, %183 : vector<2x128xf32>
    %219 = arith.mulf %203, %211 : vector<2x128xf32>
    %220 = arith.addf %218, %219 : vector<2x128xf32>
    %221 = math.tanh %220 : vector<2x128xf32>
    %222 = arith.mulf %217, %221 : vector<2x128xf32>
    %223 = arith.index_cast %c5_i32 : i32 to index
    %c0_58 = arith.constant 0 : index
    %c0_59 = arith.constant 0 : index
    %224 = vector.load %arg10[%223, %c0_58, %c0_59] : memref<8x2x128xf32, #tpu.memory_space<vmem>>, vector<1x2x128xf32>
    %225 = vector.shape_cast %224 : vector<1x2x128xf32> to vector<2x128xf32>
    %226 = vector.shape_cast %222 : vector<2x128xf32> to vector<1x2x128xf32>
    tpu.vector_store %arg10[%223, %c0_58, %c0_59], %226 {strides = array<i32>} : memref<8x2x128xf32, #tpu.memory_space<vmem>>, vector<1x2x128xf32>,
    %c6_i32 = arith.constant 6 : i32
    %227 = arith.index_cast %c6_i32 : i32 to index
    %c0_60 = arith.constant 0 : index
    %c0_61 = arith.constant 0 : index
    %228 = vector.load %arg0[%227, %c0_60, %c0_61] : memref<8x2x4xf32, #tpu.memory_space<vmem>>, vector<1x2x4xf32>
    %229 = vector.shape_cast %228 : vector<1x2x4xf32> to vector<2x4xf32>
    %cst_62 = arith.constant dense<0.000000e+00> : vector<2x512xf32>
    %230 = tpu.matmul %229, %0, %cst_62 {dimension_numbers = #tpu.dot_dimension_numbers<[1], [0], [0], [1], [0, 0, 1, 1], [], []>} : vector<2x4xf32>, vector<4x512xf32>, vector<2x512xf32> -> vector<2x512xf32>
    %cst_63 = arith.constant dense<0.000000e+00> : vector<2x512xf32>
    %231 = tpu.matmul %222, %1, %cst_63 {dimension_numbers = #tpu.dot_dimension_numbers<[1], [0], [0], [1], [0, 0, 1, 1], [], []>} : vector<2x128xf32>, vector<128x512xf32>, vector<2x512xf32> -> vector<2x512xf32>
    %232 = arith.addf %230, %231 : vector<2x512xf32>
    %233 = vector.broadcast %2 : vector<1x512xf32> to vector<2x512xf32>
    %234 = arith.addf %232, %233 : vector<2x512xf32>
    %235 = vector.extract_strided_slice %234 {offsets = [0, 0], sizes = [2, 128], strides = [1, 1]} : vector<2x512xf32> to vector<2x128xf32>
    %236 = arith.negf %235 : vector<2x128xf32>
    %237 = math.exp %236 : vector<2x128xf32>
    %cst_64 = arith.constant 1.000000e+00 : f32
    %238 = vector.broadcast %cst_64 : f32 to vector<2x128xf32>
    %239 = arith.addf %238, %237 : vector<2x128xf32>
    %240 = arith.divf %238, %239 : vector<2x128xf32>
    %241 = vector.extract_strided_slice %234 {offsets = [0, 128], sizes = [2, 128], strides = [1, 1]} : vector<2x512xf32> to vector<2x128xf32>
    %242 = arith.negf %241 : vector<2x128xf32>
    %243 = math.exp %242 : vector<2x128xf32>
    %cst_65 = arith.constant 1.000000e+00 : f32
    %244 = vector.broadcast %cst_65 : f32 to vector<2x128xf32>
    %245 = arith.addf %244, %243 : vector<2x128xf32>
    %246 = arith.divf %244, %245 : vector<2x128xf32>
    %247 = vector.extract_strided_slice %234 {offsets = [0, 256], sizes = [2, 128], strides = [1, 1]} : vector<2x512xf32> to vector<2x128xf32>
    %248 = math.tanh %247 : vector<2x128xf32>
    %249 = vector.extract_strided_slice %234 {offsets = [0, 384], sizes = [2, 128], strides = [1, 1]} : vector<2x512xf32> to vector<2x128xf32>
    %250 = arith.negf %249 : vector<2x128xf32>
    %251 = math.exp %250 : vector<2x128xf32>
    %cst_66 = arith.constant 1.000000e+00 : f32
    %252 = vector.broadcast %cst_66 : f32 to vector<2x128xf32>
    %253 = arith.addf %252, %251 : vector<2x128xf32>
    %254 = arith.divf %252, %253 : vector<2x128xf32>
    %255 = arith.mulf %246, %220 : vector<2x128xf32>
    %256 = arith.mulf %240, %248 : vector<2x128xf32>
    %257 = arith.addf %255, %256 : vector<2x128xf32>
    %258 = math.tanh %257 : vector<2x128xf32>
    %259 = arith.mulf %254, %258 : vector<2x128xf32>
    %260 = arith.index_cast %c6_i32 : i32 to index
    %c0_67 = arith.constant 0 : index
    %c0_68 = arith.constant 0 : index
    %261 = vector.load %arg10[%260, %c0_67, %c0_68] : memref<8x2x128xf32, #tpu.memory_space<vmem>>, vector<1x2x128xf32>
    %262 = vector.shape_cast %261 : vector<1x2x128xf32> to vector<2x128xf32>
    %263 = vector.shape_cast %259 : vector<2x128xf32> to vector<1x2x128xf32>
    tpu.vector_store %arg10[%260, %c0_67, %c0_68], %263 {strides = array<i32>} : memref<8x2x128xf32, #tpu.memory_space<vmem>>, vector<1x2x128xf32>,
    %c7_i32 = arith.constant 7 : i32
    %264 = arith.index_cast %c7_i32 : i32 to index
    %c0_69 = arith.constant 0 : index
    %c0_70 = arith.constant 0 : index
    %265 = vector.load %arg0[%264, %c0_69, %c0_70] : memref<8x2x4xf32, #tpu.memory_space<vmem>>, vector<1x2x4xf32>
    %266 = vector.shape_cast %265 : vector<1x2x4xf32> to vector<2x4xf32>
    %cst_71 = arith.constant dense<0.000000e+00> : vector<2x512xf32>
    %267 = tpu.matmul %266, %0, %cst_71 {dimension_numbers = #tpu.dot_dimension_numbers<[1], [0], [0], [1], [0, 0, 1, 1], [], []>} : vector<2x4xf32>, vector<4x512xf32>, vector<2x512xf32> -> vector<2x512xf32>
    %cst_72 = arith.constant dense<0.000000e+00> : vector<2x512xf32>
    %268 = tpu.matmul %259, %1, %cst_72 {dimension_numbers = #tpu.dot_dimension_numbers<[1], [0], [0], [1], [0, 0, 1, 1], [], []>} : vector<2x128xf32>, vector<128x512xf32>, vector<2x512xf32> -> vector<2x512xf32>
    %269 = arith.addf %267, %268 : vector<2x512xf32>
    %270 = vector.broadcast %2 : vector<1x512xf32> to vector<2x512xf32>
    %271 = arith.addf %269, %270 : vector<2x512xf32>
    %272 = vector.extract_strided_slice %271 {offsets = [0, 0], sizes = [2, 128], strides = [1, 1]} : vector<2x512xf32> to vector<2x128xf32>
    %273 = arith.negf %272 : vector<2x128xf32>
    %274 = math.exp %273 : vector<2x128xf32>
    %cst_73 = arith.constant 1.000000e+00 : f32
    %275 = vector.broadcast %cst_73 : f32 to vector<2x128xf32>
    %276 = arith.addf %275, %274 : vector<2x128xf32>
    %277 = arith.divf %275, %276 : vector<2x128xf32>
    %278 = vector.extract_strided_slice %271 {offsets = [0, 128], sizes = [2, 128], strides = [1, 1]} : vector<2x512xf32> to vector<2x128xf32>
    %279 = arith.negf %278 : vector<2x128xf32>
    %280 = math.exp %279 : vector<2x128xf32>
    %cst_74 = arith.constant 1.000000e+00 : f32
    %281 = vector.broadcast %cst_74 : f32 to vector<2x128xf32>
    %282 = arith.addf %281, %280 : vector<2x128xf32>
    %283 = arith.divf %281, %282 : vector<2x128xf32>
    %284 = vector.extract_strided_slice %271 {offsets = [0, 256], sizes = [2, 128], strides = [1, 1]} : vector<2x512xf32> to vector<2x128xf32>
    %285 = math.tanh %284 : vector<2x128xf32>
    %286 = vector.extract_strided_slice %271 {offsets = [0, 384], sizes = [2, 128], strides = [1, 1]} : vector<2x512xf32> to vector<2x128xf32>
    %287 = arith.negf %286 : vector<2x128xf32>
    %288 = math.exp %287 : vector<2x128xf32>
    %cst_75 = arith.constant 1.000000e+00 : f32
    %289 = vector.broadcast %cst_75 : f32 to vector<2x128xf32>
    %290 = arith.addf %289, %288 : vector<2x128xf32>
    %291 = arith.divf %289, %290 : vector<2x128xf32>
    %292 = arith.mulf %283, %257 : vector<2x128xf32>
    %293 = arith.mulf %277, %285 : vector<2x128xf32>
    %294 = arith.addf %292, %293 : vector<2x128xf32>
    %295 = math.tanh %294 : vector<2x128xf32>
    %296 = arith.mulf %291, %295 : vector<2x128xf32>
    %297 = arith.index_cast %c7_i32 : i32 to index
    %c0_76 = arith.constant 0 : index
    %c0_77 = arith.constant 0 : index
    %298 = vector.load %arg10[%297, %c0_76, %c0_77] : memref<8x2x128xf32, #tpu.memory_space<vmem>>, vector<1x2x128xf32>
    %299 = vector.shape_cast %298 : vector<1x2x128xf32> to vector<2x128xf32>
    %300 = vector.shape_cast %296 : vector<2x128xf32> to vector<1x2x128xf32>
    tpu.vector_store %arg10[%297, %c0_76, %c0_77], %300 {strides = array<i32>} : memref<8x2x128xf32, #tpu.memory_space<vmem>>, vector<1x2x128xf32>,
    %c8_i32 = arith.constant 8 : i32
    %c0_78 = arith.constant 0 : index
    %c0_79 = arith.constant 0 : index
    %301 = vector.load %arg4[%c0_78, %c0_79] : memref<128x512xf32, #tpu.memory_space<vmem>>, vector<128x512xf32>
    %c0_80 = arith.constant 0 : index
    %c0_81 = arith.constant 0 : index
    %302 = vector.load %arg5[%c0_80, %c0_81] : memref<128x512xf32, #tpu.memory_space<vmem>>, vector<128x512xf32>
    %c0_82 = arith.constant 0 : index
    %c0_83 = arith.constant 0 : index
    %303 = vector.load %arg6[%c0_82, %c0_83] : memref<1x512xf32, #tpu.memory_space<vmem>>, vector<1x512xf32>
    %cst_84 = arith.constant 0.000000e+00 : f32
    %304 = vector.broadcast %cst_84 : f32 to vector<2x128xf32>
    %cst_85 = arith.constant 0.000000e+00 : f32
    %305 = vector.broadcast %cst_85 : f32 to vector<2x128xf32>
    %c0_i32_86 = arith.constant 0 : i32
    %306 = arith.index_cast %c0_i32_86 : i32 to index
    %c0_87 = arith.constant 0 : index
    %c0_88 = arith.constant 0 : index
    %307 = vector.load %arg10[%306, %c0_87, %c0_88] : memref<8x2x128xf32, #tpu.memory_space<vmem>>, vector<1x2x128xf32>
    %308 = vector.shape_cast %307 : vector<1x2x128xf32> to vector<2x128xf32>
    %cst_89 = arith.constant dense<0.000000e+00> : vector<2x512xf32>
    %309 = tpu.matmul %308, %301, %cst_89 {dimension_numbers = #tpu.dot_dimension_numbers<[1], [0], [0], [1], [0, 0, 1, 1], [], []>} : vector<2x128xf32>, vector<128x512xf32>, vector<2x512xf32> -> vector<2x512xf32>
    %cst_90 = arith.constant dense<0.000000e+00> : vector<2x512xf32>
    %310 = tpu.matmul %304, %302, %cst_90 {dimension_numbers = #tpu.dot_dimension_numbers<[1], [0], [0], [1], [0, 0, 1, 1], [], []>} : vector<2x128xf32>, vector<128x512xf32>, vector<2x512xf32> -> vector<2x512xf32>
    %311 = arith.addf %309, %310 : vector<2x512xf32>
    %312 = vector.broadcast %303 : vector<1x512xf32> to vector<2x512xf32>
    %313 = arith.addf %311, %312 : vector<2x512xf32>
    %314 = vector.extract_strided_slice %313 {offsets = [0, 0], sizes = [2, 128], strides = [1, 1]} : vector<2x512xf32> to vector<2x128xf32>
    %315 = arith.negf %314 : vector<2x128xf32>
    %316 = math.exp %315 : vector<2x128xf32>
    %cst_91 = arith.constant 1.000000e+00 : f32
    %317 = vector.broadcast %cst_91 : f32 to vector<2x128xf32>
    %318 = arith.addf %317, %316 : vector<2x128xf32>
    %319 = arith.divf %317, %318 : vector<2x128xf32>
    %320 = vector.extract_strided_slice %313 {offsets = [0, 128], sizes = [2, 128], strides = [1, 1]} : vector<2x512xf32> to vector<2x128xf32>
    %321 = arith.negf %320 : vector<2x128xf32>
    %322 = math.exp %321 : vector<2x128xf32>
    %cst_92 = arith.constant 1.000000e+00 : f32
    %323 = vector.broadcast %cst_92 : f32 to vector<2x128xf32>
    %324 = arith.addf %323, %322 : vector<2x128xf32>
    %325 = arith.divf %323, %324 : vector<2x128xf32>
    %326 = vector.extract_strided_slice %313 {offsets = [0, 256], sizes = [2, 128], strides = [1, 1]} : vector<2x512xf32> to vector<2x128xf32>
    %327 = math.tanh %326 : vector<2x128xf32>
    %328 = vector.extract_strided_slice %313 {offsets = [0, 384], sizes = [2, 128], strides = [1, 1]} : vector<2x512xf32> to vector<2x128xf32>
    %329 = arith.negf %328 : vector<2x128xf32>
    %330 = math.exp %329 : vector<2x128xf32>
    %cst_93 = arith.constant 1.000000e+00 : f32
    %331 = vector.broadcast %cst_93 : f32 to vector<2x128xf32>
    %332 = arith.addf %331, %330 : vector<2x128xf32>
    %333 = arith.divf %331, %332 : vector<2x128xf32>
    %334 = arith.mulf %325, %305 : vector<2x128xf32>
    %335 = arith.mulf %319, %327 : vector<2x128xf32>
    %336 = arith.addf %334, %335 : vector<2x128xf32>
    %337 = math.tanh %336 : vector<2x128xf32>
    %338 = arith.mulf %333, %337 : vector<2x128xf32>
    %c1_i32_94 = arith.constant 1 : i32
    %339 = arith.index_cast %c1_i32_94 : i32 to index
    %c0_95 = arith.constant 0 : index
    %c0_96 = arith.constant 0 : index
    %340 = vector.load %arg10[%339, %c0_95, %c0_96] : memref<8x2x128xf32, #tpu.memory_space<vmem>>, vector<1x2x128xf32>
    %341 = vector.shape_cast %340 : vector<1x2x128xf32> to vector<2x128xf32>
    %cst_97 = arith.constant dense<0.000000e+00> : vector<2x512xf32>
    %342 = tpu.matmul %341, %301, %cst_97 {dimension_numbers = #tpu.dot_dimension_numbers<[1], [0], [0], [1], [0, 0, 1, 1], [], []>} : vector<2x128xf32>, vector<128x512xf32>, vector<2x512xf32> -> vector<2x512xf32>
    %cst_98 = arith.constant dense<0.000000e+00> : vector<2x512xf32>
    %343 = tpu.matmul %338, %302, %cst_98 {dimension_numbers = #tpu.dot_dimension_numbers<[1], [0], [0], [1], [0, 0, 1, 1], [], []>} : vector<2x128xf32>, vector<128x512xf32>, vector<2x512xf32> -> vector<2x512xf32>
    %344 = arith.addf %342, %343 : vector<2x512xf32>
    %345 = vector.broadcast %303 : vector<1x512xf32> to vector<2x512xf32>
    %346 = arith.addf %344, %345 : vector<2x512xf32>
    %347 = vector.extract_strided_slice %346 {offsets = [0, 0], sizes = [2, 128], strides = [1, 1]} : vector<2x512xf32> to vector<2x128xf32>
    %348 = arith.negf %347 : vector<2x128xf32>
    %349 = math.exp %348 : vector<2x128xf32>
    %cst_99 = arith.constant 1.000000e+00 : f32
    %350 = vector.broadcast %cst_99 : f32 to vector<2x128xf32>
    %351 = arith.addf %350, %349 : vector<2x128xf32>
    %352 = arith.divf %350, %351 : vector<2x128xf32>
    %353 = vector.extract_strided_slice %346 {offsets = [0, 128], sizes = [2, 128], strides = [1, 1]} : vector<2x512xf32> to vector<2x128xf32>
    %354 = arith.negf %353 : vector<2x128xf32>
    %355 = math.exp %354 : vector<2x128xf32>
    %cst_100 = arith.constant 1.000000e+00 : f32
    %356 = vector.broadcast %cst_100 : f32 to vector<2x128xf32>
    %357 = arith.addf %356, %355 : vector<2x128xf32>
    %358 = arith.divf %356, %357 : vector<2x128xf32>
    %359 = vector.extract_strided_slice %346 {offsets = [0, 256], sizes = [2, 128], strides = [1, 1]} : vector<2x512xf32> to vector<2x128xf32>
    %360 = math.tanh %359 : vector<2x128xf32>
    %361 = vector.extract_strided_slice %346 {offsets = [0, 384], sizes = [2, 128], strides = [1, 1]} : vector<2x512xf32> to vector<2x128xf32>
    %362 = arith.negf %361 : vector<2x128xf32>
    %363 = math.exp %362 : vector<2x128xf32>
    %cst_101 = arith.constant 1.000000e+00 : f32
    %364 = vector.broadcast %cst_101 : f32 to vector<2x128xf32>
    %365 = arith.addf %364, %363 : vector<2x128xf32>
    %366 = arith.divf %364, %365 : vector<2x128xf32>
    %367 = arith.mulf %358, %336 : vector<2x128xf32>
    %368 = arith.mulf %352, %360 : vector<2x128xf32>
    %369 = arith.addf %367, %368 : vector<2x128xf32>
    %370 = math.tanh %369 : vector<2x128xf32>
    %371 = arith.mulf %366, %370 : vector<2x128xf32>
    %c2_i32_102 = arith.constant 2 : i32
    %372 = arith.index_cast %c2_i32_102 : i32 to index
    %c0_103 = arith.constant 0 : index
    %c0_104 = arith.constant 0 : index
    %373 = vector.load %arg10[%372, %c0_103, %c0_104] : memref<8x2x128xf32, #tpu.memory_space<vmem>>, vector<1x2x128xf32>
    %374 = vector.shape_cast %373 : vector<1x2x128xf32> to vector<2x128xf32>
    %cst_105 = arith.constant dense<0.000000e+00> : vector<2x512xf32>
    %375 = tpu.matmul %374, %301, %cst_105 {dimension_numbers = #tpu.dot_dimension_numbers<[1], [0], [0], [1], [0, 0, 1, 1], [], []>} : vector<2x128xf32>, vector<128x512xf32>, vector<2x512xf32> -> vector<2x512xf32>
    %cst_106 = arith.constant dense<0.000000e+00> : vector<2x512xf32>
    %376 = tpu.matmul %371, %302, %cst_106 {dimension_numbers = #tpu.dot_dimension_numbers<[1], [0], [0], [1], [0, 0, 1, 1], [], []>} : vector<2x128xf32>, vector<128x512xf32>, vector<2x512xf32> -> vector<2x512xf32>
    %377 = arith.addf %375, %376 : vector<2x512xf32>
    %378 = vector.broadcast %303 : vector<1x512xf32> to vector<2x512xf32>
    %379 = arith.addf %377, %378 : vector<2x512xf32>
    %380 = vector.extract_strided_slice %379 {offsets = [0, 0], sizes = [2, 128], strides = [1, 1]} : vector<2x512xf32> to vector<2x128xf32>
    %381 = arith.negf %380 : vector<2x128xf32>
    %382 = math.exp %381 : vector<2x128xf32>
    %cst_107 = arith.constant 1.000000e+00 : f32
    %383 = vector.broadcast %cst_107 : f32 to vector<2x128xf32>
    %384 = arith.addf %383, %382 : vector<2x128xf32>
    %385 = arith.divf %383, %384 : vector<2x128xf32>
    %386 = vector.extract_strided_slice %379 {offsets = [0, 128], sizes = [2, 128], strides = [1, 1]} : vector<2x512xf32> to vector<2x128xf32>
    %387 = arith.negf %386 : vector<2x128xf32>
    %388 = math.exp %387 : vector<2x128xf32>
    %cst_108 = arith.constant 1.000000e+00 : f32
    %389 = vector.broadcast %cst_108 : f32 to vector<2x128xf32>
    %390 = arith.addf %389, %388 : vector<2x128xf32>
    %391 = arith.divf %389, %390 : vector<2x128xf32>
    %392 = vector.extract_strided_slice %379 {offsets = [0, 256], sizes = [2, 128], strides = [1, 1]} : vector<2x512xf32> to vector<2x128xf32>
    %393 = math.tanh %392 : vector<2x128xf32>
    %394 = vector.extract_strided_slice %379 {offsets = [0, 384], sizes = [2, 128], strides = [1, 1]} : vector<2x512xf32> to vector<2x128xf32>
    %395 = arith.negf %394 : vector<2x128xf32>
    %396 = math.exp %395 : vector<2x128xf32>
    %cst_109 = arith.constant 1.000000e+00 : f32
    %397 = vector.broadcast %cst_109 : f32 to vector<2x128xf32>
    %398 = arith.addf %397, %396 : vector<2x128xf32>
    %399 = arith.divf %397, %398 : vector<2x128xf32>
    %400 = arith.mulf %391, %369 : vector<2x128xf32>
    %401 = arith.mulf %385, %393 : vector<2x128xf32>
    %402 = arith.addf %400, %401 : vector<2x128xf32>
    %403 = math.tanh %402 : vector<2x128xf32>
    %404 = arith.mulf %399, %403 : vector<2x128xf32>
    %c3_i32_110 = arith.constant 3 : i32
    %405 = arith.index_cast %c3_i32_110 : i32 to index
    %c0_111 = arith.constant 0 : index
    %c0_112 = arith.constant 0 : index
    %406 = vector.load %arg10[%405, %c0_111, %c0_112] : memref<8x2x128xf32, #tpu.memory_space<vmem>>, vector<1x2x128xf32>
    %407 = vector.shape_cast %406 : vector<1x2x128xf32> to vector<2x128xf32>
    %cst_113 = arith.constant dense<0.000000e+00> : vector<2x512xf32>
    %408 = tpu.matmul %407, %301, %cst_113 {dimension_numbers = #tpu.dot_dimension_numbers<[1], [0], [0], [1], [0, 0, 1, 1], [], []>} : vector<2x128xf32>, vector<128x512xf32>, vector<2x512xf32> -> vector<2x512xf32>
    %cst_114 = arith.constant dense<0.000000e+00> : vector<2x512xf32>
    %409 = tpu.matmul %404, %302, %cst_114 {dimension_numbers = #tpu.dot_dimension_numbers<[1], [0], [0], [1], [0, 0, 1, 1], [], []>} : vector<2x128xf32>, vector<128x512xf32>, vector<2x512xf32> -> vector<2x512xf32>
    %410 = arith.addf %408, %409 : vector<2x512xf32>
    %411 = vector.broadcast %303 : vector<1x512xf32> to vector<2x512xf32>
    %412 = arith.addf %410, %411 : vector<2x512xf32>
    %413 = vector.extract_strided_slice %412 {offsets = [0, 0], sizes = [2, 128], strides = [1, 1]} : vector<2x512xf32> to vector<2x128xf32>
    %414 = arith.negf %413 : vector<2x128xf32>
    %415 = math.exp %414 : vector<2x128xf32>
    %cst_115 = arith.constant 1.000000e+00 : f32
    %416 = vector.broadcast %cst_115 : f32 to vector<2x128xf32>
    %417 = arith.addf %416, %415 : vector<2x128xf32>
    %418 = arith.divf %416, %417 : vector<2x128xf32>
    %419 = vector.extract_strided_slice %412 {offsets = [0, 128], sizes = [2, 128], strides = [1, 1]} : vector<2x512xf32> to vector<2x128xf32>
    %420 = arith.negf %419 : vector<2x128xf32>
    %421 = math.exp %420 : vector<2x128xf32>
    %cst_116 = arith.constant 1.000000e+00 : f32
    %422 = vector.broadcast %cst_116 : f32 to vector<2x128xf32>
    %423 = arith.addf %422, %421 : vector<2x128xf32>
    %424 = arith.divf %422, %423 : vector<2x128xf32>
    %425 = vector.extract_strided_slice %412 {offsets = [0, 256], sizes = [2, 128], strides = [1, 1]} : vector<2x512xf32> to vector<2x128xf32>
    %426 = math.tanh %425 : vector<2x128xf32>
    %427 = vector.extract_strided_slice %412 {offsets = [0, 384], sizes = [2, 128], strides = [1, 1]} : vector<2x512xf32> to vector<2x128xf32>
    %428 = arith.negf %427 : vector<2x128xf32>
    %429 = math.exp %428 : vector<2x128xf32>
    %cst_117 = arith.constant 1.000000e+00 : f32
    %430 = vector.broadcast %cst_117 : f32 to vector<2x128xf32>
    %431 = arith.addf %430, %429 : vector<2x128xf32>
    %432 = arith.divf %430, %431 : vector<2x128xf32>
    %433 = arith.mulf %424, %402 : vector<2x128xf32>
    %434 = arith.mulf %418, %426 : vector<2x128xf32>
    %435 = arith.addf %433, %434 : vector<2x128xf32>
    %436 = math.tanh %435 : vector<2x128xf32>
    %437 = arith.mulf %432, %436 : vector<2x128xf32>
    %c4_i32_118 = arith.constant 4 : i32
    %438 = arith.index_cast %c4_i32_118 : i32 to index
    %c0_119 = arith.constant 0 : index
    %c0_120 = arith.constant 0 : index
    %439 = vector.load %arg10[%438, %c0_119, %c0_120] : memref<8x2x128xf32, #tpu.memory_space<vmem>>, vector<1x2x128xf32>
    %440 = vector.shape_cast %439 : vector<1x2x128xf32> to vector<2x128xf32>
    %cst_121 = arith.constant dense<0.000000e+00> : vector<2x512xf32>
    %441 = tpu.matmul %440, %301, %cst_121 {dimension_numbers = #tpu.dot_dimension_numbers<[1], [0], [0], [1], [0, 0, 1, 1], [], []>} : vector<2x128xf32>, vector<128x512xf32>, vector<2x512xf32> -> vector<2x512xf32>
    %cst_122 = arith.constant dense<0.000000e+00> : vector<2x512xf32>
    %442 = tpu.matmul %437, %302, %cst_122 {dimension_numbers = #tpu.dot_dimension_numbers<[1], [0], [0], [1], [0, 0, 1, 1], [], []>} : vector<2x128xf32>, vector<128x512xf32>, vector<2x512xf32> -> vector<2x512xf32>
    %443 = arith.addf %441, %442 : vector<2x512xf32>
    %444 = vector.broadcast %303 : vector<1x512xf32> to vector<2x512xf32>
    %445 = arith.addf %443, %444 : vector<2x512xf32>
    %446 = vector.extract_strided_slice %445 {offsets = [0, 0], sizes = [2, 128], strides = [1, 1]} : vector<2x512xf32> to vector<2x128xf32>
    %447 = arith.negf %446 : vector<2x128xf32>
    %448 = math.exp %447 : vector<2x128xf32>
    %cst_123 = arith.constant 1.000000e+00 : f32
    %449 = vector.broadcast %cst_123 : f32 to vector<2x128xf32>
    %450 = arith.addf %449, %448 : vector<2x128xf32>
    %451 = arith.divf %449, %450 : vector<2x128xf32>
    %452 = vector.extract_strided_slice %445 {offsets = [0, 128], sizes = [2, 128], strides = [1, 1]} : vector<2x512xf32> to vector<2x128xf32>
    %453 = arith.negf %452 : vector<2x128xf32>
    %454 = math.exp %453 : vector<2x128xf32>
    %cst_124 = arith.constant 1.000000e+00 : f32
    %455 = vector.broadcast %cst_124 : f32 to vector<2x128xf32>
    %456 = arith.addf %455, %454 : vector<2x128xf32>
    %457 = arith.divf %455, %456 : vector<2x128xf32>
    %458 = vector.extract_strided_slice %445 {offsets = [0, 256], sizes = [2, 128], strides = [1, 1]} : vector<2x512xf32> to vector<2x128xf32>
    %459 = math.tanh %458 : vector<2x128xf32>
    %460 = vector.extract_strided_slice %445 {offsets = [0, 384], sizes = [2, 128], strides = [1, 1]} : vector<2x512xf32> to vector<2x128xf32>
    %461 = arith.negf %460 : vector<2x128xf32>
    %462 = math.exp %461 : vector<2x128xf32>
    %cst_125 = arith.constant 1.000000e+00 : f32
    %463 = vector.broadcast %cst_125 : f32 to vector<2x128xf32>
    %464 = arith.addf %463, %462 : vector<2x128xf32>
    %465 = arith.divf %463, %464 : vector<2x128xf32>
    %466 = arith.mulf %457, %435 : vector<2x128xf32>
    %467 = arith.mulf %451, %459 : vector<2x128xf32>
    %468 = arith.addf %466, %467 : vector<2x128xf32>
    %469 = math.tanh %468 : vector<2x128xf32>
    %470 = arith.mulf %465, %469 : vector<2x128xf32>
    %c5_i32_126 = arith.constant 5 : i32
    %471 = arith.index_cast %c5_i32_126 : i32 to index
    %c0_127 = arith.constant 0 : index
    %c0_128 = arith.constant 0 : index
    %472 = vector.load %arg10[%471, %c0_127, %c0_128] : memref<8x2x128xf32, #tpu.memory_space<vmem>>, vector<1x2x128xf32>
    %473 = vector.shape_cast %472 : vector<1x2x128xf32> to vector<2x128xf32>
    %cst_129 = arith.constant dense<0.000000e+00> : vector<2x512xf32>
    %474 = tpu.matmul %473, %301, %cst_129 {dimension_numbers = #tpu.dot_dimension_numbers<[1], [0], [0], [1], [0, 0, 1, 1], [], []>} : vector<2x128xf32>, vector<128x512xf32>, vector<2x512xf32> -> vector<2x512xf32>
    %cst_130 = arith.constant dense<0.000000e+00> : vector<2x512xf32>
    %475 = tpu.matmul %470, %302, %cst_130 {dimension_numbers = #tpu.dot_dimension_numbers<[1], [0], [0], [1], [0, 0, 1, 1], [], []>} : vector<2x128xf32>, vector<128x512xf32>, vector<2x512xf32> -> vector<2x512xf32>
    %476 = arith.addf %474, %475 : vector<2x512xf32>
    %477 = vector.broadcast %303 : vector<1x512xf32> to vector<2x512xf32>
    %478 = arith.addf %476, %477 : vector<2x512xf32>
    %479 = vector.extract_strided_slice %478 {offsets = [0, 0], sizes = [2, 128], strides = [1, 1]} : vector<2x512xf32> to vector<2x128xf32>
    %480 = arith.negf %479 : vector<2x128xf32>
    %481 = math.exp %480 : vector<2x128xf32>
    %cst_131 = arith.constant 1.000000e+00 : f32
    %482 = vector.broadcast %cst_131 : f32 to vector<2x128xf32>
    %483 = arith.addf %482, %481 : vector<2x128xf32>
    %484 = arith.divf %482, %483 : vector<2x128xf32>
    %485 = vector.extract_strided_slice %478 {offsets = [0, 128], sizes = [2, 128], strides = [1, 1]} : vector<2x512xf32> to vector<2x128xf32>
    %486 = arith.negf %485 : vector<2x128xf32>
    %487 = math.exp %486 : vector<2x128xf32>
    %cst_132 = arith.constant 1.000000e+00 : f32
    %488 = vector.broadcast %cst_132 : f32 to vector<2x128xf32>
    %489 = arith.addf %488, %487 : vector<2x128xf32>
    %490 = arith.divf %488, %489 : vector<2x128xf32>
    %491 = vector.extract_strided_slice %478 {offsets = [0, 256], sizes = [2, 128], strides = [1, 1]} : vector<2x512xf32> to vector<2x128xf32>
    %492 = math.tanh %491 : vector<2x128xf32>
    %493 = vector.extract_strided_slice %478 {offsets = [0, 384], sizes = [2, 128], strides = [1, 1]} : vector<2x512xf32> to vector<2x128xf32>
    %494 = arith.negf %493 : vector<2x128xf32>
    %495 = math.exp %494 : vector<2x128xf32>
    %cst_133 = arith.constant 1.000000e+00 : f32
    %496 = vector.broadcast %cst_133 : f32 to vector<2x128xf32>
    %497 = arith.addf %496, %495 : vector<2x128xf32>
    %498 = arith.divf %496, %497 : vector<2x128xf32>
    %499 = arith.mulf %490, %468 : vector<2x128xf32>
    %500 = arith.mulf %484, %492 : vector<2x128xf32>
    %501 = arith.addf %499, %500 : vector<2x128xf32>
    %502 = math.tanh %501 : vector<2x128xf32>
    %503 = arith.mulf %498, %502 : vector<2x128xf32>
    %c6_i32_134 = arith.constant 6 : i32
    %504 = arith.index_cast %c6_i32_134 : i32 to index
    %c0_135 = arith.constant 0 : index
    %c0_136 = arith.constant 0 : index
    %505 = vector.load %arg10[%504, %c0_135, %c0_136] : memref<8x2x128xf32, #tpu.memory_space<vmem>>, vector<1x2x128xf32>
    %506 = vector.shape_cast %505 : vector<1x2x128xf32> to vector<2x128xf32>
    %cst_137 = arith.constant dense<0.000000e+00> : vector<2x512xf32>
    %507 = tpu.matmul %506, %301, %cst_137 {dimension_numbers = #tpu.dot_dimension_numbers<[1], [0], [0], [1], [0, 0, 1, 1], [], []>} : vector<2x128xf32>, vector<128x512xf32>, vector<2x512xf32> -> vector<2x512xf32>
    %cst_138 = arith.constant dense<0.000000e+00> : vector<2x512xf32>
    %508 = tpu.matmul %503, %302, %cst_138 {dimension_numbers = #tpu.dot_dimension_numbers<[1], [0], [0], [1], [0, 0, 1, 1], [], []>} : vector<2x128xf32>, vector<128x512xf32>, vector<2x512xf32> -> vector<2x512xf32>
    %509 = arith.addf %507, %508 : vector<2x512xf32>
    %510 = vector.broadcast %303 : vector<1x512xf32> to vector<2x512xf32>
    %511 = arith.addf %509, %510 : vector<2x512xf32>
    %512 = vector.extract_strided_slice %511 {offsets = [0, 0], sizes = [2, 128], strides = [1, 1]} : vector<2x512xf32> to vector<2x128xf32>
    %513 = arith.negf %512 : vector<2x128xf32>
    %514 = math.exp %513 : vector<2x128xf32>
    %cst_139 = arith.constant 1.000000e+00 : f32
    %515 = vector.broadcast %cst_139 : f32 to vector<2x128xf32>
    %516 = arith.addf %515, %514 : vector<2x128xf32>
    %517 = arith.divf %515, %516 : vector<2x128xf32>
    %518 = vector.extract_strided_slice %511 {offsets = [0, 128], sizes = [2, 128], strides = [1, 1]} : vector<2x512xf32> to vector<2x128xf32>
    %519 = arith.negf %518 : vector<2x128xf32>
    %520 = math.exp %519 : vector<2x128xf32>
    %cst_140 = arith.constant 1.000000e+00 : f32
    %521 = vector.broadcast %cst_140 : f32 to vector<2x128xf32>
    %522 = arith.addf %521, %520 : vector<2x128xf32>
    %523 = arith.divf %521, %522 : vector<2x128xf32>
    %524 = vector.extract_strided_slice %511 {offsets = [0, 256], sizes = [2, 128], strides = [1, 1]} : vector<2x512xf32> to vector<2x128xf32>
    %525 = math.tanh %524 : vector<2x128xf32>
    %526 = vector.extract_strided_slice %511 {offsets = [0, 384], sizes = [2, 128], strides = [1, 1]} : vector<2x512xf32> to vector<2x128xf32>
    %527 = arith.negf %526 : vector<2x128xf32>
    %528 = math.exp %527 : vector<2x128xf32>
    %cst_141 = arith.constant 1.000000e+00 : f32
    %529 = vector.broadcast %cst_141 : f32 to vector<2x128xf32>
    %530 = arith.addf %529, %528 : vector<2x128xf32>
    %531 = arith.divf %529, %530 : vector<2x128xf32>
    %532 = arith.mulf %523, %501 : vector<2x128xf32>
    %533 = arith.mulf %517, %525 : vector<2x128xf32>
    %534 = arith.addf %532, %533 : vector<2x128xf32>
    %535 = math.tanh %534 : vector<2x128xf32>
    %536 = arith.mulf %531, %535 : vector<2x128xf32>
    %c7_i32_142 = arith.constant 7 : i32
    %537 = arith.index_cast %c7_i32_142 : i32 to index
    %c0_143 = arith.constant 0 : index
    %c0_144 = arith.constant 0 : index
    %538 = vector.load %arg10[%537, %c0_143, %c0_144] : memref<8x2x128xf32, #tpu.memory_space<vmem>>, vector<1x2x128xf32>
    %539 = vector.shape_cast %538 : vector<1x2x128xf32> to vector<2x128xf32>
    %cst_145 = arith.constant dense<0.000000e+00> : vector<2x512xf32>
    %540 = tpu.matmul %539, %301, %cst_145 {dimension_numbers = #tpu.dot_dimension_numbers<[1], [0], [0], [1], [0, 0, 1, 1], [], []>} : vector<2x128xf32>, vector<128x512xf32>, vector<2x512xf32> -> vector<2x512xf32>
    %cst_146 = arith.constant dense<0.000000e+00> : vector<2x512xf32>
    %541 = tpu.matmul %536, %302, %cst_146 {dimension_numbers = #tpu.dot_dimension_numbers<[1], [0], [0], [1], [0, 0, 1, 1], [], []>} : vector<2x128xf32>, vector<128x512xf32>, vector<2x512xf32> -> vector<2x512xf32>
    %542 = arith.addf %540, %541 : vector<2x512xf32>
    %543 = vector.broadcast %303 : vector<1x512xf32> to vector<2x512xf32>
    %544 = arith.addf %542, %543 : vector<2x512xf32>
    %545 = vector.extract_strided_slice %544 {offsets = [0, 0], sizes = [2, 128], strides = [1, 1]} : vector<2x512xf32> to vector<2x128xf32>
    %546 = arith.negf %545 : vector<2x128xf32>
    %547 = math.exp %546 : vector<2x128xf32>
    %cst_147 = arith.constant 1.000000e+00 : f32
    %548 = vector.broadcast %cst_147 : f32 to vector<2x128xf32>
    %549 = arith.addf %548, %547 : vector<2x128xf32>
    %550 = arith.divf %548, %549 : vector<2x128xf32>
    %551 = vector.extract_strided_slice %544 {offsets = [0, 128], sizes = [2, 128], strides = [1, 1]} : vector<2x512xf32> to vector<2x128xf32>
    %552 = arith.negf %551 : vector<2x128xf32>
    %553 = math.exp %552 : vector<2x128xf32>
    %cst_148 = arith.constant 1.000000e+00 : f32
    %554 = vector.broadcast %cst_148 : f32 to vector<2x128xf32>
    %555 = arith.addf %554, %553 : vector<2x128xf32>
    %556 = arith.divf %554, %555 : vector<2x128xf32>
    %557 = vector.extract_strided_slice %544 {offsets = [0, 256], sizes = [2, 128], strides = [1, 1]} : vector<2x512xf32> to vector<2x128xf32>
    %558 = math.tanh %557 : vector<2x128xf32>
    %559 = vector.extract_strided_slice %544 {offsets = [0, 384], sizes = [2, 128], strides = [1, 1]} : vector<2x512xf32> to vector<2x128xf32>
    %560 = arith.negf %559 : vector<2x128xf32>
    %561 = math.exp %560 : vector<2x128xf32>
    %cst_149 = arith.constant 1.000000e+00 : f32
    %562 = vector.broadcast %cst_149 : f32 to vector<2x128xf32>
    %563 = arith.addf %562, %561 : vector<2x128xf32>
    %564 = arith.divf %562, %563 : vector<2x128xf32>
    %565 = arith.mulf %556, %534 : vector<2x128xf32>
    %566 = arith.mulf %550, %558 : vector<2x128xf32>
    %567 = arith.addf %565, %566 : vector<2x128xf32>
    %568 = math.tanh %567 : vector<2x128xf32>
    %569 = arith.mulf %564, %568 : vector<2x128xf32>
    %c8_i32_150 = arith.constant 8 : i32
    %c0_151 = arith.constant 0 : index
    %c0_152 = arith.constant 0 : index
    %570 = vector.load %arg7[%c0_151, %c0_152] : memref<128x1xf32, #tpu.memory_space<vmem>>, vector<128x1xf32>
    %cst_153 = arith.constant dense<0.000000e+00> : vector<2x1xf32>
    %571 = tpu.matmul %569, %570, %cst_153 {dimension_numbers = #tpu.dot_dimension_numbers<[1], [0], [0], [1], [0, 0, 1, 1], [], []>} : vector<2x128xf32>, vector<128x1xf32>, vector<2x1xf32> -> vector<2x1xf32>
    %c0_154 = arith.constant 0 : index
    %c0_155 = arith.constant 0 : index
    %572 = vector.load %arg8[%c0_154, %c0_155] : memref<1x1xf32, #tpu.memory_space<vmem>>, vector<1x1xf32>
    %573 = vector.broadcast %572 : vector<1x1xf32> to vector<2x1xf32>
    %574 = arith.addf %571, %573 : vector<2x1xf32>
    %c0_156 = arith.constant 0 : index
    %c0_157 = arith.constant 0 : index
    %575 = vector.load %arg9[%c0_156, %c0_157] : memref<2x1xf32, #tpu.memory_space<vmem>>, vector<2x1xf32>
    tpu.vector_store %arg9[%c0_156, %c0_157], %574 {strides = array<i32>} : memref<2x1xf32, #tpu.memory_space<vmem>>, vector<2x1xf32>,
    return
  }
}

</mosaic_0001>

<bundles_post_ra>
// kernel: tpu_custom_call.1
= control target key start
LH: loop header
LB: loop body
LE: loop exit
PB: predicated region body
PF: predicated region fallthrough
CT: control target
= control target key end

     0   :  { %s9089_s0 = inlined_call_operand.vmem [shape: f32[8,2,4], index: 0, kind: input, shape index: {}]   ;;  %s9090_s1 = inlined_call_operand.vmem [shape: f32[4,512], index: 1, kind: input, shape index: {}]   ;;  %s9091_s2 = inlined_call_operand.hbm [shape: f32[128,512], index: 2, kind: input, shape index: {}]   ;;  %s9092_s3 = inlined_call_operand.vmem [shape: f32[1,512], index: 3, kind: input, shape index: {}]   ;;  %s9093_s4 = inlined_call_operand.hbm [shape: f32[128,512], index: 4, kind: input, shape index: {}]   ;;  %s9094_s5 = inlined_call_operand.hbm [shape: f32[128,512], index: 5, kind: input, shape index: {}]   ;;  %s9095_s6 = inlined_call_operand.vmem [shape: f32[1,512], index: 6, kind: input, shape index: {}]   ;;  %s9096_s7 = inlined_call_operand.vmem [shape: f32[128,1], index: 7, kind: input, shape index: {}]   ;;  %s9097_s8 = inlined_call_operand.<no memory space> [shape: f32[1,1], index: 8, kind: input, shape index: {}]   ;;  %s9098_s9 = inlined_call_operand.vmem [shape: f32[2,1], index: 9, kind: output, shape index: {}]  }
   0x1   :  { %v14_v0 = vstv %s9097_s8 }
   0x2   :  { %15 = vst [vmem:[#allocation3] sm:$0x1] %v14_v0 }
   0x3   :  { %16 = vsyncpa [#allocation5], 0 }
   0x4   :  { %17 = vsyncpa [#allocation7], 0  ;;  %s7600_s11 = smov [#allocation6]   ;;  %s7601_s13 = smov [#allocation4]  }
   0x5   :  { %s41_s12 = sshll.u32 %s7600_s11, 4  ;;  %s27_s14 = sshll.u32 %s7601_s13, 4  ;;  %s42_s12 = int_to_ptr.vmem [resolvable:$true] %s41_s12  ;;  %s7661_s14 = int_to_ptr.vmem [resolvable:$true] %s27_s14 }
   0x6   :  { %s7530_s17 = scalar_lea.hbm %s9093_s4, 8192 }
   0x7   :  { %p7531_p0 = scmp.ne.s32.totalorder %s9093_s4, %s7530_s17  ;;  %p7534_p1 = scmp.lt.u32.totalorder %s7530_s17, %s9093_s4 }
   0x9   :  { %p7536_p2 = pnand %p7534_p1, %p7531_p0 }
   0xb   :  { %7539 = shalt.err (!%p7536_p2)
}
   0xc   :  { %s7540_s21 = scalar_lea.vmem %s42_s12, 8192  ;;  %p7545_p4 = scmp.lt.s32.totalorder %s42_s12, %s42_s12 }
   0xd   :  { %p7541_p3 = scmp.ne.s32.totalorder %s42_s12, %s7540_s21  ;;  %p7546_p5 = scmp.lt.s32.totalorder %s7540_s21, %s7540_s21 }
   0xf   :  { %p7547_p6 = por %p7546_p5, %p7545_p4 }
  0x11   :  { %p7548_p7 = pnand %p7547_p6, %p7541_p3 }
  0x13   :  { %7551 = shalt.err (!%p7548_p7)
}
  0x14   :  { %s7602_s22 = smov 512   ;;  %s7603_s23 = smov 32  }
  0x15   :  { %47 = dma.hbm_to_vmem [thread:$0]  %s9093_s4, 8192, %s42_s12, [#allocation7], %s7602_s22, %s7602_s22, %s7603_s23  }
  0x16   :  { %s7552_s28 = scalar_lea.hbm %s9091_s2, 8192 }
  0x17   :  { %p7553_p8 = scmp.ne.s32.totalorder %s9091_s2, %s7552_s28  ;;  %p7556_p9 = scmp.lt.u32.totalorder %s7552_s28, %s9091_s2 }
  0x19   :  { %p7558_p10 = pnand %p7556_p9, %p7553_p8 }
  0x1b   :  { %7561 = shalt.err (!%p7558_p10)
}
  0x1c   :  { %s7562_s13 = scalar_lea.vmem %s7661_s14, 8192  ;;  %p7567_p12 = scmp.lt.s32.totalorder %s7661_s14, %s7661_s14 }
  0x1d   :  { %p7563_p11 = scmp.ne.s32.totalorder %s7661_s14, %s7562_s13  ;;  %p7568_p13 = scmp.lt.s32.totalorder %s7562_s13, %s7562_s13 }
  0x1f   :  { %p7569_p0 = por %p7568_p13, %p7567_p12 }
  0x21   :  { %p7570_p1 = pnand %p7569_p0, %p7563_p11 }
  0x23   :  { %7573 = shalt.err (!%p7570_p1)
}
  0x24   :  { %33 = dma.hbm_to_vmem [thread:$0]  %s9091_s2, 8192, %s7661_s14, [#allocation5], %s7602_s22, %s7602_s22, %s7603_s23  }
  0x25   :  { %s7604_s15 = smov [#allocation8]   ;;  %s7574_s19 = scalar_lea.hbm %s9094_s5, 8192 }
  0x26   :  { %s53_s16 = sshll.u32 %s7604_s15, 4  ;;  %p7575_p2 = scmp.ne.s32.totalorder %s9094_s5, %s7574_s19  ;;  %s54_s16 = int_to_ptr.vmem [resolvable:$true] %s53_s16 }
  0x27   :  { %p7578_p3 = scmp.lt.u32.totalorder %s7574_s19, %s9094_s5 }
  0x29   :  { %p7580_p4 = pnand %p7578_p3, %p7575_p2 }
  0x2b   :  { %7583 = shalt.err (!%p7580_p4)
}
  0x2c   :  { %s7584_s25 = scalar_lea.vmem %s54_s16, 8192  ;;  %p7589_p6 = scmp.lt.s32.totalorder %s54_s16, %s54_s16 }
  0x2d   :  { %p7585_p5 = scmp.ne.s32.totalorder %s54_s16, %s7584_s25  ;;  %p7590_p7 = scmp.lt.s32.totalorder %s7584_s25, %s7584_s25 }
  0x2f   :  { %p7591_p8 = por %p7590_p7, %p7589_p6 }
  0x31   :  { %p7592_p9 = pnand %p7591_p8, %p7585_p5 }
  0x33   :  { %7595 = shalt.err (!%p7592_p9)
}
  0x34   :  { %59 = dma.hbm_to_vmem [thread:$0]  %s9094_s5, 8192, %s54_s16, [#allocation7], %s7602_s22, %s7602_s22, %s7603_s23  }
  0x35   :  { %7596 = dma.done.wait [#allocation5], 8192  }
  0x36   :  { %7597 = vsyncadd [#allocation5], 4294959104 }
  0x37   :  { %7598 = dma.done.wait [#allocation7], 16384  }
  0x38   :  { %7599 = vsyncadd [#allocation7], 4294950912  ;;  %v9103_v1 = vmov 0.0   ;;  %v80_v2 = vld [vmem:[#allocation4 + $0x18] sm:$0xff]  ;;  %v79_v4 = vld [vmem:[#allocation4 + $0x10] sm:$0xff]  ;;  %vm293_vm0 = vcmask 1043456  }
  0x39   :  { %278 = vmatprep.mubr.f32.mxu1 %v9103_v1  ;;  %207 = vmatprep.mubr.f32.mxu0 %v9103_v1  ;;  %v84_v3 = vld [vmem:[#allocation4 + $0x38] sm:$0xff]  ;;  %v83_v6 = vld [vmem:[#allocation4 + $0x30] sm:$0xff]  ;;  %v78_v7 = vld [vmem:[#allocation4 + $0x8] sm:$0xff]  ;;  %vm289_vm1 = vcmask 31744   ;;  %vm7607_vm2 = vmmov 0   ;;  %vm5474_vm3 = vcmask 1024  }
  0x3a   :  { %v7715_v5 = vpack.c.bf16 %v84_v3, %v80_v2  ;;  %v82_v8 = vld [vmem:[#allocation4 + $0x28] sm:$0xff]  ;;  %v7717_v9 = vpack.c.bf16 %v83_v6, %v79_v4  ;;  %v88_v11 = vld [vmem:[#allocation4 + $0x58] sm:$0xff]  ;;  %v77_v13 = vld [vmem:[#allocation4] sm:$0xff] }
  0x3b   :  { %v7719_v10 = vpack.c.bf16 %v82_v8, %v78_v7  ;;  %v92_v12 = vld [vmem:[#allocation4 + $0x78] sm:$0xff]  ;;  %v81_v15 = vld [vmem:[#allocation4 + $0x20] sm:$0xff]  ;;  %v87_v16 = vld [vmem:[#allocation4 + $0x50] sm:$0xff] }
  0x3c   :  { %5671 = vmatprep.subr.bf16.mxu1 %v7715_v5  ;;  %v7722_v14 = vpack.c.bf16 %v92_v12, %v88_v11  ;;  %v91_v17 = vld [vmem:[#allocation4 + $0x70] sm:$0xff]  ;;  %v7726_v18 = vpack.c.bf16 %v81_v15, %v77_v13  ;;  %v86_v20 = vld [vmem:[#allocation4 + $0x48] sm:$0xff]  ;;  %v96_v22 = vld [vmem:[#allocation4 + $0x98] sm:$0xff] }
  0x3d   :  { %5673 = vmatpush1.bf16.msra.mxu1 %v7717_v9  ;;  %5639 = vmatprep.subr.bf16.mxu0 %v7719_v10  ;;  %v7728_v19 = vpack.c.bf16 %v91_v17, %v87_v16  ;;  %v90_v21 = vld [vmem:[#allocation4 + $0x68] sm:$0xff]  ;;  %v100_v24 = vld [vmem:[#allocation4 + $0xb8] sm:$0xff]  ;;  %v85_v25 = vld [vmem:[#allocation4 + $0x40] sm:$0xff] }
  0x3e   :  { %5675 = vmatprep.subr.bf16.mxu1 %v7722_v14  ;;  %v7731_v23 = vpack.c.bf16 %v90_v21, %v86_v20  ;;  %v89_v26 = vld [vmem:[#allocation4 + $0x60] sm:$0xff]  ;;  %5641 = vmatpush1.bf16.msra.mxu0 %v7726_v18  ;;  %v7734_v27 = vpack.c.bf16 %v100_v24, %v96_v22  ;;  %v95_v29 = vld [vmem:[#allocation4 + $0x90] sm:$0xff]  ;;  %v94_v31 = vld [vmem:[#allocation4 + $0x88] sm:$0xff] }
  0x3f   :  { %v7736_v28 = vpack.c.bf16 %v89_v26, %v85_v25  ;;  %v99_v30 = vld [vmem:[#allocation4 + $0xb0] sm:$0xff]  ;;  %v98_v32 = vld [vmem:[#allocation4 + $0xa8] sm:$0xff]  ;;  %v104_v33 = vld [vmem:[#allocation4 + $0xd8] sm:$0xff] }
  0x40   :  { %5643 = vmatprep.subr.bf16.mxu0 %v7731_v23  ;;  %v108_v34 = vld [vmem:[#allocation4 + $0xf8] sm:$0xff]  ;;  %v7740_v35 = vpack.c.bf16 %v99_v30, %v95_v29  ;;  %v7742_v36 = vpack.c.bf16 %v98_v32, %v94_v31  ;;  %v93_v37 = vld [vmem:[#allocation4 + $0x80] sm:$0xff]  ;;  %v103_v39 = vld [vmem:[#allocation4 + $0xd0] sm:$0xff] }
  0x41   :  { %5677 = vmatpush1.bf16.msra.mxu1 %v7728_v19  ;;  %v97_v38 = vld [vmem:[#allocation4 + $0xa0] sm:$0xff]  ;;  %v7745_v40 = vpack.c.bf16 %v108_v34, %v104_v33  ;;  %v107_v41 = vld [vmem:[#allocation4 + $0xf0] sm:$0xff]  ;;  %v102_v42 = vld [vmem:[#allocation4 + $0xc8] sm:$0xff] }
  0x42   :  { %5679 = vmatprep.subr.bf16.mxu1 %v7734_v27  ;;  %v106_v43 = vld [vmem:[#allocation4 + $0xe8] sm:$0xff]  ;;  %5645 = vmatpush1.bf16.msra.mxu0 %v7736_v28  ;;  %v7748_v44 = vpack.c.bf16 %v97_v38, %v93_v37  ;;  %v112_v45 = vld [vmem:[#allocation4 + $0x118] sm:$0xff]  ;;  %v101_v48 = vld [vmem:[#allocation4 + $0xc0] sm:$0xff]  ;;  %v7754_v50 = vpack.c.bf16 %v107_v41, %v103_v39 }
  0x43   :  { %v116_v46 = vld [vmem:[#allocation4 + $0x138] sm:$0xff]  ;;  %5647 = vmatprep.subr.bf16.mxu0 %v7742_v36  ;;  %v7751_v47 = vpack.c.bf16 %v106_v43, %v102_v42  ;;  %v105_v49 = vld [vmem:[#allocation4 + $0xe0] sm:$0xff]  ;;  %v110_v51 = vld [vmem:[#allocation4 + $0x108] sm:$0xff] }
  0x44   :  { %v114_v52 = vld [vmem:[#allocation4 + $0x128] sm:$0xff]  ;;  %v7757_v53 = vpack.c.bf16 %v116_v46, %v112_v45  ;;  %v111_v54 = vld [vmem:[#allocation4 + $0x110] sm:$0xff]  ;;  %v7760_v56 = vpack.c.bf16 %v105_v49, %v101_v48  ;;  %v120_v57 = vld [vmem:[#allocation4 + $0x158] sm:$0xff] }
  0x45   :  { %5681 = vmatpush1.bf16.msra.mxu1 %v7740_v35  ;;  %v115_v55 = vld [vmem:[#allocation4 + $0x130] sm:$0xff]  ;;  %v124_v58 = vld [vmem:[#allocation4 + $0x178] sm:$0xff]  ;;  %v7763_v59 = vpack.c.bf16 %v114_v52, %v110_v51  ;;  %v109_v60 = vld [vmem:[#allocation4 + $0x100] sm:$0xff] }
  0x46   :  { %5683 = vmatprep.subr.bf16.mxu1 %v7745_v40  ;;  %5649 = vmatpush1.bf16.msra.mxu0 %v7748_v44  ;;  %v113_v61 = vld [vmem:[#allocation4 + $0x120] sm:$0xff]  ;;  %v7766_v62 = vpack.c.bf16 %v115_v55, %v111_v54  ;;  %v118_v63 = vld [vmem:[#allocation4 + $0x148] sm:$0xff]  ;;  %v7769_v2 = vpack.c.bf16 %v124_v58, %v120_v57  ;;  %v119_v3 = vld [vmem:[#allocation4 + $0x150] sm:$0xff]  ;;  %v445_v57 = vlaneseq }
  0x47   :  { %5651 = vmatprep.subr.bf16.mxu0 %v7751_v47  ;;  %v122_v0 = vld [vmem:[#allocation4 + $0x168] sm:$0xff]  ;;  %v123_v4 = vld [vmem:[#allocation4 + $0x170] sm:$0xff]  ;;  %v7772_v6 = vpack.c.bf16 %v113_v61, %v109_v60  ;;  %v128_v7 = vld [vmem:[#allocation4 + $0x198] sm:$0xff] }
  0x48   :  { %v132_v8 = vld [vmem:[#allocation4 + $0x1b8] sm:$0xff]  ;;  %v7775_v11 = vpack.c.bf16 %v122_v0, %v118_v63  ;;  %v117_v12 = vld [vmem:[#allocation4 + $0x140] sm:$0xff]  ;;  %v7778_v15 = vpack.c.bf16 %v123_v4, %v119_v3  ;;  %v126_v16 = vld [vmem:[#allocation4 + $0x188] sm:$0xff]  ;;  %v7883_v58 = vshrl.u32 %v445_v57, 7 }
  0x49   :  { %5685 = vmatpush1.bf16.msra.mxu1 %v7754_v50  ;;  %v121_v13 = vld [vmem:[#allocation4 + $0x160] sm:$0xff]  ;;  %v130_v17 = vld [vmem:[#allocation4 + $0x1a8] sm:$0xff]  ;;  %v7781_v20 = vpack.c.bf16 %v132_v8, %v128_v7  ;;  %v127_v21 = vld [vmem:[#allocation4 + $0x190] sm:$0xff] }
  0x4a   :  { %5687 = vmatprep.subr.bf16.mxu1 %v7757_v53  ;;  %5653 = vmatpush1.bf16.msra.mxu0 %v7760_v56  ;;  %v131_v22 = vld [vmem:[#allocation4 + $0x1b0] sm:$0xff]  ;;  %v7784_v24 = vpack.c.bf16 %v121_v13, %v117_v12  ;;  %v136_v25 = vld [vmem:[#allocation4 + $0x1d8] sm:$0xff]  ;;  %v7787_v29 = vpack.c.bf16 %v130_v17, %v126_v16  ;;  %v125_v30 = vld [vmem:[#allocation4 + $0x180] sm:$0xff]  ;;  %v9102_v60 = vsub.s32 0, %v7883_v58  ;;  %v9101_v63 = vsub.s32 1, %v7883_v58 }
  0x4b   :  { %5655 = vmatprep.subr.bf16.mxu0 %v7763_v59  ;;  %v140_v26 = vld [vmem:[#allocation4 + $0x1f8] sm:$0xff]  ;;  %v129_v31 = vld [vmem:[#allocation4 + $0x1a0] sm:$0xff]  ;;  %v7790_v32 = vpack.c.bf16 %v131_v22, %v127_v21  ;;  %v134_v33 = vld [vmem:[#allocation4 + $0x1c8] sm:$0xff]  ;;  %v9100_v17 = vsub.s32 3, %v7883_v58 }
  0x4c   :  { %v138_v34 = vld [vmem:[#allocation4 + $0x1e8] sm:$0xff]  ;;  %v7793_v37 = vpack.c.bf16 %v140_v26, %v136_v25  ;;  %v135_v38 = vld [vmem:[#allocation4 + $0x1d0] sm:$0xff]  ;;  %v7796_v41 = vpack.c.bf16 %v129_v31, %v125_v30  ;;  %v133_v45 = vld [vmem:[#allocation4 + $0x1c0] sm:$0xff] }
  0x4d   :  { %5689 = vmatpush1.bf16.msra.mxu1 %v7766_v62  ;;  %v139_v39 = vld [vmem:[#allocation4 + $0x1f0] sm:$0xff]  ;;  %v7804_v43 = vpack.c.bf16 %v138_v34, %v134_v33  ;;  %v137_v46 = vld [vmem:[#allocation4 + $0x1e0] sm:$0xff]  ;;  %v9099_v34 = vsub.s32 2, %v7883_v58 }
  0x4e   :  { %5691 = vmatprep.subr.bf16.mxu1 %v7769_v2  ;;  %5657 = vmatpush1.bf16.msra.mxu0 %v7772_v6  ;;  %v7801_v42 = vld [vmem:[%s9090_s1] sm:$0xff]  ;;  %v7807_v48 = vpack.c.bf16 %v139_v39, %v135_v38  ;;  %v7815_v51 = vpack.c.bf16 %v137_v46, %v133_v45  ;;  %v7820_v52 = vld [vmem:[%s9090_s1 + $0x8] sm:$0xff] }
  0x4f   :  { %5659 = vmatprep.subr.bf16.mxu0 %v7775_v11  ;;  %v7812_v49 = vcombine.high %v7801_v42, %v7801_v42  ;;  %v7828_v54 = vcombine.high %v7820_v52, %v7820_v52  ;;  %v142_v55 = vld [vmem:[%s9089_s0] sm:$0x3] }
  0x50   :  { %v141_v61 = vld [vmem:[%s9092_s3] sm:$0xf] }
  0x51   :  { %5693 = vmatpush1.bf16.msra.mxu1 %v7778_v15  ;;  %v7892_v3 = vrot.slane %v141_v61, %v9102_v60  ;;  %v7896_v8 = vrot.slane %v141_v61, %v9101_v63  ;;  %v7903_v33 = vrot.slane %v141_v61, %v9100_v17  ;;  %v7909_v39 = vrot.slane %v141_v61, %v9099_v34  ;;  %v2750_v34 = vld [vmem:[#allocation6 + $0xb8] sm:$0xff]  ;;  %v2752_v17 = vld [vmem:[#allocation6 + $0xc8] sm:$0xff] }
  0x52   :  { %5695 = vmatprep.subr.bf16.mxu1 %v7781_v20  ;;  %5661 = vmatpush1.bf16.msra.mxu0 %v7784_v24  ;;  %v2756_v63 = vld [vmem:[#allocation6 + $0xe8] sm:$0xff]  ;;  %v2754_v60 = vld [vmem:[#allocation6 + $0xd8] sm:$0xff] }
  0x53   :  { %5663 = vmatprep.subr.bf16.mxu0 %v7787_v29 }
  0x55   :  { %5697 = vmatpush1.bf16.msra.mxu1 %v7790_v32 }
  0x56   :  { %5699 = vmatprep.subr.bf16.mxu1 %v7793_v37  ;;  %5665 = vmatpush1.bf16.msra.mxu0 %v7796_v41 }
  0x57   :  { %5667 = vmatprep.subr.bf16.mxu0 %v7804_v43 }
  0x59   :  { %5701 = vmatpush1.bf16.msra.mxu1 %v7807_v48 }
  0x5a   :  { %5482 = vmatprep.subr.msk.mxu1 %vm293_vm0, %v7812_v49  ;;  %5669 = vmatpush1.bf16.msra.mxu0 %v7815_v51 }
  0x5b   :  { %5703 = vmatprep.subr.bf16.mxu0 %v7719_v10 }
  0x5c   :  { %279 = vmatmul.mubr.f32.vlgmr.msra.gmra.mrb[0].mxu1 %v9103_v1 }
  0x5d   :  { %5483 = vmatpush1.msk.msra.mxu1 %vm293_vm0, %v7801_v42  ;;  %366 = vmatprep.mubr.f32.mxu1 %v9103_v1 }
  0x5e   :  { %208 = vmatmul.mubr.f32.vlgmr.msra.gmra.mrb[0].mxu0 %v9103_v1  ;;  %5485 = vmatprep.subr.msk.mxu1 %vm293_vm0, %v7828_v54 }
  0x5f   :  { %5705 = vmatpush1.bf16.msra.mxu0 %v7726_v18  ;;  %560 = vmatprep.mubr.f32.mxu0 %v9103_v1 }
  0x60   :  { %5484 = vmatmul.mubr.msk.f32.vlgmr.msra.gmra.mrb[2].mxu1 %vm289_vm1, %v142_v55  ;;  %5707 = vmatprep.subr.bf16.mxu0 %v7731_v23 }
  0x61   :  { %5486 = vmatpush1.msk.msra.mxu1 %vm293_vm0, %v7820_v52  ;;  %437 = vmatprep.mubr.f32.mxu1 %v9103_v1 }
  0x62   :  { %5735 = vmatprep.subr.bf16.mxu1 %v7715_v5 }
  0x63   :  { %5709 = vmatpush1.bf16.msra.mxu0 %v7736_v28 }
  0x64   :  { %5487 = vmatmul.mubr.msk.f32.vlgmr.msra.gmra.mrb[0].mxu1 %vm289_vm1, %v142_v55  ;;  %5711 = vmatprep.subr.bf16.mxu0 %v7742_v36 }
  0x65   :  { %5737 = vmatpush1.bf16.msra.mxu1 %v7717_v9  ;;  %631 = vmatprep.mubr.f32.mxu1 %v9103_v1 }
  0x66   :  { %5739 = vmatprep.subr.bf16.mxu1 %v7722_v14 }
  0x67   :  { %5713 = vmatpush1.bf16.msra.mxu0 %v7748_v44 }
  0x68   :  { %5715 = vmatprep.subr.bf16.mxu0 %v7751_v47 }
  0x69   :  { %5741 = vmatpush1.bf16.msra.mxu1 %v7728_v19 }
  0x6a   :  { %5743 = vmatprep.subr.bf16.mxu1 %v7734_v27 }
  0x6b   :  { %5717 = vmatpush1.bf16.msra.mxu0 %v7760_v56 }
  0x6c   :  { %5719 = vmatprep.subr.bf16.mxu0 %v7763_v59 }
  0x6d   :  { %5745 = vmatpush1.bf16.msra.mxu1 %v7740_v35 }
  0x6e   :  { %5747 = vmatprep.subr.bf16.mxu1 %v7745_v40 }
  0x6f   :  { %5721 = vmatpush1.bf16.msra.mxu0 %v7772_v6 }
  0x70   :  { %5723 = vmatprep.subr.bf16.mxu0 %v7775_v11 }
  0x71   :  { %5749 = vmatpush1.bf16.msra.mxu1 %v7754_v50 }
  0x72   :  { %5751 = vmatprep.subr.bf16.mxu1 %v7757_v53 }
  0x73   :  { %5725 = vmatpush1.bf16.msra.mxu0 %v7784_v24 }
  0x74   :  { %5727 = vmatprep.subr.bf16.mxu0 %v7787_v29 }
  0x75   :  { %5753 = vmatpush1.bf16.msra.mxu1 %v7766_v62 }
  0x76   :  { %5755 = vmatprep.subr.bf16.mxu1 %v7769_v2 }
  0x77   :  { %5729 = vmatpush1.bf16.msra.mxu0 %v7796_v41 }
  0x78   :  { %5731 = vmatprep.subr.bf16.mxu0 %v7804_v43 }
  0x79   :  { %5757 = vmatpush1.bf16.msra.mxu1 %v7778_v15 }
  0x7a   :  { %5759 = vmatprep.subr.bf16.mxu1 %v7781_v20 }
  0x7b   :  { %5733 = vmatpush1.bf16.msra.mxu0 %v7815_v51 }
  0x7c   :  { %5767 = vmatprep.subr.bf16.mxu0 %v7719_v10 }
  0x7d   :  { %5761 = vmatpush1.bf16.msra.mxu1 %v7790_v32 }
  0x7e   :  { %5763 = vmatprep.subr.bf16.mxu1 %v7793_v37 }
  0x81   :  { %5765 = vmatpush1.bf16.msra.mxu1 %v7807_v48 }
  0x82   :  { %5492 = vmatprep.subr.msk.mxu1 %vm293_vm0, %v7812_v49 }
 0x131   :  { %v209_v0 = vpop.f32.mrb[0].mxu0 }
 0x132   :  { %v211_v4 = vpop.f32.mrb[1].mxu0 }
 0x133   :  { %v368_v7 = vpop.f32.mrb[2].mxu1 }
 0x134   :  { %v369_v12 = vadd.f32 %v368_v7, %v209_v0  ;;  %v370_v13 = vpop.f32.mrb[3].mxu1 }
 0x135   :  { %v371_v16 = vadd.f32 %v370_v13, %v211_v4 }
 0x136   :  { %v465_v21 = vadd.f32 %v7892_v3, %v369_v12 }
 0x137   :  { %v466_v22 = vadd.f32 %v7896_v8, %v371_v16  ;;  %v439_v25 = vpop.f32.mrb[0].mxu1 }
 0x138   :  { %v5488_v26 = vmul.f32 -1.442695, %v465_v21  ;;  %v441_v30 = vpop.f32.mrb[1].mxu1  ;;  %v467_v46 = vadd.f32 %v7909_v39, %v439_v25 }
 0x139   :  { %v5489_v31 = vmul.f32 -1.442695, %v466_v22  ;;  %v468_v38 = vadd.f32 %v7903_v33, %v441_v30 }
 0x13a   :  { %7272 = vpow2.f32 %v5488_v26 }
 0x13b   :  { %7274 = vpow2.f32 %v5489_v31  ;;  %v5490_v45 = vmul.f32 -1.442695, %v468_v38  ;;  %v5491_v38 = vld [vmem:[%s9089_s0 + $0x2] sm:$0x3] }
 0x13d   :  { %7276 = vpow2.f32 %v5490_v45 }
 0x13e   :  { %7278 = vtanh.f32 %v467_v46 }
 0x144   :  { %v7273_v55 = vpop.eup %7272 }
 0x145   :  { %v7275_v57 = vpop.eup %7274  ;;  %v472_v0 = vadd.f32 1.0, %v7273_v55 }
 0x146   :  { %v478_v4 = vadd.f32 1.0, %v7275_v57 }
 0x147   :  { %7280 = vrcp.f32 %v472_v0  ;;  %v7277_v7 = vpop.eup %7276 }
 0x148   :  { %7282 = vrcp.f32 %v478_v4  ;;  %v7279_v12 = vpop.eup %7278  ;;  %v485_v22 = vadd.f32 1.0, %v7277_v7 }
 0x14a   :  { %7284 = vrcp.f32 %v485_v22 }
 0x151   :  { %v7281_v13 = vpop.eup %7280 }
 0x152   :  { %v7283_v16 = vpop.eup %7282  ;;  %v489_v21 = vmul.f32 %v7281_v13, %v7279_v12 }
 0x153   :  { %v488_v26 = vmul.f32 0.0, %v7283_v16 }
 0x154   :  { %v7285_v25 = vpop.eup %7284 }
 0x155   :  { %v7912_v61 = vadd.f32 %v489_v21, %v488_v26 }
 0x157   :  { %7286 = vtanh.f32 %v7912_v61 }
 0x161   :  { %v7287_v30 = vpop.eup %7286 }
 0x162   :  { %v492_v31 = vmul.f32 %v7287_v30, %v7285_v25 }
 0x164   :  { %493 = vst [vmem:[#allocation2] sm:$0x3] %v492_v31  ;;  %561 = vmatmul.mubr.f32.vlgmr.msra.gmra.mrb[2].mxu0 %v492_v31  ;;  %632 = vmatmul.mubr.f32.vlgmr.msra.gmra.mrb[4].mxu1 %v492_v31 }
 0x165   :  { %5493 = vmatpush1.msk.msra.mxu1 %vm293_vm0, %v7801_v42  ;;  %705 = vmatprep.mubr.f32.mxu1 %v9103_v1 }
 0x166   :  { %5495 = vmatprep.subr.msk.mxu1 %vm293_vm0, %v7828_v54  ;;  %5769 = vmatpush1.bf16.msra.mxu0 %v7726_v18 }
 0x167   :  { %5771 = vmatprep.subr.bf16.mxu0 %v7731_v23  ;;  %879 = vmatprep.mubr.f32.mxu0 %v9103_v1 }
 0x168   :  { %5494 = vmatmul.mubr.msk.f32.vlgmr.msra.gmra.mrb[6].mxu1 %vm289_vm1, %v5491_v38 }
 0x169   :  { %5496 = vmatpush1.msk.msra.mxu1 %vm293_vm0, %v7820_v52  ;;  %776 = vmatprep.mubr.f32.mxu1 %v9103_v1 }
 0x16a   :  { %5799 = vmatprep.subr.bf16.mxu1 %v7715_v5  ;;  %5773 = vmatpush1.bf16.msra.mxu0 %v7736_v28 }
 0x16b   :  { %5775 = vmatprep.subr.bf16.mxu0 %v7742_v36 }
 0x16c   :  { %5497 = vmatmul.mubr.msk.f32.vlgmr.msra.gmra.mrb[4].mxu1 %vm289_vm1, %v5491_v38 }
 0x16d   :  { %5801 = vmatpush1.bf16.msra.mxu1 %v7717_v9  ;;  %950 = vmatprep.mubr.f32.mxu1 %v9103_v1 }
 0x16e   :  { %5803 = vmatprep.subr.bf16.mxu1 %v7722_v14  ;;  %5777 = vmatpush1.bf16.msra.mxu0 %v7748_v44 }
 0x16f   :  { %5779 = vmatprep.subr.bf16.mxu0 %v7751_v47 }
 0x171   :  { %5805 = vmatpush1.bf16.msra.mxu1 %v7728_v19 }
 0x172   :  { %5807 = vmatprep.subr.bf16.mxu1 %v7734_v27  ;;  %5781 = vmatpush1.bf16.msra.mxu0 %v7760_v56 }
 0x173   :  { %5783 = vmatprep.subr.bf16.mxu0 %v7763_v59 }
 0x175   :  { %5809 = vmatpush1.bf16.msra.mxu1 %v7740_v35 }
 0x176   :  { %5811 = vmatprep.subr.bf16.mxu1 %v7745_v40  ;;  %5785 = vmatpush1.bf16.msra.mxu0 %v7772_v6 }
 0x177   :  { %5787 = vmatprep.subr.bf16.mxu0 %v7775_v11 }
 0x179   :  { %5813 = vmatpush1.bf16.msra.mxu1 %v7754_v50 }
 0x17a   :  { %5815 = vmatprep.subr.bf16.mxu1 %v7757_v53  ;;  %5789 = vmatpush1.bf16.msra.mxu0 %v7784_v24 }
 0x17b   :  { %5791 = vmatprep.subr.bf16.mxu0 %v7787_v29 }
 0x17d   :  { %5817 = vmatpush1.bf16.msra.mxu1 %v7766_v62 }
 0x17e   :  { %5819 = vmatprep.subr.bf16.mxu1 %v7769_v2  ;;  %5793 = vmatpush1.bf16.msra.mxu0 %v7796_v41 }
 0x17f   :  { %5795 = vmatprep.subr.bf16.mxu0 %v7804_v43 }
 0x181   :  { %5821 = vmatpush1.bf16.msra.mxu1 %v7778_v15 }
 0x182   :  { %5823 = vmatprep.subr.bf16.mxu1 %v7781_v20  ;;  %5797 = vmatpush1.bf16.msra.mxu0 %v7815_v51 }
 0x183   :  { %5831 = vmatprep.subr.bf16.mxu0 %v7719_v10 }
 0x185   :  { %5825 = vmatpush1.bf16.msra.mxu1 %v7790_v32 }
 0x186   :  { %5827 = vmatprep.subr.bf16.mxu1 %v7793_v37 }
 0x189   :  { %5829 = vmatpush1.bf16.msra.mxu1 %v7807_v48 }
 0x18a   :  { %5502 = vmatprep.subr.msk.mxu1 %vm293_vm0, %v7812_v49 }
 0x237   :  { %v562_v45 = vpop.f32.mrb[2].mxu0 }
 0x238   :  { %v564_v46 = vpop.f32.mrb[3].mxu0 }
 0x23b   :  { %v707_v55 = vpop.f32.mrb[6].mxu1 }
 0x23c   :  { %v708_v57 = vadd.f32 %v707_v55, %v562_v45  ;;  %v709_v0 = vpop.f32.mrb[7].mxu1 }
 0x23d   :  { %v710_v4 = vadd.f32 %v709_v0, %v564_v46 }
 0x23e   :  { %v783_v7 = vadd.f32 %v708_v57, %v7892_v3 }
 0x23f   :  { %v784_v12 = vadd.f32 %v710_v4, %v7896_v8  ;;  %v778_v13 = vpop.f32.mrb[4].mxu1 }
 0x240   :  { %v5498_v16 = vmul.f32 -1.442695, %v783_v7  ;;  %v780_v21 = vpop.f32.mrb[5].mxu1  ;;  %v785_v30 = vadd.f32 %v778_v13, %v7909_v39 }
 0x241   :  { %v5499_v22 = vmul.f32 -1.442695, %v784_v12  ;;  %v786_v26 = vadd.f32 %v780_v21, %v7903_v33 }
 0x242   :  { %7288 = vpow2.f32 %v5498_v16 }
 0x243   :  { %7290 = vpow2.f32 %v5499_v22  ;;  %v5500_v25 = vmul.f32 -1.442695, %v786_v26 }
 0x245   :  { %7292 = vpow2.f32 %v5500_v25 }
 0x246   :  { %7294 = vtanh.f32 %v785_v30 }
 0x24c   :  { %v7289_v31 = vpop.eup %7288 }
 0x24d   :  { %v7291_v38 = vpop.eup %7290  ;;  %v790_v45 = vadd.f32 1.0, %v7289_v31 }
 0x24e   :  { %v796_v46 = vadd.f32 1.0, %v7291_v38 }
 0x24f   :  { %7296 = vrcp.f32 %v790_v45  ;;  %v7293_v55 = vpop.eup %7292 }
 0x250   :  { %7298 = vrcp.f32 %v796_v46  ;;  %v7295_v57 = vpop.eup %7294  ;;  %v803_v12 = vadd.f32 1.0, %v7293_v55 }
 0x252   :  { %7300 = vrcp.f32 %v803_v12 }
 0x259   :  { %v7297_v0 = vpop.eup %7296 }
 0x25a   :  { %v7299_v4 = vpop.eup %7298  ;;  %v807_v7 = vmul.f32 %v7297_v0, %v7295_v57 }
 0x25b   :  { %v806_v16 = vmul.f32 %v7299_v4, %v7912_v61  ;;  %v5501_v61 = vld [vmem:[%s9089_s0 + $0x4] sm:$0x3] }
 0x25c   :  { %v7301_v13 = vpop.eup %7300 }
 0x25d   :  { %v7969_v21 = vadd.f32 %v807_v7, %v806_v16 }
 0x25f   :  { %7302 = vtanh.f32 %v7969_v21 }
 0x269   :  { %v7303_v22 = vpop.eup %7302 }
 0x26a   :  { %v810_v26 = vmul.f32 %v7303_v22, %v7301_v13 }
 0x26c   :  { %812 = vst [vmem:[#allocation2 + $0x2] sm:$0x3] %v810_v26  ;;  %880 = vmatmul.mubr.f32.vlgmr.msra.gmra.mrb[4].mxu0 %v810_v26  ;;  %951 = vmatmul.mubr.f32.vlgmr.msra.gmra.mrb[8].mxu1 %v810_v26 }
 0x26d   :  { %5503 = vmatpush1.msk.msra.mxu1 %vm293_vm0, %v7801_v42  ;;  %1024 = vmatprep.mubr.f32.mxu1 %v9103_v1 }
 0x26e   :  { %5505 = vmatprep.subr.msk.mxu1 %vm293_vm0, %v7828_v54  ;;  %5833 = vmatpush1.bf16.msra.mxu0 %v7726_v18 }
 0x26f   :  { %5835 = vmatprep.subr.bf16.mxu0 %v7731_v23  ;;  %1198 = vmatprep.mubr.f32.mxu0 %v9103_v1 }
 0x270   :  { %5504 = vmatmul.mubr.msk.f32.vlgmr.msra.gmra.mrb[10].mxu1 %vm289_vm1, %v5501_v61 }
 0x271   :  { %5506 = vmatpush1.msk.msra.mxu1 %vm293_vm0, %v7820_v52  ;;  %1095 = vmatprep.mubr.f32.mxu1 %v9103_v1 }
 0x272   :  { %5863 = vmatprep.subr.bf16.mxu1 %v7715_v5  ;;  %5837 = vmatpush1.bf16.msra.mxu0 %v7736_v28 }
 0x273   :  { %5839 = vmatprep.subr.bf16.mxu0 %v7742_v36 }
 0x274   :  { %5507 = vmatmul.mubr.msk.f32.vlgmr.msra.gmra.mrb[8].mxu1 %vm289_vm1, %v5501_v61 }
 0x275   :  { %5865 = vmatpush1.bf16.msra.mxu1 %v7717_v9  ;;  %1269 = vmatprep.mubr.f32.mxu1 %v9103_v1 }
 0x276   :  { %5867 = vmatprep.subr.bf16.mxu1 %v7722_v14  ;;  %5841 = vmatpush1.bf16.msra.mxu0 %v7748_v44 }
 0x277   :  { %5843 = vmatprep.subr.bf16.mxu0 %v7751_v47 }
 0x279   :  { %5869 = vmatpush1.bf16.msra.mxu1 %v7728_v19 }
 0x27a   :  { %5871 = vmatprep.subr.bf16.mxu1 %v7734_v27  ;;  %5845 = vmatpush1.bf16.msra.mxu0 %v7760_v56 }
 0x27b   :  { %5847 = vmatprep.subr.bf16.mxu0 %v7763_v59 }
 0x27d   :  { %5873 = vmatpush1.bf16.msra.mxu1 %v7740_v35 }
 0x27e   :  { %5875 = vmatprep.subr.bf16.mxu1 %v7745_v40  ;;  %5849 = vmatpush1.bf16.msra.mxu0 %v7772_v6 }
 0x27f   :  { %5851 = vmatprep.subr.bf16.mxu0 %v7775_v11 }
 0x281   :  { %5877 = vmatpush1.bf16.msra.mxu1 %v7754_v50 }
 0x282   :  { %5879 = vmatprep.subr.bf16.mxu1 %v7757_v53  ;;  %5853 = vmatpush1.bf16.msra.mxu0 %v7784_v24 }
 0x283   :  { %5855 = vmatprep.subr.bf16.mxu0 %v7787_v29 }
 0x285   :  { %5881 = vmatpush1.bf16.msra.mxu1 %v7766_v62 }
 0x286   :  { %5883 = vmatprep.subr.bf16.mxu1 %v7769_v2  ;;  %5857 = vmatpush1.bf16.msra.mxu0 %v7796_v41 }
 0x287   :  { %5859 = vmatprep.subr.bf16.mxu0 %v7804_v43 }
 0x289   :  { %5885 = vmatpush1.bf16.msra.mxu1 %v7778_v15 }
 0x28a   :  { %5887 = vmatprep.subr.bf16.mxu1 %v7781_v20  ;;  %5861 = vmatpush1.bf16.msra.mxu0 %v7815_v51 }
 0x28b   :  { %5895 = vmatprep.subr.bf16.mxu0 %v7719_v10 }
 0x28d   :  { %5889 = vmatpush1.bf16.msra.mxu1 %v7790_v32 }
 0x28e   :  { %5891 = vmatprep.subr.bf16.mxu1 %v7793_v37 }
 0x291   :  { %5893 = vmatpush1.bf16.msra.mxu1 %v7807_v48 }
 0x292   :  { %5512 = vmatprep.subr.msk.mxu1 %vm293_vm0, %v7812_v49 }
 0x33f   :  { %v881_v25 = vpop.f32.mrb[4].mxu0 }
 0x340   :  { %v883_v30 = vpop.f32.mrb[5].mxu0 }
 0x343   :  { %v1026_v31 = vpop.f32.mrb[10].mxu1 }
 0x344   :  { %v1027_v38 = vadd.f32 %v1026_v31, %v881_v25  ;;  %v1028_v45 = vpop.f32.mrb[11].mxu1 }
 0x345   :  { %v1029_v46 = vadd.f32 %v1028_v45, %v883_v30 }
 0x346   :  { %v1102_v55 = vadd.f32 %v1027_v38, %v7892_v3 }
 0x347   :  { %v1103_v57 = vadd.f32 %v1029_v46, %v7896_v8  ;;  %v1097_v0 = vpop.f32.mrb[8].mxu1 }
 0x348   :  { %v5508_v4 = vmul.f32 -1.442695, %v1102_v55  ;;  %v1099_v7 = vpop.f32.mrb[9].mxu1  ;;  %v1104_v22 = vadd.f32 %v1097_v0, %v7909_v39 }
 0x349   :  { %v5509_v12 = vmul.f32 -1.442695, %v1103_v57  ;;  %v1105_v16 = vadd.f32 %v1099_v7, %v7903_v33 }
 0x34a   :  { %7304 = vpow2.f32 %v5508_v4 }
 0x34b   :  { %7306 = vpow2.f32 %v5509_v12  ;;  %v5510_v13 = vmul.f32 -1.442695, %v1105_v16 }
 0x34d   :  { %7308 = vpow2.f32 %v5510_v13 }
 0x34e   :  { %7310 = vtanh.f32 %v1104_v22 }
 0x354   :  { %v7305_v26 = vpop.eup %7304 }
 0x355   :  { %v7307_v61 = vpop.eup %7306  ;;  %v1109_v25 = vadd.f32 1.0, %v7305_v26 }
 0x356   :  { %v1115_v30 = vadd.f32 1.0, %v7307_v61 }
 0x357   :  { %7312 = vrcp.f32 %v1109_v25  ;;  %v7309_v31 = vpop.eup %7308 }
 0x358   :  { %7314 = vrcp.f32 %v1115_v30  ;;  %v7311_v38 = vpop.eup %7310  ;;  %v1122_v57 = vadd.f32 1.0, %v7309_v31 }
 0x35a   :  { %7316 = vrcp.f32 %v1122_v57 }
 0x361   :  { %v7313_v45 = vpop.eup %7312 }
 0x362   :  { %v7315_v46 = vpop.eup %7314  ;;  %v1126_v55 = vmul.f32 %v7313_v45, %v7311_v38 }
 0x363   :  { %v1125_v4 = vmul.f32 %v7315_v46, %v7969_v21  ;;  %v5511_v21 = vld [vmem:[%s9089_s0 + $0x6] sm:$0x3] }
 0x364   :  { %v7317_v0 = vpop.eup %7316 }
 0x365   :  { %v8026_v7 = vadd.f32 %v1126_v55, %v1125_v4 }
 0x367   :  { %7318 = vtanh.f32 %v8026_v7 }
 0x371   :  { %v7319_v12 = vpop.eup %7318 }
 0x372   :  { %v1129_v16 = vmul.f32 %v7319_v12, %v7317_v0 }
 0x374   :  { %1131 = vst [vmem:[#allocation2 + $0x4] sm:$0x3] %v1129_v16  ;;  %1199 = vmatmul.mubr.f32.vlgmr.msra.gmra.mrb[6].mxu0 %v1129_v16  ;;  %1270 = vmatmul.mubr.f32.vlgmr.msra.gmra.mrb[12].mxu1 %v1129_v16 }
 0x375   :  { %5513 = vmatpush1.msk.msra.mxu1 %vm293_vm0, %v7801_v42  ;;  %1343 = vmatprep.mubr.f32.mxu1 %v9103_v1 }
 0x376   :  { %5515 = vmatprep.subr.msk.mxu1 %vm293_vm0, %v7828_v54  ;;  %5897 = vmatpush1.bf16.msra.mxu0 %v7726_v18 }
 0x377   :  { %5899 = vmatprep.subr.bf16.mxu0 %v7731_v23  ;;  %1517 = vmatprep.mubr.f32.mxu0 %v9103_v1 }
 0x378   :  { %5514 = vmatmul.mubr.msk.f32.vlgmr.msra.gmra.mrb[14].mxu1 %vm289_vm1, %v5511_v21 }
 0x379   :  { %5516 = vmatpush1.msk.msra.mxu1 %vm293_vm0, %v7820_v52  ;;  %1414 = vmatprep.mubr.f32.mxu1 %v9103_v1 }
 0x37a   :  { %5927 = vmatprep.subr.bf16.mxu1 %v7715_v5  ;;  %5901 = vmatpush1.bf16.msra.mxu0 %v7736_v28 }
 0x37b   :  { %5903 = vmatprep.subr.bf16.mxu0 %v7742_v36 }
 0x37c   :  { %5517 = vmatmul.mubr.msk.f32.vlgmr.msra.gmra.mrb[12].mxu1 %vm289_vm1, %v5511_v21 }
 0x37d   :  { %5929 = vmatpush1.bf16.msra.mxu1 %v7717_v9  ;;  %1588 = vmatprep.mubr.f32.mxu1 %v9103_v1 }
 0x37e   :  { %5931 = vmatprep.subr.bf16.mxu1 %v7722_v14  ;;  %5905 = vmatpush1.bf16.msra.mxu0 %v7748_v44 }
 0x37f   :  { %5907 = vmatprep.subr.bf16.mxu0 %v7751_v47 }
 0x381   :  { %5933 = vmatpush1.bf16.msra.mxu1 %v7728_v19 }
 0x382   :  { %5935 = vmatprep.subr.bf16.mxu1 %v7734_v27  ;;  %5909 = vmatpush1.bf16.msra.mxu0 %v7760_v56 }
 0x383   :  { %5911 = vmatprep.subr.bf16.mxu0 %v7763_v59 }
 0x385   :  { %5937 = vmatpush1.bf16.msra.mxu1 %v7740_v35 }
 0x386   :  { %5939 = vmatprep.subr.bf16.mxu1 %v7745_v40  ;;  %5913 = vmatpush1.bf16.msra.mxu0 %v7772_v6 }
 0x387   :  { %5915 = vmatprep.subr.bf16.mxu0 %v7775_v11 }
 0x389   :  { %5941 = vmatpush1.bf16.msra.mxu1 %v7754_v50 }
 0x38a   :  { %5943 = vmatprep.subr.bf16.mxu1 %v7757_v53  ;;  %5917 = vmatpush1.bf16.msra.mxu0 %v7784_v24 }
 0x38b   :  { %5919 = vmatprep.subr.bf16.mxu0 %v7787_v29 }
 0x38d   :  { %5945 = vmatpush1.bf16.msra.mxu1 %v7766_v62 }
 0x38e   :  { %5947 = vmatprep.subr.bf16.mxu1 %v7769_v2  ;;  %5921 = vmatpush1.bf16.msra.mxu0 %v7796_v41 }
 0x38f   :  { %5923 = vmatprep.subr.bf16.mxu0 %v7804_v43 }
 0x391   :  { %5949 = vmatpush1.bf16.msra.mxu1 %v7778_v15 }
 0x392   :  { %5951 = vmatprep.subr.bf16.mxu1 %v7781_v20  ;;  %5925 = vmatpush1.bf16.msra.mxu0 %v7815_v51 }
 0x393   :  { %5522 = vmatprep.subr.msk.mxu0 %vm293_vm0, %v7812_v49 }
 0x395   :  { %5953 = vmatpush1.bf16.msra.mxu1 %v7790_v32 }
 0x396   :  { %5955 = vmatprep.subr.bf16.mxu1 %v7793_v37 }
 0x399   :  { %5957 = vmatpush1.bf16.msra.mxu1 %v7807_v48 }
 0x39a   :  { %5525 = vmatprep.subr.msk.mxu1 %vm293_vm0, %v7828_v54 }
 0x447   :  { %v1200_v13 = vpop.f32.mrb[6].mxu0 }
 0x448   :  { %v1202_v22 = vpop.f32.mrb[7].mxu0 }
 0x44b   :  { %v1345_v26 = vpop.f32.mrb[14].mxu1 }
 0x44c   :  { %v1346_v61 = vadd.f32 %v1345_v26, %v1200_v13  ;;  %v1347_v25 = vpop.f32.mrb[15].mxu1 }
 0x44d   :  { %v1348_v30 = vadd.f32 %v1347_v25, %v1202_v22 }
 0x44e   :  { %v1421_v31 = vadd.f32 %v1346_v61, %v7892_v3 }
 0x44f   :  { %v1422_v38 = vadd.f32 %v1348_v30, %v7896_v8  ;;  %v1416_v45 = vpop.f32.mrb[12].mxu1 }
 0x450   :  { %v5518_v46 = vmul.f32 -1.442695, %v1421_v31  ;;  %v1418_v55 = vpop.f32.mrb[13].mxu1  ;;  %v1423_v12 = vadd.f32 %v1416_v45, %v7909_v39 }
 0x451   :  { %v5519_v57 = vmul.f32 -1.442695, %v1422_v38  ;;  %v1424_v4 = vadd.f32 %v1418_v55, %v7903_v33 }
 0x452   :  { %7320 = vpow2.f32 %v5518_v46 }
 0x453   :  { %7322 = vpow2.f32 %v5519_v57  ;;  %v5520_v0 = vmul.f32 -1.442695, %v1424_v4 }
 0x455   :  { %7324 = vpow2.f32 %v5520_v0 }
 0x456   :  { %7326 = vtanh.f32 %v1423_v12 }
 0x45c   :  { %v7321_v16 = vpop.eup %7320 }
 0x45d   :  { %v7323_v21 = vpop.eup %7322  ;;  %v1428_v13 = vadd.f32 1.0, %v7321_v16 }
 0x45e   :  { %v1434_v22 = vadd.f32 1.0, %v7323_v21 }
 0x45f   :  { %7328 = vrcp.f32 %v1428_v13  ;;  %v7325_v26 = vpop.eup %7324 }
 0x460   :  { %7330 = vrcp.f32 %v1434_v22  ;;  %v7327_v61 = vpop.eup %7326  ;;  %v1441_v38 = vadd.f32 1.0, %v7325_v26 }
 0x462   :  { %7332 = vrcp.f32 %v1441_v38 }
 0x469   :  { %v7329_v25 = vpop.eup %7328 }
 0x46a   :  { %v7331_v30 = vpop.eup %7330  ;;  %v1445_v31 = vmul.f32 %v7329_v25, %v7327_v61 }
 0x46b   :  { %v1444_v46 = vmul.f32 %v7331_v30, %v8026_v7  ;;  %v5521_v7 = vld [vmem:[%s9089_s0 + $0x8] sm:$0x3] }
 0x46c   :  { %v7333_v45 = vpop.eup %7332 }
 0x46d   :  { %v8084_v55 = vadd.f32 %v1445_v31, %v1444_v46 }
 0x46f   :  { %7334 = vtanh.f32 %v8084_v55 }
 0x479   :  { %v7335_v57 = vpop.eup %7334 }
 0x47a   :  { %v1448_v4 = vmul.f32 %v7335_v57, %v7333_v45 }
 0x47c   :  { %1450 = vst [vmem:[#allocation2 + $0x6] sm:$0x3] %v1448_v4  ;;  %1518 = vmatmul.mubr.f32.vlgmr.msra.gmra.mrb[8].mxu0 %v1448_v4  ;;  %1589 = vmatmul.mubr.f32.vlgmr.msra.gmra.mrb[16].mxu1 %v1448_v4 }
 0x47d   :  { %5523 = vmatpush1.msk.msra.mxu0 %vm293_vm0, %v7801_v42  ;;  %1662 = vmatprep.mubr.f32.mxu0 %v9103_v1 }
 0x47e   :  { %5526 = vmatpush1.msk.msra.mxu1 %vm293_vm0, %v7820_v52  ;;  %1733 = vmatprep.mubr.f32.mxu1 %v9103_v1 }
 0x47f   :  { %5959 = vmatprep.subr.bf16.mxu0 %v7719_v10  ;;  %5991 = vmatprep.subr.bf16.mxu1 %v7715_v5 }
 0x484   :  { %5524 = vmatmul.mubr.msk.f32.vlgmr.msra.gmra.mrb[8].mxu0 %vm289_vm1, %v5521_v7  ;;  %5527 = vmatmul.mubr.msk.f32.vlgmr.msra.gmra.mrb[16].mxu1 %vm289_vm1, %v5521_v7 }
 0x485   :  { %5961 = vmatpush1.bf16.msra.mxu0 %v7726_v18  ;;  %5993 = vmatpush1.bf16.msra.mxu1 %v7717_v9 }
 0x486   :  { %5963 = vmatprep.subr.bf16.mxu0 %v7731_v23  ;;  %5995 = vmatprep.subr.bf16.mxu1 %v7722_v14 }
 0x487   :  { %1836 = vmatprep.mubr.f32.mxu0 %v9103_v1  ;;  %1907 = vmatprep.mubr.f32.mxu1 %v9103_v1 }
 0x489   :  { %5965 = vmatpush1.bf16.msra.mxu0 %v7736_v28  ;;  %5997 = vmatpush1.bf16.msra.mxu1 %v7728_v19 }
 0x48a   :  { %5967 = vmatprep.subr.bf16.mxu0 %v7742_v36  ;;  %5999 = vmatprep.subr.bf16.mxu1 %v7734_v27 }
 0x48d   :  { %5969 = vmatpush1.bf16.msra.mxu0 %v7748_v44  ;;  %6001 = vmatpush1.bf16.msra.mxu1 %v7740_v35 }
 0x48e   :  { %5971 = vmatprep.subr.bf16.mxu0 %v7751_v47  ;;  %6003 = vmatprep.subr.bf16.mxu1 %v7745_v40 }
 0x491   :  { %5973 = vmatpush1.bf16.msra.mxu0 %v7760_v56  ;;  %6005 = vmatpush1.bf16.msra.mxu1 %v7754_v50 }
 0x492   :  { %5975 = vmatprep.subr.bf16.mxu0 %v7763_v59  ;;  %6007 = vmatprep.subr.bf16.mxu1 %v7757_v53 }
 0x495   :  { %5977 = vmatpush1.bf16.msra.mxu0 %v7772_v6  ;;  %6009 = vmatpush1.bf16.msra.mxu1 %v7766_v62 }
 0x496   :  { %5979 = vmatprep.subr.bf16.mxu0 %v7775_v11  ;;  %6011 = vmatprep.subr.bf16.mxu1 %v7769_v2 }
 0x499   :  { %5981 = vmatpush1.bf16.msra.mxu0 %v7784_v24  ;;  %6013 = vmatpush1.bf16.msra.mxu1 %v7778_v15 }
 0x49a   :  { %5983 = vmatprep.subr.bf16.mxu0 %v7787_v29  ;;  %6015 = vmatprep.subr.bf16.mxu1 %v7781_v20 }
 0x49d   :  { %5985 = vmatpush1.bf16.msra.mxu0 %v7796_v41  ;;  %6017 = vmatpush1.bf16.msra.mxu1 %v7790_v32 }
 0x49e   :  { %5987 = vmatprep.subr.bf16.mxu0 %v7804_v43  ;;  %6019 = vmatprep.subr.bf16.mxu1 %v7793_v37 }
 0x4a1   :  { %5989 = vmatpush1.bf16.msra.mxu0 %v7815_v51  ;;  %6021 = vmatpush1.bf16.msra.mxu1 %v7807_v48 }
 0x4a2   :  { %5532 = vmatprep.subr.msk.mxu0 %vm293_vm0, %v7812_v49  ;;  %5535 = vmatprep.subr.msk.mxu1 %vm293_vm0, %v7828_v54 }
 0x557   :  { %v1664_v0 = vpop.f32.mrb[8].mxu0  ;;  %v1735_v12 = vpop.f32.mrb[16].mxu1 }
 0x558   :  { %v1740_v16 = vadd.f32 %v1664_v0, %v7892_v3  ;;  %v1666_v21 = vpop.f32.mrb[9].mxu0  ;;  %v1737_v13 = vpop.f32.mrb[17].mxu1  ;;  %v1742_v31 = vadd.f32 %v1735_v12, %v7909_v39 }
 0x559   :  { %v1741_v22 = vadd.f32 %v1666_v21, %v7896_v8  ;;  %v1743_v25 = vadd.f32 %v1737_v13, %v7903_v33 }
 0x55a   :  { %v5528_v26 = vmul.f32 -1.442695, %v1740_v16 }
 0x55b   :  { %v5529_v61 = vmul.f32 -1.442695, %v1741_v22  ;;  %v5530_v30 = vmul.f32 -1.442695, %v1743_v25 }
 0x55c   :  { %7336 = vpow2.f32 %v5528_v26 }
 0x55d   :  { %7338 = vpow2.f32 %v5529_v61 }
 0x55e   :  { %7340 = vpow2.f32 %v5530_v30 }
 0x55f   :  { %7342 = vtanh.f32 %v1742_v31 }
 0x566   :  { %v7337_v38 = vpop.eup %7336 }
 0x567   :  { %v7339_v46 = vpop.eup %7338  ;;  %v1747_v45 = vadd.f32 1.0, %v7337_v38 }
 0x568   :  { %v1753_v57 = vadd.f32 1.0, %v7339_v46  ;;  %v7341_v4 = vpop.eup %7340 }
 0x569   :  { %7344 = vrcp.f32 %v1747_v45  ;;  %v7343_v7 = vpop.eup %7342  ;;  %v1760_v22 = vadd.f32 1.0, %v7341_v4 }
 0x56a   :  { %7346 = vrcp.f32 %v1753_v57 }
 0x56b   :  { %7348 = vrcp.f32 %v1760_v22 }
 0x573   :  { %v7345_v0 = vpop.eup %7344 }
 0x574   :  { %v7347_v16 = vpop.eup %7346  ;;  %v1764_v21 = vmul.f32 %v7345_v0, %v7343_v7 }
 0x575   :  { %v1763_v26 = vmul.f32 %v7347_v16, %v8084_v55  ;;  %v7349_v12 = vpop.eup %7348  ;;  %v5531_v55 = vld [vmem:[%s9089_s0 + $0xa] sm:$0x3] }
 0x577   :  { %v8141_v13 = vadd.f32 %v1764_v21, %v1763_v26 }
 0x579   :  { %7350 = vtanh.f32 %v8141_v13 }
 0x583   :  { %v7351_v61 = vpop.eup %7350 }
 0x584   :  { %v1767_v25 = vmul.f32 %v7351_v61, %v7349_v12 }
 0x586   :  { %1769 = vst [vmem:[#allocation2 + $0x8] sm:$0x3] %v1767_v25  ;;  %1837 = vmatmul.mubr.f32.vlgmr.msra.gmra.mrb[10].mxu0 %v1767_v25  ;;  %1908 = vmatmul.mubr.f32.vlgmr.msra.gmra.mrb[18].mxu1 %v1767_v25 }
 0x587   :  { %5533 = vmatpush1.msk.msra.mxu0 %vm293_vm0, %v7801_v42  ;;  %1981 = vmatprep.mubr.f32.mxu0 %v9103_v1 }
 0x588   :  { %5536 = vmatpush1.msk.msra.mxu1 %vm293_vm0, %v7820_v52  ;;  %2052 = vmatprep.mubr.f32.mxu1 %v9103_v1 }
 0x589   :  { %6023 = vmatprep.subr.bf16.mxu0 %v7719_v10  ;;  %6055 = vmatprep.subr.bf16.mxu1 %v7715_v5 }
 0x58e   :  { %5534 = vmatmul.mubr.msk.f32.vlgmr.msra.gmra.mrb[10].mxu0 %vm289_vm1, %v5531_v55  ;;  %5537 = vmatmul.mubr.msk.f32.vlgmr.msra.gmra.mrb[18].mxu1 %vm289_vm1, %v5531_v55 }
 0x58f   :  { %6025 = vmatpush1.bf16.msra.mxu0 %v7726_v18  ;;  %6057 = vmatpush1.bf16.msra.mxu1 %v7717_v9 }
 0x590   :  { %6027 = vmatprep.subr.bf16.mxu0 %v7731_v23  ;;  %6059 = vmatprep.subr.bf16.mxu1 %v7722_v14 }
 0x591   :  { %2155 = vmatprep.mubr.f32.mxu0 %v9103_v1  ;;  %2226 = vmatprep.mubr.f32.mxu1 %v9103_v1 }
 0x593   :  { %6029 = vmatpush1.bf16.msra.mxu0 %v7736_v28  ;;  %6061 = vmatpush1.bf16.msra.mxu1 %v7728_v19 }
 0x594   :  { %6031 = vmatprep.subr.bf16.mxu0 %v7742_v36  ;;  %6063 = vmatprep.subr.bf16.mxu1 %v7734_v27 }
 0x597   :  { %6033 = vmatpush1.bf16.msra.mxu0 %v7748_v44  ;;  %6065 = vmatpush1.bf16.msra.mxu1 %v7740_v35 }
 0x598   :  { %6035 = vmatprep.subr.bf16.mxu0 %v7751_v47  ;;  %6067 = vmatprep.subr.bf16.mxu1 %v7745_v40 }
 0x59b   :  { %6037 = vmatpush1.bf16.msra.mxu0 %v7760_v56  ;;  %6069 = vmatpush1.bf16.msra.mxu1 %v7754_v50 }
 0x59c   :  { %6039 = vmatprep.subr.bf16.mxu0 %v7763_v59  ;;  %6071 = vmatprep.subr.bf16.mxu1 %v7757_v53 }
 0x59f   :  { %6041 = vmatpush1.bf16.msra.mxu0 %v7772_v6  ;;  %6073 = vmatpush1.bf16.msra.mxu1 %v7766_v62 }
 0x5a0   :  { %6043 = vmatprep.subr.bf16.mxu0 %v7775_v11  ;;  %6075 = vmatprep.subr.bf16.mxu1 %v7769_v2 }
 0x5a3   :  { %6045 = vmatpush1.bf16.msra.mxu0 %v7784_v24  ;;  %6077 = vmatpush1.bf16.msra.mxu1 %v7778_v15 }
 0x5a4   :  { %6047 = vmatprep.subr.bf16.mxu0 %v7787_v29  ;;  %6079 = vmatprep.subr.bf16.mxu1 %v7781_v20 }
 0x5a7   :  { %6049 = vmatpush1.bf16.msra.mxu0 %v7796_v41  ;;  %6081 = vmatpush1.bf16.msra.mxu1 %v7790_v32 }
 0x5a8   :  { %6051 = vmatprep.subr.bf16.mxu0 %v7804_v43  ;;  %6083 = vmatprep.subr.bf16.mxu1 %v7793_v37 }
 0x5ab   :  { %6053 = vmatpush1.bf16.msra.mxu0 %v7815_v51  ;;  %6085 = vmatpush1.bf16.msra.mxu1 %v7807_v48 }
 0x5ac   :  { %5542 = vmatprep.subr.msk.mxu0 %vm293_vm0, %v7812_v49  ;;  %5545 = vmatprep.subr.msk.mxu1 %vm293_vm0, %v7828_v54 }
 0x661   :  { %v1983_v42 = vpop.f32.mrb[10].mxu0  ;;  %v2054_v52 = vpop.f32.mrb[18].mxu1 }
 0x662   :  { %v2059_v30 = vadd.f32 %v1983_v42, %v7892_v3  ;;  %v1985_v31 = vpop.f32.mrb[11].mxu0  ;;  %v2056_v38 = vpop.f32.mrb[19].mxu1  ;;  %v2061_v0 = vadd.f32 %v2054_v52, %v7909_v39 }
 0x663   :  { %v2060_v46 = vadd.f32 %v1985_v31, %v7896_v8  ;;  %v2062_v4 = vadd.f32 %v2056_v38, %v7903_v33 }
 0x664   :  { %v5538_v45 = vmul.f32 -1.442695, %v2059_v30 }
 0x665   :  { %v5539_v57 = vmul.f32 -1.442695, %v2060_v46  ;;  %v5540_v7 = vmul.f32 -1.442695, %v2062_v4  ;;  %v5541_v4 = vld [vmem:[%s9089_s0 + $0xc] sm:$0x3] }
 0x666   :  { %7352 = vpow2.f32 %v5538_v45 }
 0x667   :  { %7354 = vpow2.f32 %v5539_v57  ;;  %v8204_v57 = vld [vmem:[%s9090_s1] sm:$0xff] }
 0x668   :  { %7356 = vpow2.f32 %v5540_v7  ;;  %v2793_v7 = vld [vmem:[#allocation8 + $0x10] sm:$0xff] }
 0x669   :  { %7358 = vtanh.f32 %v2061_v0  ;;  %v2797_v0 = vld [vmem:[#allocation8 + $0x30] sm:$0xff] }
 0x670   :  { %v7353_v16 = vpop.eup %7352 }
 0x671   :  { %v7355_v21 = vpop.eup %7354  ;;  %v2066_v22 = vadd.f32 1.0, %v7353_v16  ;;  %v2800_v16 = vld [vmem:[#allocation8 + $0x48] sm:$0xff] }
 0x672   :  { %v2072_v26 = vadd.f32 1.0, %v7355_v21  ;;  %v7357_v12 = vpop.eup %7356  ;;  %v2804_v21 = vld [vmem:[#allocation8 + $0x68] sm:$0xff] }
 0x673   :  { %7360 = vrcp.f32 %v2066_v22  ;;  %v7359_v61 = vpop.eup %7358  ;;  %v2079_v30 = vadd.f32 1.0, %v7357_v12  ;;  %v2802_v22 = vld [vmem:[#allocation8 + $0x58] sm:$0xff] }
 0x674   :  { %7362 = vrcp.f32 %v2072_v26  ;;  %v2806_v26 = vld [vmem:[#allocation8 + $0x78] sm:$0xff] }
 0x675   :  { %7364 = vrcp.f32 %v2079_v30  ;;  %v5551_v12 = vld [vmem:[%s9089_s0 + $0xe] sm:$0x3]  ;;  %v8287_v30 = vpack.c.bf16 %v2804_v21, %v2800_v16 }
 0x676   :  { %v2834_v16 = vld [vmem:[#allocation8 + $0x158] sm:$0xff] }
 0x677   :  { %v2838_v21 = vld [vmem:[#allocation8 + $0x178] sm:$0xff] }
 0x67d   :  { %v7361_v25 = vpop.eup %7360 }
 0x67e   :  { %v7363_v55 = vpop.eup %7362  ;;  %v2083_v42 = vmul.f32 %v7361_v25, %v7359_v61  ;;  %v8285_v25 = vpack.c.bf16 %v2797_v0, %v2793_v7  ;;  %v2832_v7 = vld [vmem:[#allocation8 + $0x148] sm:$0xff] }
 0x67f   :  { %v2082_v31 = vmul.f32 %v7363_v55, %v8141_v13  ;;  %v7365_v52 = vpop.eup %7364  ;;  %v8212_v13 = vld [vmem:[%s9090_s1 + $0x8] sm:$0xff]  ;;  %v2799_v55 = vld [vmem:[#allocation8 + $0x40] sm:$0xff]  ;;  %v2836_v0 = vld [vmem:[#allocation8 + $0x168] sm:$0xff] }
 0x681   :  { %v8198_v38 = vadd.f32 %v2083_v42, %v2082_v31  ;;  %v2803_v42 = vld [vmem:[#allocation8 + $0x60] sm:$0xff]  ;;  %v8289_v31 = vpack.c.bf16 %v2806_v26, %v2802_v22 }
 0x683   :  { %7366 = vtanh.f32 %v8198_v38 }
 0x68d   :  { %v7367_v46 = vpop.eup %7366 }
 0x68e   :  { %v2086_v45 = vmul.f32 %v7367_v46, %v7365_v52  ;;  %v2805_v52 = vld [vmem:[#allocation8 + $0x70] sm:$0xff]  ;;  %v2808_v46 = vld [vmem:[#allocation8 + $0x88] sm:$0xff] }
 0x690   :  { %2088 = vst [vmem:[#allocation2 + $0xa] sm:$0x3] %v2086_v45  ;;  %2156 = vmatmul.mubr.f32.vlgmr.msra.gmra.mrb[12].mxu0 %v2086_v45  ;;  %2227 = vmatmul.mubr.f32.vlgmr.msra.gmra.mrb[20].mxu1 %v2086_v45  ;;  %v2812_v45 = vld [vmem:[#allocation8 + $0xa8] sm:$0xff] }
 0x691   :  { %5543 = vmatpush1.msk.msra.mxu0 %vm293_vm0, %v8204_v57  ;;  %2300 = vmatprep.mubr.f32.mxu0 %v9103_v1 }
 0x692   :  { %5546 = vmatpush1.msk.msra.mxu1 %vm293_vm0, %v8212_v13  ;;  %2371 = vmatprep.mubr.f32.mxu1 %v9103_v1 }
 0x693   :  { %6087 = vmatprep.subr.bf16.mxu0 %v7719_v10  ;;  %6119 = vmatprep.subr.bf16.mxu1 %v7715_v5 }
 0x698   :  { %5544 = vmatmul.mubr.msk.f32.vlgmr.msra.gmra.mrb[12].mxu0 %vm289_vm1, %v5541_v4  ;;  %5547 = vmatmul.mubr.msk.f32.vlgmr.msra.gmra.mrb[20].mxu1 %vm289_vm1, %v5541_v4  ;;  %v8295_v4 = vpack.c.bf16 %v2803_v42, %v2799_v55  ;;  %v2835_v55 = vld [vmem:[#allocation8 + $0x160] sm:$0xff]  ;;  %v8339_v42 = vpack.c.bf16 %v2836_v0, %v2832_v7  ;;  %v2853_v7 = vld [vmem:[#allocation8 + $0x1f0] sm:$0xff]  ;;  %v2728_v0 = vld [vmem:[#allocation6 + $0x8] sm:$0xff] }
 0x699   :  { %6089 = vmatpush1.bf16.msra.mxu0 %v7726_v18  ;;  %6121 = vmatpush1.bf16.msra.mxu1 %v7717_v9 }
 0x69a   :  { %6091 = vmatprep.subr.bf16.mxu0 %v7731_v23  ;;  %6123 = vmatprep.subr.bf16.mxu1 %v7722_v14  ;;  %9192 = vst [vmem:[#allocation18_spill] sm:$0xff] %v8339_v42 }
 0x69b   :  { %2474 = vmatprep.mubr.f32.mxu0 %v9103_v1  ;;  %2545 = vmatprep.mubr.f32.mxu1 %v9103_v1 }
 0x69d   :  { %6093 = vmatpush1.bf16.msra.mxu0 %v7736_v28  ;;  %6125 = vmatpush1.bf16.msra.mxu1 %v7728_v19 }
 0x69e   :  { %6095 = vmatprep.subr.bf16.mxu0 %v7742_v36  ;;  %6127 = vmatprep.subr.bf16.mxu1 %v7734_v27 }
 0x6a1   :  { %6097 = vmatpush1.bf16.msra.mxu0 %v7748_v44  ;;  %6129 = vmatpush1.bf16.msra.mxu1 %v7740_v35 }
 0x6a2   :  { %6099 = vmatprep.subr.bf16.mxu0 %v7751_v47  ;;  %6131 = vmatprep.subr.bf16.mxu1 %v7745_v40 }
 0x6a5   :  { %6101 = vmatpush1.bf16.msra.mxu0 %v7760_v56  ;;  %6133 = vmatpush1.bf16.msra.mxu1 %v7754_v50 }
 0x6a6   :  { %6103 = vmatprep.subr.bf16.mxu0 %v7763_v59  ;;  %6135 = vmatprep.subr.bf16.mxu1 %v7757_v53 }
 0x6a9   :  { %6105 = vmatpush1.bf16.msra.mxu0 %v7772_v6  ;;  %6137 = vmatpush1.bf16.msra.mxu1 %v7766_v62 }
 0x6aa   :  { %6107 = vmatprep.subr.bf16.mxu0 %v7775_v11  ;;  %6139 = vmatprep.subr.bf16.mxu1 %v7769_v2 }
 0x6ad   :  { %6109 = vmatpush1.bf16.msra.mxu0 %v7784_v24  ;;  %6141 = vmatpush1.bf16.msra.mxu1 %v7778_v15 }
 0x6ae   :  { %6111 = vmatprep.subr.bf16.mxu0 %v7787_v29  ;;  %6143 = vmatprep.subr.bf16.mxu1 %v7781_v20  ;;  %v2792_v20 = vld [vmem:[#allocation8 + $0x8] sm:$0xff] }
 0x6af   :  { %v2796_v29 = vld [vmem:[#allocation8 + $0x28] sm:$0xff] }
 0x6b1   :  { %6113 = vmatpush1.bf16.msra.mxu0 %v7796_v41  ;;  %6145 = vmatpush1.bf16.msra.mxu1 %v7790_v32  ;;  %v2794_v32 = vld [vmem:[#allocation8 + $0x18] sm:$0xff] }
 0x6b2   :  { %6115 = vmatprep.subr.bf16.mxu0 %v7804_v43  ;;  %6147 = vmatprep.subr.bf16.mxu1 %v7793_v37  ;;  %v2798_v37 = vld [vmem:[#allocation8 + $0x38] sm:$0xff] }
 0x6b5   :  { %6117 = vmatpush1.bf16.msra.mxu0 %v7815_v51  ;;  %6149 = vmatpush1.bf16.msra.mxu1 %v7807_v48  ;;  %v8268_v48 = vpack.c.bf16 %v2796_v29, %v2792_v20  ;;  %v2791_v51 = vld [vmem:[#allocation8] sm:$0xff]  ;;  %v2830_v20 = vld [vmem:[#allocation8 + $0x138] sm:$0xff] }
 0x6b6   :  { %5552 = vmatprep.subr.msk.mxu0 %vm293_vm0, %v7812_v49  ;;  %5555 = vmatprep.subr.msk.mxu1 %vm293_vm0, %v7828_v54  ;;  %v8270_v49 = vpack.c.bf16 %v2798_v37, %v2794_v32  ;;  %v2795_v54 = vld [vmem:[#allocation8 + $0x20] sm:$0xff] }
 0x6b7   :  { %v8283_v61 = vpack.c.bf16 %v2795_v54, %v2791_v51  ;;  %v2823_v32 = vld [vmem:[#allocation8 + $0x100] sm:$0xff]  ;;  %v2825_v51 = vld [vmem:[#allocation8 + $0x110] sm:$0xff] }
 0x6b8   :  { %v2827_v37 = vld [vmem:[#allocation8 + $0x120] sm:$0xff]  ;;  %v2829_v54 = vld [vmem:[#allocation8 + $0x130] sm:$0xff] }
 0x6b9   :  { %v8333_v22 = vpack.c.bf16 %v2827_v37, %v2823_v32  ;;  %v8335_v26 = vpack.c.bf16 %v2829_v54, %v2825_v51  ;;  %v2851_v32 = vld [vmem:[#allocation8 + $0x1e0] sm:$0xff]  ;;  %v2849_v54 = vld [vmem:[#allocation8 + $0x1d0] sm:$0xff] }
 0x6bb   :  { %9190 = vst [vmem:[#allocation16_spill] sm:$0xff] %v8333_v22  ;;  %9191 = vst [vmem:[#allocation17_spill] sm:$0xff] %v8335_v26 }
 0x76b   :  { %v2302_v5 = vpop.f32.mrb[12].mxu0  ;;  %v2373_v9 = vpop.f32.mrb[20].mxu1 }
 0x76c   :  { %v2378_v10 = vadd.f32 %v2302_v5, %v7892_v3  ;;  %v2304_v14 = vpop.f32.mrb[13].mxu0  ;;  %v2375_v18 = vpop.f32.mrb[21].mxu1  ;;  %v2380_v36 = vadd.f32 %v2373_v9, %v7909_v39  ;;  %v2807_v9 = vld [vmem:[#allocation8 + $0x80] sm:$0xff] }
 0x76d   :  { %v2379_v19 = vadd.f32 %v2304_v14, %v7896_v8  ;;  %v2381_v28 = vadd.f32 %v2375_v18, %v7903_v33  ;;  %v8301_v14 = vpack.c.bf16 %v2812_v45, %v2808_v46  ;;  %v2837_v46 = vld [vmem:[#allocation8 + $0x170] sm:$0xff]  ;;  %v2840_v45 = vld [vmem:[#allocation8 + $0x188] sm:$0xff] }
 0x76e   :  { %v5548_v23 = vmul.f32 -1.442695, %v2378_v10  ;;  %v2811_v10 = vld [vmem:[#allocation8 + $0xa0] sm:$0xff] }
 0x76f   :  { %v5549_v27 = vmul.f32 -1.442695, %v2379_v19  ;;  %v5550_v35 = vmul.f32 -1.442695, %v2381_v28  ;;  %v2809_v19 = vld [vmem:[#allocation8 + $0x90] sm:$0xff]  ;;  %v2820_v28 = vld [vmem:[#allocation8 + $0xe8] sm:$0xff] }
 0x770   :  { %7368 = vpow2.f32 %v5548_v23  ;;  %v2813_v23 = vld [vmem:[#allocation8 + $0xb0] sm:$0xff] }
 0x771   :  { %7370 = vpow2.f32 %v5549_v27  ;;  %v2816_v27 = vld [vmem:[#allocation8 + $0xc8] sm:$0xff] }
 0x772   :  { %7372 = vpow2.f32 %v5550_v35  ;;  %v2818_v35 = vld [vmem:[#allocation8 + $0xd8] sm:$0xff] }
 0x773   :  { %7374 = vtanh.f32 %v2380_v36  ;;  %v2822_v36 = vld [vmem:[#allocation8 + $0xf8] sm:$0xff] }
 0x77a   :  { %v7369_v40 = vpop.eup %7368 }
 0x77b   :  { %v7371_v44 = vpop.eup %7370  ;;  %v2385_v47 = vadd.f32 1.0, %v7369_v40  ;;  %v8309_v40 = vpack.c.bf16 %v2811_v10, %v2807_v9  ;;  %v2846_v9 = vld [vmem:[#allocation8 + $0x1b8] sm:$0xff] }
 0x77c   :  { %v2391_v50 = vadd.f32 1.0, %v7371_v44  ;;  %v7373_v53 = vpop.eup %7372  ;;  %v8311_v44 = vpack.c.bf16 %v2813_v23, %v2809_v19  ;;  %v2839_v23 = vld [vmem:[#allocation8 + $0x180] sm:$0xff] }
 0x77d   :  { %7376 = vrcp.f32 %v2385_v47  ;;  %v7375_v56 = vpop.eup %7374  ;;  %v2398_v6 = vadd.f32 1.0, %v7373_v53  ;;  %v2815_v47 = vld [vmem:[#allocation8 + $0xc0] sm:$0xff]  ;;  %v8315_v53 = vpack.c.bf16 %v2820_v28, %v2816_v27 }
 0x77e   :  { %7378 = vrcp.f32 %v2391_v50  ;;  %v2819_v50 = vld [vmem:[#allocation8 + $0xe0] sm:$0xff] }
 0x77f   :  { %7380 = vrcp.f32 %v2398_v6  ;;  %v2828_v6 = vld [vmem:[#allocation8 + $0x128] sm:$0xff]  ;;  %v2843_v27 = vld [vmem:[#allocation8 + $0x1a0] sm:$0xff] }
 0x787   :  { %v7377_v59 = vpop.eup %7376 }
 0x788   :  { %v7379_v62 = vpop.eup %7378  ;;  %v2402_v2 = vmul.f32 %v7377_v59, %v7375_v56  ;;  %v8317_v56 = vpack.c.bf16 %v2822_v36, %v2818_v35  ;;  %v2817_v59 = vld [vmem:[#allocation8 + $0xd0] sm:$0xff] }
 0x789   :  { %v2401_v11 = vmul.f32 %v7379_v62, %v8198_v38  ;;  %v7381_v24 = vpop.eup %7380  ;;  %v2801_v38 = vld [vmem:[#allocation8 + $0x50] sm:$0xff] }
 0x78a   :  { %v8297_v5 = vpack.c.bf16 %v2805_v52, %v2801_v38  ;;  %9185 = vst [vmem:[#allocation11_spill] sm:$0xff] %v8317_v56  ;;  %v2821_v62 = vld [vmem:[#allocation8 + $0xf0] sm:$0xff]  ;;  %v8341_v38 = vpack.c.bf16 %v2838_v21, %v2834_v16  ;;  %v2732_v16 = vld [vmem:[#allocation6 + $0x28] sm:$0xff]  ;;  %v2730_v21 = vld [vmem:[#allocation6 + $0x18] sm:$0xff] }
 0x78b   :  { %v8265_v15 = vadd.f32 %v2402_v2, %v2401_v11  ;;  %v2824_v2 = vld [vmem:[#allocation8 + $0x108] sm:$0xff]  ;;  %v2826_v11 = vld [vmem:[#allocation8 + $0x118] sm:$0xff]  ;;  %v8323_v29 = vpack.c.bf16 %v2821_v62, %v2817_v59  ;;  %v2833_v52 = vld [vmem:[#allocation8 + $0x150] sm:$0xff] }
 0x78c   :  { %9193 = vst [vmem:[#allocation19_spill] sm:$0xff] %v8341_v38  ;;  %v8347_v19 = vpack.c.bf16 %v2837_v46, %v2833_v52  ;;  %v2841_v36 = vld [vmem:[#allocation8 + $0x190] sm:$0xff]  ;;  %v2852_v59 = vld [vmem:[#allocation8 + $0x1e8] sm:$0xff]  ;;  %v2850_v62 = vld [vmem:[#allocation8 + $0x1d8] sm:$0xff]  ;;  %v8371_v52 = vpack.c.bf16 %v2853_v7, %v2849_v54 }
 0x78d   :  { %7382 = vtanh.f32 %v8265_v15  ;;  %9187 = vst [vmem:[#allocation13_spill] sm:$0xff] %v8323_v29  ;;  %v2727_v46 = vld [vmem:[#allocation6] sm:$0xff]  ;;  %v2737_v7 = vld [vmem:[#allocation6 + $0x50] sm:$0xff] }
 0x78e   :  { %9195 = vst [vmem:[#allocation21_spill] sm:$0xff] %v8347_v19  ;;  %9203 = vst [vmem:[#allocation29_spill] sm:$0xff] %v8371_v52 }
 0x797   :  { %v7383_v41 = vpop.eup %7382 }
 0x798   :  { %v2405_v43 = vmul.f32 %v7383_v41, %v7381_v24  ;;  %v8321_v24 = vpack.c.bf16 %v2819_v50, %v2815_v47  ;;  %v8327_v41 = vpack.c.bf16 %v2828_v6, %v2824_v2  ;;  %v2845_v47 = vld [vmem:[#allocation8 + $0x1b0] sm:$0xff]  ;;  %v2848_v50 = vld [vmem:[#allocation8 + $0x1c8] sm:$0xff]  ;;  %v2854_v2 = vld [vmem:[#allocation8 + $0x1f8] sm:$0xff]  ;;  %v8357_v6 = vpack.c.bf16 %v2843_v27, %v2839_v23 }
 0x799   :  { %v8363_v37 = vpack.c.bf16 %v2852_v59, %v2848_v50  ;;  %v8365_v51 = vpack.c.bf16 %v2854_v2, %v2850_v62  ;;  %v2733_v23 = vld [vmem:[#allocation6 + $0x30] sm:$0xff]  ;;  %v2736_v27 = vld [vmem:[#allocation6 + $0x48] sm:$0xff]  ;;  %v2742_v50 = vld [vmem:[#allocation6 + $0x78] sm:$0xff] }
 0x79a   :  { %2407 = vst [vmem:[#allocation2 + $0xc] sm:$0x3] %v2405_v43  ;;  %2475 = vmatmul.mubr.f32.vlgmr.msra.gmra.mrb[14].mxu0 %v2405_v43  ;;  %2546 = vmatmul.mubr.f32.vlgmr.msra.gmra.mrb[22].mxu1 %v2405_v43  ;;  %9186 = vst [vmem:[#allocation12_spill] sm:$0xff] %v8321_v24  ;;  %v8329_v43 = vpack.c.bf16 %v2830_v20, %v2826_v11  ;;  %v8359_v11 = vpack.c.bf16 %v2845_v47, %v2841_v36  ;;  %v2847_v20 = vld [vmem:[#allocation8 + $0x1c0] sm:$0xff]  ;;  %v2740_v36 = vld [vmem:[#allocation6 + $0x68] sm:$0xff] }
 0x79b   :  { %5553 = vmatpush1.msk.msra.mxu0 %vm293_vm0, %v8204_v57  ;;  %5556 = vmatpush1.msk.msra.mxu1 %vm293_vm0, %v8212_v13  ;;  %v2810_v57 = vld [vmem:[#allocation8 + $0x98] sm:$0xff]  ;;  %9188 = vst [vmem:[#allocation14_spill] sm:$0xff] %v8327_v41  ;;  %9198 = vst [vmem:[#allocation24_spill] sm:$0xff] %v8357_v6  ;;  %v2735_v2 = vld [vmem:[#allocation6 + $0x40] sm:$0xff] }
 0x79c   :  { %2619 = vmatprep.mubr.f32.mxu0 %v9103_v1  ;;  %2690 = vmatprep.mubr.f32.mxu1 %v9103_v1  ;;  %v2814_v13 = vld [vmem:[#allocation8 + $0xb8] sm:$0xff]  ;;  %9189 = vst [vmem:[#allocation15_spill] sm:$0xff] %v8329_v43  ;;  %9199 = vst [vmem:[#allocation25_spill] sm:$0xff] %v8359_v11 }
 0x79d   :  { %6151 = vmatprep.subr.bf16.mxu0 %v8268_v48  ;;  %6183 = vmatprep.subr.bf16.mxu1 %v8270_v49  ;;  %v8303_v18 = vpack.c.bf16 %v2814_v13, %v2810_v57  ;;  %v2844_v57 = vld [vmem:[#allocation8 + $0x1a8] sm:$0xff]  ;;  %v2842_v13 = vld [vmem:[#allocation8 + $0x198] sm:$0xff]  ;;  %9200 = vst [vmem:[#allocation26_spill] sm:$0xff] %v8363_v37  ;;  %9201 = vst [vmem:[#allocation27_spill] sm:$0xff] %v8365_v51 }
 0x79e   :  { %v8351_v28 = vpack.c.bf16 %v2844_v57, %v2840_v45  ;;  %v8353_v35 = vpack.c.bf16 %v2846_v9, %v2842_v13  ;;  %v2731_v45 = vld [vmem:[#allocation6 + $0x20] sm:$0xff]  ;;  %v8375_v57 = vpack.c.bf16 %v2732_v16, %v2728_v0  ;;  %v2729_v9 = vld [vmem:[#allocation6 + $0x10] sm:$0xff]  ;;  %v2738_v47 = vld [vmem:[#allocation6 + $0x58] sm:$0xff] }
 0x79f   :  { %v8381_v59 = vpack.c.bf16 %v2731_v45, %v2727_v46  ;;  %v8383_v62 = vpack.c.bf16 %v2733_v23, %v2729_v9  ;;  %v8389_v54 = vpack.c.bf16 %v2742_v50, %v2738_v47  ;;  %v2741_v0 = vld [vmem:[#allocation6 + $0x70] sm:$0xff]  ;;  %v2744_v16 = vld [vmem:[#allocation6 + $0x88] sm:$0xff]  ;;  %v2743_v9 = vld [vmem:[#allocation6 + $0x80] sm:$0xff] }
 0x7a0   :  { %9196 = vst [vmem:[#allocation22_spill] sm:$0xff] %v8351_v28  ;;  %9197 = vst [vmem:[#allocation23_spill] sm:$0xff] %v8353_v35  ;;  %v8397_v45 = vpack.c.bf16 %v2741_v0, %v2737_v7  ;;  %v2747_v23 = vld [vmem:[#allocation6 + $0xa0] sm:$0xff]  ;;  %v2745_v47 = vld [vmem:[#allocation6 + $0x90] sm:$0xff] }
 0x7a1   :  { %9204 = vst [vmem:[#allocation30_spill] sm:$0xff] %v8375_v57  ;;  %9206 = vst [vmem:[#allocation32_spill] sm:$0xff] %v8383_v62  ;;  %v2749_v50 = vld [vmem:[#allocation6 + $0xb0] sm:$0xff]  ;;  %v2755_v0 = vld [vmem:[#allocation6 + $0xe0] sm:$0xff] }
 0x7a2   :  { %5554 = vmatmul.mubr.msk.f32.vlgmr.msra.gmra.mrb[14].mxu0 %vm289_vm1, %v5551_v12  ;;  %5557 = vmatmul.mubr.msk.f32.vlgmr.msra.gmra.mrb[22].mxu1 %vm289_vm1, %v5551_v12  ;;  %v2831_v12 = vld [vmem:[#allocation8 + $0x140] sm:$0xff]  ;;  %9208 = vst [vmem:[#allocation34_spill] sm:$0xff] %v8389_v54  ;;  %9210 = vst [vmem:[#allocation36_spill] sm:$0xff] %v8397_v45  ;;  %v8411_v7 = vpack.c.bf16 %v2749_v50, %v2745_v47 }
 0x7a3   :  { %6153 = vmatpush1.bf16.msra.mxu0 %v8283_v61  ;;  %6185 = vmatpush1.bf16.msra.mxu1 %v8285_v25  ;;  %v8345_v10 = vpack.c.bf16 %v2835_v55, %v2831_v12  ;;  %v2734_v12 = vld [vmem:[#allocation6 + $0x38] sm:$0xff]  ;;  %v8369_v55 = vpack.c.bf16 %v2851_v32, %v2847_v20  ;;  %v2739_v20 = vld [vmem:[#allocation6 + $0x60] sm:$0xff]  ;;  %v8387_v32 = vpack.c.bf16 %v2740_v36, %v2736_v27 }
 0x7a4   :  { %6155 = vmatprep.subr.bf16.mxu0 %v8287_v30  ;;  %6187 = vmatprep.subr.bf16.mxu1 %v8289_v31  ;;  %v8377_v13 = vpack.c.bf16 %v2734_v12, %v2730_v21  ;;  %v2748_v21 = vld [vmem:[#allocation6 + $0xa8] sm:$0xff]  ;;  %v2746_v12 = vld [vmem:[#allocation6 + $0x98] sm:$0xff]  ;;  %v8395_v46 = vpack.c.bf16 %v2739_v20, %v2735_v2  ;;  %v9213_v2 = vmov 0.0   ;;  %v8409_v20 = vpack.c.bf16 %v2747_v23, %v2743_v9  ;;  %v2759_v47 = vld [vmem:[#allocation6 + $0x100] sm:$0xff] }
 0x7a5   :  { %2921 = vmatprep.mubr.f32.mxu0 %v9103_v1  ;;  %2992 = vmatprep.mubr.f32.mxu1 %v9103_v1  ;;  %9194 = vst [vmem:[#allocation20_spill] sm:$0xff] %v8345_v10  ;;  %9202 = vst [vmem:[#allocation28_spill] sm:$0xff] %v8369_v55  ;;  %v8401_v27 = vpack.c.bf16 %v2748_v21, %v2744_v16  ;;  %v8403_v36 = vpack.c.bf16 %v2750_v34, %v2746_v12  ;;  %v2751_v34 = vld [vmem:[#allocation6 + $0xc0] sm:$0xff]  ;;  %v2753_v12 = vld [vmem:[#allocation6 + $0xd0] sm:$0xff] }
 0x7a6   :  { %9205 = vst [vmem:[#allocation31_spill] sm:$0xff] %v8377_v13  ;;  %9207 = vst [vmem:[#allocation33_spill] sm:$0xff] %v8387_v32  ;;  %v8415_v16 = vpack.c.bf16 %v2756_v63, %v2752_v17  ;;  %v8421_v9 = vpack.c.bf16 %v2755_v0, %v2751_v34  ;;  %v2763_v50 = vld [vmem:[#allocation6 + $0x120] sm:$0xff]  ;;  %v2761_v63 = vld [vmem:[#allocation6 + $0x110] sm:$0xff] }
 0x7a7   :  { %6157 = vmatpush1.bf16.msra.mxu0 %v8295_v4  ;;  %6189 = vmatpush1.bf16.msra.mxu1 %v8297_v5  ;;  %9209 = vst [vmem:[#allocation35_spill] sm:$0xff] %v8395_v46  ;;  %9211 = vst [vmem:[#allocation37_spill] sm:$0xff] %v8401_v27  ;;  %v2765_v17 = vld [vmem:[#allocation6 + $0x130] sm:$0xff]  ;;  %v2767_v0 = vld [vmem:[#allocation6 + $0x140] sm:$0xff] }
 0x7a8   :  { %6159 = vmatprep.subr.bf16.mxu0 %v8301_v14  ;;  %6191 = vmatprep.subr.bf16.mxu1 %v8303_v18  ;;  %9212 = vst [vmem:[#allocation38_spill] sm:$0xff] %v8403_v36  ;;  %9214 = vst [vmem:[#allocation39_spill] sm:$0xff] %v8409_v20  ;;  %v8435_v34 = vpack.c.bf16 %v2765_v17, %v2761_v63  ;;  %v2775_v63 = vld [vmem:[#allocation6 + $0x180] sm:$0xff] }
 0x7a9   :  { %9215 = vst [vmem:[#allocation40_spill] sm:$0xff] %v8411_v7  ;;  %9216 = vst [vmem:[#allocation41_spill] sm:$0xff] %v8415_v16  ;;  %v2779_v17 = vld [vmem:[#allocation6 + $0x1a0] sm:$0xff] }
 0x7aa   :  { %9218 = vst [vmem:[#allocation43_spill] sm:$0xff] %v8421_v9  ;;  %9223 = vst [vmem:[#allocation48_spill] sm:$0xff] %v8435_v34 }
 0x7ab   :  { %6161 = vmatpush1.bf16.msra.mxu0 %v8309_v40  ;;  %6193 = vmatpush1.bf16.msra.mxu1 %v8311_v44 }
 0x7ac   :  { %6163 = vmatprep.subr.bf16.mxu0 %v8315_v53  ;;  %6195 = vmatprep.subr.bf16.mxu1 %v8317_v56 }
 0x7af   :  { %6165 = vmatpush1.bf16.msra.mxu0 %v8321_v24  ;;  %6197 = vmatpush1.bf16.msra.mxu1 %v8323_v29 }
 0x7b0   :  { %6167 = vmatprep.subr.bf16.mxu0 %v8327_v41  ;;  %6199 = vmatprep.subr.bf16.mxu1 %v8329_v43 }
 0x7b3   :  { %6169 = vmatpush1.bf16.msra.mxu0 %v8333_v22  ;;  %6201 = vmatpush1.bf16.msra.mxu1 %v8335_v26 }
 0x7b4   :  { %6171 = vmatprep.subr.bf16.mxu0 %v8339_v42  ;;  %6203 = vmatprep.subr.bf16.mxu1 %v8341_v38 }
 0x7b7   :  { %6173 = vmatpush1.bf16.msra.mxu0 %v8345_v10  ;;  %6205 = vmatpush1.bf16.msra.mxu1 %v8347_v19 }
 0x7b8   :  { %6175 = vmatprep.subr.bf16.mxu0 %v8351_v28  ;;  %6207 = vmatprep.subr.bf16.mxu1 %v8353_v35 }
 0x7bb   :  { %6177 = vmatpush1.bf16.msra.mxu0 %v8357_v6  ;;  %6209 = vmatpush1.bf16.msra.mxu1 %v8359_v11 }
 0x7bc   :  { %6179 = vmatprep.subr.bf16.mxu0 %v8363_v37  ;;  %6211 = vmatprep.subr.bf16.mxu1 %v8365_v51 }
 0x7bf   :  { %6181 = vmatpush1.bf16.msra.mxu0 %v8369_v55  ;;  %6213 = vmatpush1.bf16.msra.mxu1 %v8371_v52 }
 0x7c0   :  { %6215 = vmatprep.subr.bf16.mxu0 %v8375_v57  ;;  %6247 = vmatprep.subr.bf16.mxu1 %v8377_v13 }
 0x7c2   :  { %2922 = vmatmul.mubr.f32.vlgmr.msra.gmra.mrb[16].mxu0 %v9103_v1  ;;  %2993 = vmatmul.mubr.f32.vlgmr.msra.gmra.mrb[24].mxu1 %v9103_v1  ;;  %v2758_v1 = vld [vmem:[#allocation6 + $0xf8] sm:$0xff] }
 0x7c3   :  { %6217 = vmatpush1.bf16.msra.mxu0 %v8381_v59  ;;  %6249 = vmatpush1.bf16.msra.mxu1 %v8383_v62  ;;  %v8417_v21 = vpack.c.bf16 %v2758_v1, %v2754_v60  ;;  %v2762_v62 = vld [vmem:[#allocation6 + $0x118] sm:$0xff] }
 0x7c4   :  { %6219 = vmatprep.subr.bf16.mxu0 %v8387_v32  ;;  %6251 = vmatprep.subr.bf16.mxu1 %v8389_v54  ;;  %v2757_v54 = vld [vmem:[#allocation6 + $0xf0] sm:$0xff]  ;;  %v2760_v32 = vld [vmem:[#allocation6 + $0x108] sm:$0xff] }
 0x7c5   :  { %3063 = vmatprep.mubr.f32.mxu0 %v9213_v2  ;;  %3134 = vmatprep.mubr.f32.mxu1 %v9213_v2  ;;  %9217 = vst [vmem:[#allocation42_spill] sm:$0xff] %v8417_v21  ;;  %v8423_v23 = vpack.c.bf16 %v2757_v54, %v2753_v12  ;;  %v8433_v54 = vpack.c.bf16 %v2763_v50, %v2759_v47  ;;  %v2771_v12 = vld [vmem:[#allocation6 + $0x160] sm:$0xff] }
 0x7c6   :  { %v8445_v47 = vpack.c.bf16 %v2771_v12, %v2767_v0  ;;  %v8457_v0 = vpack.c.bf16 %v2779_v17, %v2775_v63 }
 0x7c7   :  { %6221 = vmatpush1.bf16.msra.mxu0 %v8395_v46  ;;  %6253 = vmatpush1.bf16.msra.mxu1 %v8397_v45  ;;  %v2764_v46 = vld [vmem:[#allocation6 + $0x128] sm:$0xff]  ;;  %v2766_v45 = vld [vmem:[#allocation6 + $0x138] sm:$0xff]  ;;  %9219 = vst [vmem:[#allocation44_spill] sm:$0xff] %v8423_v23  ;;  %9222 = vst [vmem:[#allocation47_spill] sm:$0xff] %v8433_v54 }
 0x7c8   :  { %6223 = vmatprep.subr.bf16.mxu0 %v8401_v27  ;;  %6255 = vmatprep.subr.bf16.mxu1 %v8403_v36  ;;  %v8427_v1 = vpack.c.bf16 %v2764_v46, %v2760_v32  ;;  %v8429_v60 = vpack.c.bf16 %v2766_v45, %v2762_v62  ;;  %v2768_v36 = vld [vmem:[#allocation6 + $0x148] sm:$0xff]  ;;  %v2770_v27 = vld [vmem:[#allocation6 + $0x158] sm:$0xff]  ;;  %v2769_v46 = vld [vmem:[#allocation6 + $0x150] sm:$0xff] }
 0x7c9   :  { %v2773_v45 = vld [vmem:[#allocation6 + $0x170] sm:$0xff] }
 0x7ca   :  { %9220 = vst [vmem:[#allocation45_spill] sm:$0xff] %v8427_v1  ;;  %9221 = vst [vmem:[#allocation46_spill] sm:$0xff] %v8429_v60  ;;  %v8447_v50 = vpack.c.bf16 %v2773_v45, %v2769_v46  ;;  %v2783_v46 = vld [vmem:[#allocation6 + $0x1c0] sm:$0xff]  ;;  %v2789_v45 = vld [vmem:[#allocation6 + $0x1f0] sm:$0xff] }
 0x7cb   :  { %6225 = vmatpush1.bf16.msra.mxu0 %v8409_v20  ;;  %6257 = vmatpush1.bf16.msra.mxu1 %v8411_v7  ;;  %v2772_v20 = vld [vmem:[#allocation6 + $0x168] sm:$0xff]  ;;  %v2774_v7 = vld [vmem:[#allocation6 + $0x178] sm:$0xff] }
 0x7cc   :  { %6227 = vmatprep.subr.bf16.mxu0 %v8415_v16  ;;  %6259 = vmatprep.subr.bf16.mxu1 %v8417_v21  ;;  %v8439_v62 = vpack.c.bf16 %v2772_v20, %v2768_v36  ;;  %v8441_v32 = vpack.c.bf16 %v2774_v7, %v2770_v27  ;;  %v2776_v21 = vld [vmem:[#allocation6 + $0x188] sm:$0xff]  ;;  %v2778_v16 = vld [vmem:[#allocation6 + $0x198] sm:$0xff]  ;;  %9224 = vst [vmem:[#allocation49_spill] sm:$0xff] %v8447_v50  ;;  %v2777_v20 = vld [vmem:[#allocation6 + $0x190] sm:$0xff] }
 0x7cd   :  { %v2781_v7 = vld [vmem:[#allocation6 + $0x1b0] sm:$0xff] }
 0x7ce   :  { %v8459_v12 = vpack.c.bf16 %v2781_v7, %v2777_v20 }
 0x7cf   :  { %6229 = vmatpush1.bf16.msra.mxu0 %v8421_v9  ;;  %6261 = vmatpush1.bf16.msra.mxu1 %v8423_v23  ;;  %v2780_v9 = vld [vmem:[#allocation6 + $0x1a8] sm:$0xff]  ;;  %v2782_v23 = vld [vmem:[#allocation6 + $0x1b8] sm:$0xff] }
 0x7d0   :  { %6231 = vmatprep.subr.bf16.mxu0 %v8427_v1  ;;  %6263 = vmatprep.subr.bf16.mxu1 %v8429_v60  ;;  %v8451_v27 = vpack.c.bf16 %v2780_v9, %v2776_v21  ;;  %v8453_v36 = vpack.c.bf16 %v2782_v23, %v2778_v16  ;;  %v2784_v60 = vld [vmem:[#allocation6 + $0x1c8] sm:$0xff]  ;;  %v2786_v1 = vld [vmem:[#allocation6 + $0x1d8] sm:$0xff]  ;;  %v2787_v9 = vld [vmem:[#allocation6 + $0x1e0] sm:$0xff] }
 0x7d1   :  { %v2785_v23 = vld [vmem:[#allocation6 + $0x1d0] sm:$0xff]  ;;  %v8469_v63 = vpack.c.bf16 %v2787_v9, %v2783_v46 }
 0x7d2   :  { %v8471_v17 = vpack.c.bf16 %v2789_v45, %v2785_v23 }
 0x7d3   :  { %6233 = vmatpush1.bf16.msra.mxu0 %v8433_v54  ;;  %6265 = vmatpush1.bf16.msra.mxu1 %v8435_v34  ;;  %v2788_v54 = vld [vmem:[#allocation6 + $0x1e8] sm:$0xff]  ;;  %v2790_v34 = vld [vmem:[#allocation6 + $0x1f8] sm:$0xff] }
 0x7d4   :  { %6235 = vmatprep.subr.bf16.mxu0 %v8439_v62  ;;  %6267 = vmatprep.subr.bf16.mxu1 %v8441_v32  ;;  %v8463_v16 = vpack.c.bf16 %v2788_v54, %v2784_v60  ;;  %v8465_v21 = vpack.c.bf16 %v2790_v34, %v2786_v1  ;;  %v2856_v1 = vld [vmem:[#allocation2] sm:$0x3] }
 0x7d7   :  { %6237 = vmatpush1.bf16.msra.mxu0 %v8445_v47  ;;  %6269 = vmatpush1.bf16.msra.mxu1 %v8447_v50 }
 0x7d8   :  { %6239 = vmatprep.subr.bf16.mxu0 %v8451_v27  ;;  %6271 = vmatprep.subr.bf16.mxu1 %v8453_v36 }
 0x7db   :  { %6241 = vmatpush1.bf16.msra.mxu0 %v8457_v0  ;;  %6273 = vmatpush1.bf16.msra.mxu1 %v8459_v12 }
 0x7dc   :  { %6243 = vmatprep.subr.bf16.mxu0 %v8463_v16  ;;  %6275 = vmatprep.subr.bf16.mxu1 %v8465_v21 }
 0x7df   :  { %6245 = vmatpush1.bf16.msra.mxu0 %v8469_v63  ;;  %6277 = vmatpush1.bf16.msra.mxu1 %v8471_v17 }
 0x7e0   :  { %6279 = vmatprep.subr.bf16.mxu0 %v8268_v48  ;;  %6311 = vmatprep.subr.bf16.mxu1 %v8270_v49 }
 0x7e2   :  { %3064 = vmatmul.mubr.f32.vlgmr.msra.gmra.mrb[16].mxu0 %v2856_v1  ;;  %3135 = vmatmul.mubr.f32.vlgmr.msra.gmra.mrb[24].mxu1 %v2856_v1 }
 0x7e3   :  { %6281 = vmatpush1.bf16.msra.mxu0 %v8283_v61  ;;  %6313 = vmatpush1.bf16.msra.mxu1 %v8285_v25 }
 0x7e4   :  { %6283 = vmatprep.subr.bf16.mxu0 %v8287_v30  ;;  %6315 = vmatprep.subr.bf16.mxu1 %v8289_v31 }
 0x7e5   :  { %3255 = vmatprep.mubr.f32.mxu0 %v9213_v2  ;;  %3326 = vmatprep.mubr.f32.mxu1 %v9213_v2 }
 0x7e7   :  { %6285 = vmatpush1.bf16.msra.mxu0 %v8295_v4  ;;  %6317 = vmatpush1.bf16.msra.mxu1 %v8297_v5 }
 0x7e8   :  { %6287 = vmatprep.subr.bf16.mxu0 %v8301_v14  ;;  %6319 = vmatprep.subr.bf16.mxu1 %v8303_v18 }
 0x7eb   :  { %6289 = vmatpush1.bf16.msra.mxu0 %v8309_v40  ;;  %6321 = vmatpush1.bf16.msra.mxu1 %v8311_v44 }
 0x7ec   :  { %6291 = vmatprep.subr.bf16.mxu0 %v8315_v53  ;;  %6323 = vmatprep.subr.bf16.mxu1 %v8317_v56 }
 0x7ef   :  { %6293 = vmatpush1.bf16.msra.mxu0 %v8321_v24  ;;  %6325 = vmatpush1.bf16.msra.mxu1 %v8323_v29 }
 0x7f0   :  { %6295 = vmatprep.subr.bf16.mxu0 %v8327_v41  ;;  %6327 = vmatprep.subr.bf16.mxu1 %v8329_v43 }
 0x7f3   :  { %6297 = vmatpush1.bf16.msra.mxu0 %v8333_v22  ;;  %6329 = vmatpush1.bf16.msra.mxu1 %v8335_v26 }
 0x7f4   :  { %6299 = vmatprep.subr.bf16.mxu0 %v8339_v42  ;;  %6331 = vmatprep.subr.bf16.mxu1 %v8341_v38 }
 0x7f7   :  { %6301 = vmatpush1.bf16.msra.mxu0 %v8345_v10  ;;  %6333 = vmatpush1.bf16.msra.mxu1 %v8347_v19 }
 0x7f8   :  { %6303 = vmatprep.subr.bf16.mxu0 %v8351_v28  ;;  %6335 = vmatprep.subr.bf16.mxu1 %v8353_v35 }
 0x7fb   :  { %6305 = vmatpush1.bf16.msra.mxu0 %v8357_v6  ;;  %6337 = vmatpush1.bf16.msra.mxu1 %v8359_v11 }
 0x7fc   :  { %6307 = vmatprep.subr.bf16.mxu0 %v8363_v37  ;;  %6339 = vmatprep.subr.bf16.mxu1 %v8365_v51 }
 0x7ff   :  { %6309 = vmatpush1.bf16.msra.mxu0 %v8369_v55  ;;  %6341 = vmatpush1.bf16.msra.mxu1 %v8371_v52 }
 0x800   :  { %6343 = vmatprep.subr.bf16.mxu0 %v8375_v57  ;;  %6375 = vmatprep.subr.bf16.mxu1 %v8377_v13 }
 0x875   :  { %v2621_v60 = vpop.f32.mrb[14].mxu0  ;;  %v2692_v54 = vpop.f32.mrb[22].mxu1 }
 0x876   :  { %v2697_v34 = vadd.f32 %v2621_v60, %v7892_v3  ;;  %v2623_v20 = vpop.f32.mrb[15].mxu0  ;;  %v2694_v7 = vpop.f32.mrb[23].mxu1  ;;  %v2699_v52 = vadd.f32 %v2692_v54, %v7909_v39 }
 0x877   :  { %v2698_v46 = vadd.f32 %v2623_v20, %v7896_v8  ;;  %v2700_v45 = vadd.f32 %v2694_v7, %v7903_v33 }
 0x878   :  { %v5558_v9 = vmul.f32 -1.442695, %v2697_v34 }
 0x879   :  { %v5559_v23 = vmul.f32 -1.442695, %v2698_v46  ;;  %v5560_v1 = vmul.f32 -1.442695, %v2700_v45 }
 0x87a   :  { %7384 = vpow2.f32 %v5558_v9 }
 0x87b   :  { %7386 = vpow2.f32 %v5559_v23 }
 0x87c   :  { %7388 = vpow2.f32 %v5560_v1 }
 0x87d   :  { %7390 = vtanh.f32 %v2699_v52 }
 0x884   :  { %v7385_v57 = vpop.eup %7384 }
 0x885   :  { %v7387_v55 = vpop.eup %7386  ;;  %v2704_v13 = vadd.f32 1.0, %v7385_v57  ;;  %v9227_v57 = vsub.s32 1, %v7883_v58 }
 0x886   :  { %v2710_v51 = vadd.f32 1.0, %v7387_v55  ;;  %v7389_v3 = vpop.eup %7388  ;;  %v2855_v55 = vld [vmem:[%s9095_s6] sm:$0xf] }
 0x887   :  { %7392 = vrcp.f32 %v2704_v13  ;;  %v7391_v60 = vpop.eup %7390  ;;  %v2717_v46 = vadd.f32 1.0, %v7389_v3  ;;  %v8527_v13 = vrot.slane %v2855_v55, %v9227_v57 }
 0x888   :  { %7394 = vrcp.f32 %v2710_v51  ;;  %v9225_v51 = vsub.s32 0, %v7883_v58 }
 0x889   :  { %7396 = vrcp.f32 %v2717_v46 }
 0x88a   :  { %v8523_v52 = vrot.slane %v2855_v55, %v9225_v51 }
 0x88c   :  { %9226 = vst [vmem:[#allocation50_spill] sm:$0xff] %v8523_v52 }
 0x891   :  { %v7393_v8 = vpop.eup %7392 }
 0x892   :  { %v7395_v34 = vpop.eup %7394  ;;  %v2721_v20 = vmul.f32 %v7393_v8, %v7391_v60 }
 0x893   :  { %v2720_v9 = vmul.f32 %v7395_v34, %v8265_v15  ;;  %v7397_v39 = vpop.eup %7396 }
 0x895   :  { %v2722_v33 = vadd.f32 %v2721_v20, %v2720_v9  ;;  %v9228_v20 = vsub.s32 3, %v7883_v58 }
 0x897   :  { %7398 = vtanh.f32 %v2722_v33  ;;  %v8533_v46 = vrot.slane %v2855_v55, %v9228_v20  ;;  %v9229_v33 = vsub.s32 2, %v7883_v58 }
 0x8a1   :  { %v7399_v54 = vpop.eup %7398 }
 0x8a2   :  { %v2724_v7 = vmul.f32 %v7399_v54, %v7397_v39  ;;  %v8538_v39 = vrot.slane %v2855_v55, %v9229_v33 }
 0x8a4   :  { %2726 = vst [vmem:[#allocation2 + $0xe] sm:$0x3] %v2724_v7 }
 0x8b5   :  { %v3065_v15 = vpop.f32.mrb[16].mxu0  ;;  %v3136_v23 = vpop.f32.mrb[24].mxu1 }
 0x8b6   :  { %v3162_v45 = vadd.f32 %v8523_v52, %v3065_v15  ;;  %v3067_v1 = vpop.f32.mrb[17].mxu0  ;;  %v3138_v3 = vpop.f32.mrb[25].mxu1  ;;  %v3164_v7 = vadd.f32 %v8538_v39, %v3136_v23 }
 0x8b7   :  { %v3163_v60 = vadd.f32 %v8527_v13, %v3067_v1  ;;  %v3165_v9 = vadd.f32 %v8533_v46, %v3138_v3 }
 0x8b8   :  { %v5561_v8 = vmul.f32 -1.442695, %v3162_v45 }
 0x8b9   :  { %v5562_v34 = vmul.f32 -1.442695, %v3163_v60  ;;  %v5563_v54 = vmul.f32 -1.442695, %v3165_v9 }
 0x8ba   :  { %7400 = vpow2.f32 %v5561_v8 }
 0x8bb   :  { %7402 = vpow2.f32 %v5562_v34 }
 0x8bc   :  { %7404 = vpow2.f32 %v5563_v54  ;;  %v9230_v54 = vld [vmem:[#allocation32_spill] sm:$0xff] }
 0x8bd   :  { %7406 = vtanh.f32 %v3164_v7  ;;  %v9231_v7 = vld [vmem:[#allocation33_spill] sm:$0xff] }
 0x8c4   :  { %v7401_v51 = vpop.eup %7400 }
 0x8c5   :  { %v7403_v57 = vpop.eup %7402  ;;  %v3169_v15 = vadd.f32 1.0, %v7401_v51  ;;  %v9232_v51 = vld [vmem:[#allocation34_spill] sm:$0xff] }
 0x8c6   :  { %v3175_v45 = vadd.f32 1.0, %v7403_v57  ;;  %v7405_v1 = vpop.eup %7404  ;;  %v9233_v57 = vld [vmem:[#allocation35_spill] sm:$0xff] }
 0x8c7   :  { %7408 = vrcp.f32 %v3169_v15  ;;  %v7407_v60 = vpop.eup %7406  ;;  %v3182_v20 = vadd.f32 1.0, %v7405_v1  ;;  %v9234_v15 = vld [vmem:[#allocation36_spill] sm:$0xff]  ;;  %v9236_v1 = vld [vmem:[#allocation38_spill] sm:$0xff] }
 0x8c8   :  { %7410 = vrcp.f32 %v3175_v45  ;;  %v9235_v45 = vld [vmem:[#allocation37_spill] sm:$0xff] }
 0x8c9   :  { %7412 = vrcp.f32 %v3182_v20  ;;  %v9241_v20 = vld [vmem:[#allocation43_spill] sm:$0xff] }
 0x8d1   :  { %v7409_v8 = vpop.eup %7408 }
 0x8d2   :  { %v7411_v34 = vpop.eup %7410  ;;  %v3186_v3 = vmul.f32 %v7409_v8, %v7407_v60  ;;  %v9237_v60 = vld [vmem:[#allocation39_spill] sm:$0xff]  ;;  %v9238_v8 = vld [vmem:[#allocation40_spill] sm:$0xff] }
 0x8d3   :  { %v3185_v58 = vmul.f32 0.0, %v7411_v34  ;;  %v7413_v23 = vpop.eup %7412  ;;  %v9239_v34 = vld [vmem:[#allocation41_spill] sm:$0xff] }
 0x8d5   :  { %v8541_v55 = vadd.f32 %v3186_v3, %v3185_v58  ;;  %v9240_v3 = vld [vmem:[#allocation42_spill] sm:$0xff]  ;;  %v9242_v58 = vld [vmem:[#allocation44_spill] sm:$0xff] }
 0x8d7   :  { %7414 = vtanh.f32 %v8541_v55 }
 0x8e1   :  { %v7415_v9 = vpop.eup %7414 }
 0x8e2   :  { %v3189_v33 = vmul.f32 %v7415_v9, %v7413_v23  ;;  %v9243_v23 = vld [vmem:[#allocation45_spill] sm:$0xff]  ;;  %v9244_v9 = vld [vmem:[#allocation46_spill] sm:$0xff] }
 0x8e4   :  { %3256 = vmatmul.mubr.f32.vlgmr.msra.gmra.mrb[18].mxu0 %v3189_v33  ;;  %3327 = vmatmul.mubr.f32.vlgmr.msra.gmra.mrb[26].mxu1 %v3189_v33  ;;  %v9245_v33 = vld [vmem:[#allocation47_spill] sm:$0xff] }
 0x8e5   :  { %6345 = vmatpush1.bf16.msra.mxu0 %v8381_v59  ;;  %6377 = vmatpush1.bf16.msra.mxu1 %v9230_v54 }
 0x8e6   :  { %6347 = vmatprep.subr.bf16.mxu0 %v9231_v7  ;;  %6379 = vmatprep.subr.bf16.mxu1 %v9232_v51 }
 0x8e7   :  { %3397 = vmatprep.mubr.f32.mxu0 %v9213_v2  ;;  %3468 = vmatprep.mubr.f32.mxu1 %v9213_v2 }
 0x8e9   :  { %6349 = vmatpush1.bf16.msra.mxu0 %v9233_v57  ;;  %6381 = vmatpush1.bf16.msra.mxu1 %v9234_v15 }
 0x8ea   :  { %6351 = vmatprep.subr.bf16.mxu0 %v9235_v45  ;;  %6383 = vmatprep.subr.bf16.mxu1 %v9236_v1  ;;  %v9246_v45 = vld [vmem:[#allocation48_spill] sm:$0xff] }
 0x8ed   :  { %6353 = vmatpush1.bf16.msra.mxu0 %v9237_v60  ;;  %6385 = vmatpush1.bf16.msra.mxu1 %v9238_v8 }
 0x8ee   :  { %6355 = vmatprep.subr.bf16.mxu0 %v9239_v34  ;;  %6387 = vmatprep.subr.bf16.mxu1 %v9240_v3 }
 0x8f1   :  { %6357 = vmatpush1.bf16.msra.mxu0 %v9241_v20  ;;  %6389 = vmatpush1.bf16.msra.mxu1 %v9242_v58 }
 0x8f2   :  { %6359 = vmatprep.subr.bf16.mxu0 %v9243_v23  ;;  %6391 = vmatprep.subr.bf16.mxu1 %v9244_v9 }
 0x8f5   :  { %6361 = vmatpush1.bf16.msra.mxu0 %v9245_v33  ;;  %6393 = vmatpush1.bf16.msra.mxu1 %v9246_v45 }
 0x8f6   :  { %6363 = vmatprep.subr.bf16.mxu0 %v8439_v62  ;;  %6395 = vmatprep.subr.bf16.mxu1 %v8441_v32 }
 0x8f9   :  { %6365 = vmatpush1.bf16.msra.mxu0 %v8445_v47  ;;  %6397 = vmatpush1.bf16.msra.mxu1 %v8447_v50  ;;  %v3190_v50 = vld [vmem:[#allocation2 + $0x2] sm:$0x3] }
 0x8fa   :  { %6367 = vmatprep.subr.bf16.mxu0 %v8451_v27  ;;  %6399 = vmatprep.subr.bf16.mxu1 %v8453_v36 }
 0x8fd   :  { %6369 = vmatpush1.bf16.msra.mxu0 %v8457_v0  ;;  %6401 = vmatpush1.bf16.msra.mxu1 %v8459_v12 }
 0x8fe   :  { %6371 = vmatprep.subr.bf16.mxu0 %v8463_v16  ;;  %6403 = vmatprep.subr.bf16.mxu1 %v8465_v21 }
 0x901   :  { %6373 = vmatpush1.bf16.msra.mxu0 %v8469_v63  ;;  %6405 = vmatpush1.bf16.msra.mxu1 %v8471_v17 }
 0x902   :  { %6407 = vmatprep.subr.bf16.mxu0 %v8268_v48  ;;  %6439 = vmatprep.subr.bf16.mxu1 %v8270_v49 }
 0x904   :  { %3398 = vmatmul.mubr.f32.vlgmr.msra.gmra.mrb[18].mxu0 %v3190_v50  ;;  %3469 = vmatmul.mubr.f32.vlgmr.msra.gmra.mrb[26].mxu1 %v3190_v50  ;;  %v9247_v50 = vld [vmem:[#allocation27_spill] sm:$0xff] }
 0x905   :  { %6409 = vmatpush1.bf16.msra.mxu0 %v8283_v61  ;;  %6441 = vmatpush1.bf16.msra.mxu1 %v8285_v25 }
 0x906   :  { %6411 = vmatprep.subr.bf16.mxu0 %v8287_v30  ;;  %6443 = vmatprep.subr.bf16.mxu1 %v8289_v31 }
 0x907   :  { %3568 = vmatprep.mubr.f32.mxu0 %v9213_v2  ;;  %3639 = vmatprep.mubr.f32.mxu1 %v9213_v2 }
 0x909   :  { %6413 = vmatpush1.bf16.msra.mxu0 %v8295_v4  ;;  %6445 = vmatpush1.bf16.msra.mxu1 %v8297_v5 }
 0x90a   :  { %6415 = vmatprep.subr.bf16.mxu0 %v8301_v14  ;;  %6447 = vmatprep.subr.bf16.mxu1 %v8303_v18 }
 0x90d   :  { %6417 = vmatpush1.bf16.msra.mxu0 %v8309_v40  ;;  %6449 = vmatpush1.bf16.msra.mxu1 %v8311_v44 }
 0x90e   :  { %6419 = vmatprep.subr.bf16.mxu0 %v8315_v53  ;;  %6451 = vmatprep.subr.bf16.mxu1 %v8317_v56 }
 0x911   :  { %6421 = vmatpush1.bf16.msra.mxu0 %v8321_v24  ;;  %6453 = vmatpush1.bf16.msra.mxu1 %v8323_v29 }
 0x912   :  { %6423 = vmatprep.subr.bf16.mxu0 %v8327_v41  ;;  %6455 = vmatprep.subr.bf16.mxu1 %v8329_v43 }
 0x915   :  { %6425 = vmatpush1.bf16.msra.mxu0 %v8333_v22  ;;  %6457 = vmatpush1.bf16.msra.mxu1 %v8335_v26  ;;  %v9248_v26 = vld [vmem:[#allocation28_spill] sm:$0xff] }
 0x916   :  { %6427 = vmatprep.subr.bf16.mxu0 %v8339_v42  ;;  %6459 = vmatprep.subr.bf16.mxu1 %v8341_v38  ;;  %v9249_v42 = vld [vmem:[#allocation29_spill] sm:$0xff]  ;;  %v9250_v38 = vld [vmem:[#allocation30_spill] sm:$0xff] }
 0x919   :  { %6429 = vmatpush1.bf16.msra.mxu0 %v8345_v10  ;;  %6461 = vmatpush1.bf16.msra.mxu1 %v8347_v19  ;;  %v9251_v10 = vld [vmem:[#allocation31_spill] sm:$0xff] }
 0x91a   :  { %6431 = vmatprep.subr.bf16.mxu0 %v8351_v28  ;;  %6463 = vmatprep.subr.bf16.mxu1 %v8353_v35 }
 0x91d   :  { %6433 = vmatpush1.bf16.msra.mxu0 %v8357_v6  ;;  %6465 = vmatpush1.bf16.msra.mxu1 %v8359_v11 }
 0x91e   :  { %6435 = vmatprep.subr.bf16.mxu0 %v8363_v37  ;;  %6467 = vmatprep.subr.bf16.mxu1 %v9247_v50 }
 0x921   :  { %6437 = vmatpush1.bf16.msra.mxu0 %v9248_v26  ;;  %6469 = vmatpush1.bf16.msra.mxu1 %v9249_v42 }
 0x922   :  { %6471 = vmatprep.subr.bf16.mxu0 %v9250_v38  ;;  %6503 = vmatprep.subr.bf16.mxu1 %v9251_v10 }
 0x9d7   :  { %v3399_v19 = vpop.f32.mrb[18].mxu0  ;;  %v3470_v28 = vpop.f32.mrb[26].mxu1 }
 0x9d8   :  { %v3475_v35 = vadd.f32 %v3399_v19, %v8523_v52  ;;  %v3401_v22 = vpop.f32.mrb[19].mxu0  ;;  %v3472_v6 = vpop.f32.mrb[27].mxu1  ;;  %v3477_v42 = vadd.f32 %v3470_v28, %v8538_v39 }
 0x9d9   :  { %v3476_v11 = vadd.f32 %v3401_v22, %v8527_v13  ;;  %v3478_v26 = vadd.f32 %v3472_v6, %v8533_v46 }
 0x9da   :  { %v5564_v43 = vmul.f32 -1.442695, %v3475_v35 }
 0x9db   :  { %v5565_v37 = vmul.f32 -1.442695, %v3476_v11  ;;  %v5566_v50 = vmul.f32 -1.442695, %v3478_v26 }
 0x9dc   :  { %7416 = vpow2.f32 %v5564_v43 }
 0x9dd   :  { %7418 = vpow2.f32 %v5565_v37 }
 0x9de   :  { %7420 = vpow2.f32 %v5566_v50  ;;  %v9257_v50 = vld [vmem:[#allocation16_spill] sm:$0xff] }
 0x9df   :  { %7422 = vtanh.f32 %v3477_v42  ;;  %v3503_v42 = vld [vmem:[#allocation2 + $0x4] sm:$0x3] }
 0x9e6   :  { %v7417_v38 = vpop.eup %7416 }
 0x9e7   :  { %v7419_v41 = vpop.eup %7418  ;;  %v3482_v10 = vadd.f32 1.0, %v7417_v38 }
 0x9e8   :  { %v3488_v29 = vadd.f32 1.0, %v7419_v41  ;;  %v7421_v19 = vpop.eup %7420  ;;  %v9253_v41 = vld [vmem:[#allocation49_spill] sm:$0xff] }
 0x9e9   :  { %7424 = vrcp.f32 %v3482_v10  ;;  %v7423_v52 = vpop.eup %7422  ;;  %v3495_v43 = vadd.f32 1.0, %v7421_v19  ;;  %v9254_v10 = vld [vmem:[#allocation13_spill] sm:$0xff] }
 0x9ea   :  { %7426 = vrcp.f32 %v3488_v29  ;;  %v9252_v29 = vld [vmem:[#allocation37_spill] sm:$0xff] }
 0x9eb   :  { %7428 = vrcp.f32 %v3495_v43  ;;  %v9258_v19 = vld [vmem:[#allocation17_spill] sm:$0xff] }
 0x9ec   :  { %v9262_v43 = vld [vmem:[#allocation21_spill] sm:$0xff] }
 0x9f3   :  { %v7425_v22 = vpop.eup %7424 }
 0x9f4   :  { %v7427_v35 = vpop.eup %7426  ;;  %v3499_v11 = vmul.f32 %v7425_v22, %v7423_v52  ;;  %v9255_v52 = vld [vmem:[#allocation14_spill] sm:$0xff] }
 0x9f5   :  { %v3498_v37 = vmul.f32 %v7427_v35, %v8541_v55  ;;  %v7429_v26 = vpop.eup %7428  ;;  %v9256_v55 = vld [vmem:[#allocation15_spill] sm:$0xff]  ;;  %v9259_v22 = vld [vmem:[#allocation18_spill] sm:$0xff] }
 0x9f6   :  { %v9260_v35 = vld [vmem:[#allocation19_spill] sm:$0xff] }
 0x9f7   :  { %v8617_v6 = vadd.f32 %v3499_v11, %v3498_v37  ;;  %v9261_v11 = vld [vmem:[#allocation20_spill] sm:$0xff]  ;;  %v9263_v37 = vld [vmem:[#allocation22_spill] sm:$0xff] }
 0x9f9   :  { %7430 = vtanh.f32 %v8617_v6 }
 0xa03   :  { %v7431_v38 = vpop.eup %7430 }
 0xa04   :  { %v3502_v28 = vmul.f32 %v7431_v38, %v7429_v26  ;;  %v9264_v26 = vld [vmem:[#allocation23_spill] sm:$0xff]  ;;  %v9265_v38 = vld [vmem:[#allocation24_spill] sm:$0xff] }
 0xa06   :  { %3569 = vmatmul.mubr.f32.vlgmr.msra.gmra.mrb[20].mxu0 %v3502_v28  ;;  %3640 = vmatmul.mubr.f32.vlgmr.msra.gmra.mrb[28].mxu1 %v3502_v28  ;;  %v9266_v28 = vld [vmem:[#allocation25_spill] sm:$0xff] }
 0xa07   :  { %6473 = vmatpush1.bf16.msra.mxu0 %v8381_v59  ;;  %6505 = vmatpush1.bf16.msra.mxu1 %v9230_v54 }
 0xa08   :  { %6475 = vmatprep.subr.bf16.mxu0 %v9231_v7  ;;  %6507 = vmatprep.subr.bf16.mxu1 %v9232_v51 }
 0xa09   :  { %3710 = vmatprep.mubr.f32.mxu0 %v9213_v2  ;;  %3781 = vmatprep.mubr.f32.mxu1 %v9213_v2 }
 0xa0b   :  { %6477 = vmatpush1.bf16.msra.mxu0 %v9233_v57  ;;  %6509 = vmatpush1.bf16.msra.mxu1 %v9234_v15 }
 0xa0c   :  { %6479 = vmatprep.subr.bf16.mxu0 %v9252_v29  ;;  %6511 = vmatprep.subr.bf16.mxu1 %v9236_v1 }
 0xa0f   :  { %6481 = vmatpush1.bf16.msra.mxu0 %v9237_v60  ;;  %6513 = vmatpush1.bf16.msra.mxu1 %v9238_v8 }
 0xa10   :  { %6483 = vmatprep.subr.bf16.mxu0 %v9239_v34  ;;  %6515 = vmatprep.subr.bf16.mxu1 %v9240_v3 }
 0xa13   :  { %6485 = vmatpush1.bf16.msra.mxu0 %v9241_v20  ;;  %6517 = vmatpush1.bf16.msra.mxu1 %v9242_v58 }
 0xa14   :  { %6487 = vmatprep.subr.bf16.mxu0 %v9243_v23  ;;  %6519 = vmatprep.subr.bf16.mxu1 %v9244_v9 }
 0xa17   :  { %6489 = vmatpush1.bf16.msra.mxu0 %v9245_v33  ;;  %6521 = vmatpush1.bf16.msra.mxu1 %v9246_v45 }
 0xa18   :  { %6491 = vmatprep.subr.bf16.mxu0 %v8439_v62  ;;  %6523 = vmatprep.subr.bf16.mxu1 %v8441_v32 }
 0xa1b   :  { %6493 = vmatpush1.bf16.msra.mxu0 %v8445_v47  ;;  %6525 = vmatpush1.bf16.msra.mxu1 %v9253_v41 }
 0xa1c   :  { %6495 = vmatprep.subr.bf16.mxu0 %v8451_v27  ;;  %6527 = vmatprep.subr.bf16.mxu1 %v8453_v36 }
 0xa1f   :  { %6497 = vmatpush1.bf16.msra.mxu0 %v8457_v0  ;;  %6529 = vmatpush1.bf16.msra.mxu1 %v8459_v12 }
 0xa20   :  { %6499 = vmatprep.subr.bf16.mxu0 %v8463_v16  ;;  %6531 = vmatprep.subr.bf16.mxu1 %v8465_v21 }
 0xa23   :  { %6501 = vmatpush1.bf16.msra.mxu0 %v8469_v63  ;;  %6533 = vmatpush1.bf16.msra.mxu1 %v8471_v17 }
 0xa24   :  { %6535 = vmatprep.subr.bf16.mxu0 %v8268_v48  ;;  %6567 = vmatprep.subr.bf16.mxu1 %v8270_v49 }
 0xa26   :  { %3711 = vmatmul.mubr.f32.vlgmr.msra.gmra.mrb[20].mxu0 %v3503_v42  ;;  %3782 = vmatmul.mubr.f32.vlgmr.msra.gmra.mrb[28].mxu1 %v3503_v42  ;;  %v9267_v42 = vld [vmem:[#allocation26_spill] sm:$0xff] }
 0xa27   :  { %6537 = vmatpush1.bf16.msra.mxu0 %v8283_v61  ;;  %6569 = vmatpush1.bf16.msra.mxu1 %v8285_v25 }
 0xa28   :  { %6539 = vmatprep.subr.bf16.mxu0 %v8287_v30  ;;  %6571 = vmatprep.subr.bf16.mxu1 %v8289_v31 }
 0xa29   :  { %3881 = vmatprep.mubr.f32.mxu0 %v9213_v2  ;;  %3952 = vmatprep.mubr.f32.mxu1 %v9213_v2 }
 0xa2b   :  { %6541 = vmatpush1.bf16.msra.mxu0 %v8295_v4  ;;  %6573 = vmatpush1.bf16.msra.mxu1 %v8297_v5 }
 0xa2c   :  { %6543 = vmatprep.subr.bf16.mxu0 %v8301_v14  ;;  %6575 = vmatprep.subr.bf16.mxu1 %v8303_v18 }
 0xa2f   :  { %6545 = vmatpush1.bf16.msra.mxu0 %v8309_v40  ;;  %6577 = vmatpush1.bf16.msra.mxu1 %v8311_v44 }
 0xa30   :  { %6547 = vmatprep.subr.bf16.mxu0 %v8315_v53  ;;  %6579 = vmatprep.subr.bf16.mxu1 %v8317_v56 }
 0xa33   :  { %6549 = vmatpush1.bf16.msra.mxu0 %v8321_v24  ;;  %6581 = vmatpush1.bf16.msra.mxu1 %v9254_v10 }
 0xa34   :  { %6551 = vmatprep.subr.bf16.mxu0 %v9255_v52  ;;  %6583 = vmatprep.subr.bf16.mxu1 %v9256_v55  ;;  %v9273_v55 = vld [vmem:[#allocation50_spill] sm:$0xff] }
 0xa37   :  { %6553 = vmatpush1.bf16.msra.mxu0 %v9257_v50  ;;  %6585 = vmatpush1.bf16.msra.mxu1 %v9258_v19  ;;  %v9268_v50 = vld [vmem:[#allocation27_spill] sm:$0xff]  ;;  %v9269_v19 = vld [vmem:[#allocation28_spill] sm:$0xff] }
 0xa38   :  { %6555 = vmatprep.subr.bf16.mxu0 %v9259_v22  ;;  %6587 = vmatprep.subr.bf16.mxu1 %v9260_v35  ;;  %v9270_v22 = vld [vmem:[#allocation29_spill] sm:$0xff]  ;;  %v9271_v35 = vld [vmem:[#allocation30_spill] sm:$0xff] }
 0xa3b   :  { %6557 = vmatpush1.bf16.msra.mxu0 %v9261_v11  ;;  %6589 = vmatpush1.bf16.msra.mxu1 %v9262_v43  ;;  %v9272_v11 = vld [vmem:[#allocation31_spill] sm:$0xff] }
 0xa3c   :  { %6559 = vmatprep.subr.bf16.mxu0 %v9263_v37  ;;  %6591 = vmatprep.subr.bf16.mxu1 %v9264_v26 }
 0xa3f   :  { %6561 = vmatpush1.bf16.msra.mxu0 %v9265_v38  ;;  %6593 = vmatpush1.bf16.msra.mxu1 %v9266_v28 }
 0xa40   :  { %6563 = vmatprep.subr.bf16.mxu0 %v9267_v42  ;;  %6595 = vmatprep.subr.bf16.mxu1 %v9268_v50 }
 0xa43   :  { %6565 = vmatpush1.bf16.msra.mxu0 %v9269_v19  ;;  %6597 = vmatpush1.bf16.msra.mxu1 %v9270_v22 }
 0xa44   :  { %6599 = vmatprep.subr.bf16.mxu0 %v9271_v35  ;;  %6631 = vmatprep.subr.bf16.mxu1 %v9272_v11 }
 0xaf9   :  { %v3712_v43 = vpop.f32.mrb[20].mxu0  ;;  %v3783_v37 = vpop.f32.mrb[28].mxu1 }
 0xafa   :  { %v3788_v26 = vadd.f32 %v3712_v43, %v9273_v55  ;;  %v3714_v52 = vpop.f32.mrb[21].mxu0  ;;  %v3785_v38 = vpop.f32.mrb[29].mxu1  ;;  %v3790_v22 = vadd.f32 %v3783_v37, %v8538_v39  ;;  %v9279_v37 = vld [vmem:[#allocation16_spill] sm:$0xff] }
 0xafb   :  { %v3789_v28 = vadd.f32 %v3714_v52, %v8527_v13  ;;  %v3791_v19 = vadd.f32 %v3785_v38, %v8533_v46 }
 0xafc   :  { %v5567_v10 = vmul.f32 -1.442695, %v3788_v26 }
 0xafd   :  { %v5568_v42 = vmul.f32 -1.442695, %v3789_v28  ;;  %v5569_v50 = vmul.f32 -1.442695, %v3791_v19 }
 0xafe   :  { %7432 = vpow2.f32 %v5567_v10 }
 0xaff   :  { %7434 = vpow2.f32 %v5568_v42 }
 0xb00   :  { %7436 = vpow2.f32 %v5569_v50 }
 0xb01   :  { %7438 = vtanh.f32 %v3790_v22  ;;  %v9277_v22 = vld [vmem:[#allocation14_spill] sm:$0xff] }
 0xb08   :  { %v7433_v35 = vpop.eup %7432 }
 0xb09   :  { %v7435_v24 = vpop.eup %7434  ;;  %v3795_v11 = vadd.f32 1.0, %v7433_v35 }
 0xb0a   :  { %v3801_v56 = vadd.f32 1.0, %v7435_v24  ;;  %v7437_v43 = vpop.eup %7436  ;;  %v9274_v24 = vld [vmem:[#allocation11_spill] sm:$0xff] }
 0xb0b   :  { %7440 = vrcp.f32 %v3795_v11  ;;  %v7439_v55 = vpop.eup %7438  ;;  %v3808_v10 = vadd.f32 1.0, %v7437_v43  ;;  %v9278_v11 = vld [vmem:[#allocation15_spill] sm:$0xff]  ;;  %v9280_v43 = vld [vmem:[#allocation17_spill] sm:$0xff] }
 0xb0c   :  { %7442 = vrcp.f32 %v3801_v56  ;;  %v3816_v56 = vld [vmem:[#allocation2 + $0x6] sm:$0x3] }
 0xb0d   :  { %7444 = vrcp.f32 %v3808_v10  ;;  %v9284_v10 = vld [vmem:[#allocation21_spill] sm:$0xff] }
 0xb15   :  { %v7441_v52 = vpop.eup %7440 }
 0xb16   :  { %v7443_v26 = vpop.eup %7442  ;;  %v3812_v28 = vmul.f32 %v7441_v52, %v7439_v55  ;;  %v9276_v55 = vld [vmem:[#allocation13_spill] sm:$0xff]  ;;  %v9281_v52 = vld [vmem:[#allocation18_spill] sm:$0xff] }
 0xb17   :  { %v3811_v42 = vmul.f32 %v7443_v26, %v8617_v6  ;;  %v7445_v19 = vpop.eup %7444  ;;  %v9275_v6 = vld [vmem:[#allocation12_spill] sm:$0xff]  ;;  %v9282_v26 = vld [vmem:[#allocation19_spill] sm:$0xff] }
 0xb19   :  { %v8693_v38 = vadd.f32 %v3812_v28, %v3811_v42  ;;  %v9283_v28 = vld [vmem:[#allocation20_spill] sm:$0xff]  ;;  %v9285_v42 = vld [vmem:[#allocation22_spill] sm:$0xff] }
 0xb1b   :  { %7446 = vtanh.f32 %v8693_v38 }
 0xb25   :  { %v7447_v35 = vpop.eup %7446 }
 0xb26   :  { %v3815_v50 = vmul.f32 %v7447_v35, %v7445_v19  ;;  %v9286_v19 = vld [vmem:[#allocation23_spill] sm:$0xff]  ;;  %v9287_v35 = vld [vmem:[#allocation24_spill] sm:$0xff] }
 0xb28   :  { %3882 = vmatmul.mubr.f32.vlgmr.msra.gmra.mrb[22].mxu0 %v3815_v50  ;;  %3953 = vmatmul.mubr.f32.vlgmr.msra.gmra.mrb[30].mxu1 %v3815_v50  ;;  %v9288_v50 = vld [vmem:[#allocation25_spill] sm:$0xff] }
 0xb29   :  { %6601 = vmatpush1.bf16.msra.mxu0 %v8381_v59  ;;  %6633 = vmatpush1.bf16.msra.mxu1 %v9230_v54 }
 0xb2a   :  { %6603 = vmatprep.subr.bf16.mxu0 %v9231_v7  ;;  %6635 = vmatprep.subr.bf16.mxu1 %v9232_v51 }
 0xb2b   :  { %4023 = vmatprep.mubr.f32.mxu0 %v9213_v2  ;;  %4094 = vmatprep.mubr.f32.mxu1 %v9213_v2 }
 0xb2d   :  { %6605 = vmatpush1.bf16.msra.mxu0 %v9233_v57  ;;  %6637 = vmatpush1.bf16.msra.mxu1 %v9234_v15 }
 0xb2e   :  { %6607 = vmatprep.subr.bf16.mxu0 %v9252_v29  ;;  %6639 = vmatprep.subr.bf16.mxu1 %v9236_v1 }
 0xb31   :  { %6609 = vmatpush1.bf16.msra.mxu0 %v9237_v60  ;;  %6641 = vmatpush1.bf16.msra.mxu1 %v9238_v8 }
 0xb32   :  { %6611 = vmatprep.subr.bf16.mxu0 %v9239_v34  ;;  %6643 = vmatprep.subr.bf16.mxu1 %v9240_v3 }
 0xb35   :  { %6613 = vmatpush1.bf16.msra.mxu0 %v9241_v20  ;;  %6645 = vmatpush1.bf16.msra.mxu1 %v9242_v58 }
 0xb36   :  { %6615 = vmatprep.subr.bf16.mxu0 %v9243_v23  ;;  %6647 = vmatprep.subr.bf16.mxu1 %v9244_v9 }
 0xb39   :  { %6617 = vmatpush1.bf16.msra.mxu0 %v9245_v33  ;;  %6649 = vmatpush1.bf16.msra.mxu1 %v9246_v45 }
 0xb3a   :  { %6619 = vmatprep.subr.bf16.mxu0 %v8439_v62  ;;  %6651 = vmatprep.subr.bf16.mxu1 %v8441_v32 }
 0xb3d   :  { %6621 = vmatpush1.bf16.msra.mxu0 %v8445_v47  ;;  %6653 = vmatpush1.bf16.msra.mxu1 %v9253_v41 }
 0xb3e   :  { %6623 = vmatprep.subr.bf16.mxu0 %v8451_v27  ;;  %6655 = vmatprep.subr.bf16.mxu1 %v8453_v36 }
 0xb41   :  { %6625 = vmatpush1.bf16.msra.mxu0 %v8457_v0  ;;  %6657 = vmatpush1.bf16.msra.mxu1 %v8459_v12 }
 0xb42   :  { %6627 = vmatprep.subr.bf16.mxu0 %v8463_v16  ;;  %6659 = vmatprep.subr.bf16.mxu1 %v8465_v21 }
 0xb45   :  { %6629 = vmatpush1.bf16.msra.mxu0 %v8469_v63  ;;  %6661 = vmatpush1.bf16.msra.mxu1 %v8471_v17 }
 0xb46   :  { %6663 = vmatprep.subr.bf16.mxu0 %v8268_v48  ;;  %6695 = vmatprep.subr.bf16.mxu1 %v8270_v49 }
 0xb48   :  { %4024 = vmatmul.mubr.f32.vlgmr.msra.gmra.mrb[22].mxu0 %v3816_v56  ;;  %4095 = vmatmul.mubr.f32.vlgmr.msra.gmra.mrb[30].mxu1 %v3816_v56  ;;  %v9289_v56 = vld [vmem:[#allocation26_spill] sm:$0xff] }
 0xb49   :  { %6665 = vmatpush1.bf16.msra.mxu0 %v8283_v61  ;;  %6697 = vmatpush1.bf16.msra.mxu1 %v8285_v25 }
 0xb4a   :  { %6667 = vmatprep.subr.bf16.mxu0 %v8287_v30  ;;  %6699 = vmatprep.subr.bf16.mxu1 %v8289_v31 }
 0xb4b   :  { %4194 = vmatprep.mubr.f32.mxu0 %v9213_v2  ;;  %4265 = vmatprep.mubr.f32.mxu1 %v9213_v2 }
 0xb4d   :  { %6669 = vmatpush1.bf16.msra.mxu0 %v8295_v4  ;;  %6701 = vmatpush1.bf16.msra.mxu1 %v8297_v5 }
 0xb4e   :  { %6671 = vmatprep.subr.bf16.mxu0 %v8301_v14  ;;  %6703 = vmatprep.subr.bf16.mxu1 %v8303_v18 }
 0xb51   :  { %6673 = vmatpush1.bf16.msra.mxu0 %v8309_v40  ;;  %6705 = vmatpush1.bf16.msra.mxu1 %v8311_v44 }
 0xb52   :  { %6675 = vmatprep.subr.bf16.mxu0 %v8315_v53  ;;  %6707 = vmatprep.subr.bf16.mxu1 %v9274_v24 }
 0xb55   :  { %6677 = vmatpush1.bf16.msra.mxu0 %v9275_v6  ;;  %6709 = vmatpush1.bf16.msra.mxu1 %v9276_v55 }
 0xb56   :  { %6679 = vmatprep.subr.bf16.mxu0 %v9277_v22  ;;  %6711 = vmatprep.subr.bf16.mxu1 %v9278_v11  ;;  %v9295_v11 = vld [vmem:[#allocation50_spill] sm:$0xff] }
 0xb59   :  { %6681 = vmatpush1.bf16.msra.mxu0 %v9279_v37  ;;  %6713 = vmatpush1.bf16.msra.mxu1 %v9280_v43  ;;  %v9290_v37 = vld [vmem:[#allocation27_spill] sm:$0xff]  ;;  %v9291_v43 = vld [vmem:[#allocation28_spill] sm:$0xff] }
 0xb5a   :  { %6683 = vmatprep.subr.bf16.mxu0 %v9281_v52  ;;  %6715 = vmatprep.subr.bf16.mxu1 %v9282_v26  ;;  %v9292_v52 = vld [vmem:[#allocation29_spill] sm:$0xff]  ;;  %v9293_v26 = vld [vmem:[#allocation30_spill] sm:$0xff] }
 0xb5d   :  { %6685 = vmatpush1.bf16.msra.mxu0 %v9283_v28  ;;  %6717 = vmatpush1.bf16.msra.mxu1 %v9284_v10  ;;  %v9294_v28 = vld [vmem:[#allocation31_spill] sm:$0xff] }
 0xb5e   :  { %6687 = vmatprep.subr.bf16.mxu0 %v9285_v42  ;;  %6719 = vmatprep.subr.bf16.mxu1 %v9286_v19 }
 0xb61   :  { %6689 = vmatpush1.bf16.msra.mxu0 %v9287_v35  ;;  %6721 = vmatpush1.bf16.msra.mxu1 %v9288_v50 }
 0xb62   :  { %6691 = vmatprep.subr.bf16.mxu0 %v9289_v56  ;;  %6723 = vmatprep.subr.bf16.mxu1 %v9290_v37 }
 0xb65   :  { %6693 = vmatpush1.bf16.msra.mxu0 %v9291_v43  ;;  %6725 = vmatpush1.bf16.msra.mxu1 %v9292_v52 }
 0xb66   :  { %6727 = vmatprep.subr.bf16.mxu0 %v9293_v26  ;;  %6759 = vmatprep.subr.bf16.mxu1 %v9294_v28 }
 0xc1b   :  { %v4025_v10 = vpop.f32.mrb[22].mxu0  ;;  %v4096_v42 = vpop.f32.mrb[30].mxu1 }
 0xc1c   :  { %v4101_v19 = vadd.f32 %v4025_v10, %v9295_v11  ;;  %v4027_v22 = vpop.f32.mrb[23].mxu0  ;;  %v4098_v35 = vpop.f32.mrb[31].mxu1  ;;  %v4103_v52 = vadd.f32 %v4096_v42, %v8538_v39  ;;  %v9301_v42 = vld [vmem:[#allocation16_spill] sm:$0xff] }
 0xc1d   :  { %v4102_v50 = vadd.f32 %v4027_v22, %v8527_v13  ;;  %v4104_v43 = vadd.f32 %v4098_v35, %v8533_v46 }
 0xc1e   :  { %v5570_v55 = vmul.f32 -1.442695, %v4101_v19 }
 0xc1f   :  { %v5571_v56 = vmul.f32 -1.442695, %v4102_v50  ;;  %v5572_v37 = vmul.f32 -1.442695, %v4104_v43 }
 0xc20   :  { %7448 = vpow2.f32 %v5570_v55 }
 0xc21   :  { %7450 = vpow2.f32 %v5571_v56 }
 0xc22   :  { %7452 = vpow2.f32 %v5572_v37 }
 0xc23   :  { %7454 = vtanh.f32 %v4103_v52  ;;  %v9299_v52 = vld [vmem:[#allocation14_spill] sm:$0xff] }
 0xc2a   :  { %v7449_v26 = vpop.eup %7448 }
 0xc2b   :  { %v7451_v6 = vpop.eup %7450  ;;  %v4108_v28 = vadd.f32 1.0, %v7449_v26 }
 0xc2c   :  { %v4114_v24 = vadd.f32 1.0, %v7451_v6  ;;  %v7453_v10 = vpop.eup %7452  ;;  %v9297_v6 = vld [vmem:[#allocation12_spill] sm:$0xff] }
 0xc2d   :  { %7456 = vrcp.f32 %v4108_v28  ;;  %v7455_v11 = vpop.eup %7454  ;;  %v4121_v55 = vadd.f32 1.0, %v7453_v10  ;;  %v9300_v28 = vld [vmem:[#allocation15_spill] sm:$0xff]  ;;  %v9302_v10 = vld [vmem:[#allocation17_spill] sm:$0xff] }
 0xc2e   :  { %7458 = vrcp.f32 %v4114_v24  ;;  %v9296_v24 = vld [vmem:[#allocation11_spill] sm:$0xff] }
 0xc2f   :  { %7460 = vrcp.f32 %v4121_v55  ;;  %v9306_v55 = vld [vmem:[#allocation21_spill] sm:$0xff] }
 0xc37   :  { %v7457_v22 = vpop.eup %7456 }
 0xc38   :  { %v7459_v19 = vpop.eup %7458  ;;  %v4125_v50 = vmul.f32 %v7457_v22, %v7455_v11  ;;  %v9298_v11 = vld [vmem:[#allocation13_spill] sm:$0xff]  ;;  %v9303_v22 = vld [vmem:[#allocation18_spill] sm:$0xff] }
 0xc39   :  { %v4124_v56 = vmul.f32 %v7459_v19, %v8693_v38  ;;  %v7461_v43 = vpop.eup %7460  ;;  %v4129_v38 = vld [vmem:[#allocation2 + $0x8] sm:$0x3]  ;;  %v9304_v19 = vld [vmem:[#allocation19_spill] sm:$0xff] }
 0xc3b   :  { %v8769_v35 = vadd.f32 %v4125_v50, %v4124_v56  ;;  %v9305_v50 = vld [vmem:[#allocation20_spill] sm:$0xff]  ;;  %v9307_v56 = vld [vmem:[#allocation22_spill] sm:$0xff] }
 0xc3d   :  { %7462 = vtanh.f32 %v8769_v35 }
 0xc47   :  { %v7463_v26 = vpop.eup %7462 }
 0xc48   :  { %v4128_v37 = vmul.f32 %v7463_v26, %v7461_v43  ;;  %v9308_v43 = vld [vmem:[#allocation23_spill] sm:$0xff]  ;;  %v9309_v26 = vld [vmem:[#allocation24_spill] sm:$0xff] }
 0xc4a   :  { %4195 = vmatmul.mubr.f32.vlgmr.msra.gmra.mrb[24].mxu0 %v4128_v37  ;;  %4266 = vmatmul.mubr.f32.vlgmr.msra.gmra.mrb[32].mxu1 %v4128_v37  ;;  %v9310_v37 = vld [vmem:[#allocation25_spill] sm:$0xff] }
 0xc4b   :  { %6729 = vmatpush1.bf16.msra.mxu0 %v8381_v59  ;;  %6761 = vmatpush1.bf16.msra.mxu1 %v9230_v54 }
 0xc4c   :  { %6731 = vmatprep.subr.bf16.mxu0 %v9231_v7  ;;  %6763 = vmatprep.subr.bf16.mxu1 %v9232_v51 }
 0xc4d   :  { %4336 = vmatprep.mubr.f32.mxu0 %v9213_v2  ;;  %4407 = vmatprep.mubr.f32.mxu1 %v9213_v2 }
 0xc4f   :  { %6733 = vmatpush1.bf16.msra.mxu0 %v9233_v57  ;;  %6765 = vmatpush1.bf16.msra.mxu1 %v9234_v15 }
 0xc50   :  { %6735 = vmatprep.subr.bf16.mxu0 %v9252_v29  ;;  %6767 = vmatprep.subr.bf16.mxu1 %v9236_v1 }
 0xc53   :  { %6737 = vmatpush1.bf16.msra.mxu0 %v9237_v60  ;;  %6769 = vmatpush1.bf16.msra.mxu1 %v9238_v8 }
 0xc54   :  { %6739 = vmatprep.subr.bf16.mxu0 %v9239_v34  ;;  %6771 = vmatprep.subr.bf16.mxu1 %v9240_v3 }
 0xc57   :  { %6741 = vmatpush1.bf16.msra.mxu0 %v9241_v20  ;;  %6773 = vmatpush1.bf16.msra.mxu1 %v9242_v58 }
 0xc58   :  { %6743 = vmatprep.subr.bf16.mxu0 %v9243_v23  ;;  %6775 = vmatprep.subr.bf16.mxu1 %v9244_v9 }
 0xc5b   :  { %6745 = vmatpush1.bf16.msra.mxu0 %v9245_v33  ;;  %6777 = vmatpush1.bf16.msra.mxu1 %v9246_v45 }
 0xc5c   :  { %6747 = vmatprep.subr.bf16.mxu0 %v8439_v62  ;;  %6779 = vmatprep.subr.bf16.mxu1 %v8441_v32 }
 0xc5f   :  { %6749 = vmatpush1.bf16.msra.mxu0 %v8445_v47  ;;  %6781 = vmatpush1.bf16.msra.mxu1 %v9253_v41 }
 0xc60   :  { %6751 = vmatprep.subr.bf16.mxu0 %v8451_v27  ;;  %6783 = vmatprep.subr.bf16.mxu1 %v8453_v36 }
 0xc63   :  { %6753 = vmatpush1.bf16.msra.mxu0 %v8457_v0  ;;  %6785 = vmatpush1.bf16.msra.mxu1 %v8459_v12 }
 0xc64   :  { %6755 = vmatprep.subr.bf16.mxu0 %v8463_v16  ;;  %6787 = vmatprep.subr.bf16.mxu1 %v8465_v21 }
 0xc67   :  { %6757 = vmatpush1.bf16.msra.mxu0 %v8469_v63  ;;  %6789 = vmatpush1.bf16.msra.mxu1 %v8471_v17 }
 0xc68   :  { %6791 = vmatprep.subr.bf16.mxu0 %v8268_v48  ;;  %6823 = vmatprep.subr.bf16.mxu1 %v8270_v49 }
 0xc6a   :  { %4337 = vmatmul.mubr.f32.vlgmr.msra.gmra.mrb[24].mxu0 %v4129_v38  ;;  %4408 = vmatmul.mubr.f32.vlgmr.msra.gmra.mrb[32].mxu1 %v4129_v38  ;;  %v9311_v38 = vld [vmem:[#allocation26_spill] sm:$0xff] }
 0xc6b   :  { %6793 = vmatpush1.bf16.msra.mxu0 %v8283_v61  ;;  %6825 = vmatpush1.bf16.msra.mxu1 %v8285_v25 }
 0xc6c   :  { %6795 = vmatprep.subr.bf16.mxu0 %v8287_v30  ;;  %6827 = vmatprep.subr.bf16.mxu1 %v8289_v31 }
 0xc6d   :  { %4507 = vmatprep.mubr.f32.mxu0 %v9213_v2  ;;  %4578 = vmatprep.mubr.f32.mxu1 %v9213_v2 }
 0xc6f   :  { %6797 = vmatpush1.bf16.msra.mxu0 %v8295_v4  ;;  %6829 = vmatpush1.bf16.msra.mxu1 %v8297_v5 }
 0xc70   :  { %6799 = vmatprep.subr.bf16.mxu0 %v8301_v14  ;;  %6831 = vmatprep.subr.bf16.mxu1 %v8303_v18 }
 0xc73   :  { %6801 = vmatpush1.bf16.msra.mxu0 %v8309_v40  ;;  %6833 = vmatpush1.bf16.msra.mxu1 %v8311_v44 }
 0xc74   :  { %6803 = vmatprep.subr.bf16.mxu0 %v8315_v53  ;;  %6835 = vmatprep.subr.bf16.mxu1 %v9296_v24 }
 0xc77   :  { %6805 = vmatpush1.bf16.msra.mxu0 %v9297_v6  ;;  %6837 = vmatpush1.bf16.msra.mxu1 %v9298_v11 }
 0xc78   :  { %6807 = vmatprep.subr.bf16.mxu0 %v9299_v52  ;;  %6839 = vmatprep.subr.bf16.mxu1 %v9300_v28  ;;  %v9317_v28 = vld [vmem:[#allocation50_spill] sm:$0xff] }
 0xc7b   :  { %6809 = vmatpush1.bf16.msra.mxu0 %v9301_v42  ;;  %6841 = vmatpush1.bf16.msra.mxu1 %v9302_v10  ;;  %v9312_v42 = vld [vmem:[#allocation27_spill] sm:$0xff]  ;;  %v9313_v10 = vld [vmem:[#allocation28_spill] sm:$0xff] }
 0xc7c   :  { %6811 = vmatprep.subr.bf16.mxu0 %v9303_v22  ;;  %6843 = vmatprep.subr.bf16.mxu1 %v9304_v19  ;;  %v9314_v22 = vld [vmem:[#allocation29_spill] sm:$0xff]  ;;  %v9315_v19 = vld [vmem:[#allocation30_spill] sm:$0xff] }
 0xc7f   :  { %6813 = vmatpush1.bf16.msra.mxu0 %v9305_v50  ;;  %6845 = vmatpush1.bf16.msra.mxu1 %v9306_v55  ;;  %v9316_v50 = vld [vmem:[#allocation31_spill] sm:$0xff] }
 0xc80   :  { %6815 = vmatprep.subr.bf16.mxu0 %v9307_v56  ;;  %6847 = vmatprep.subr.bf16.mxu1 %v9308_v43 }
 0xc83   :  { %6817 = vmatpush1.bf16.msra.mxu0 %v9309_v26  ;;  %6849 = vmatpush1.bf16.msra.mxu1 %v9310_v37 }
 0xc84   :  { %6819 = vmatprep.subr.bf16.mxu0 %v9311_v38  ;;  %6851 = vmatprep.subr.bf16.mxu1 %v9312_v42 }
 0xc87   :  { %6821 = vmatpush1.bf16.msra.mxu0 %v9313_v10  ;;  %6853 = vmatpush1.bf16.msra.mxu1 %v9314_v22 }
 0xc88   :  { %6855 = vmatprep.subr.bf16.mxu0 %v9315_v19  ;;  %6887 = vmatprep.subr.bf16.mxu1 %v9316_v50 }
 0xd3d   :  { %v4338_v55 = vpop.f32.mrb[24].mxu0  ;;  %v4409_v56 = vpop.f32.mrb[32].mxu1 }
 0xd3e   :  { %v4414_v43 = vadd.f32 %v4338_v55, %v9317_v28  ;;  %v4340_v52 = vpop.f32.mrb[25].mxu0  ;;  %v4411_v26 = vpop.f32.mrb[33].mxu1  ;;  %v4416_v22 = vadd.f32 %v4409_v56, %v8538_v39  ;;  %v9323_v56 = vld [vmem:[#allocation16_spill] sm:$0xff] }
 0xd3f   :  { %v4415_v37 = vadd.f32 %v4340_v52, %v8527_v13  ;;  %v4417_v10 = vadd.f32 %v4411_v26, %v8533_v46 }
 0xd40   :  { %v5573_v11 = vmul.f32 -1.442695, %v4414_v43 }
 0xd41   :  { %v5574_v38 = vmul.f32 -1.442695, %v4415_v37  ;;  %v5575_v42 = vmul.f32 -1.442695, %v4417_v10 }
 0xd42   :  { %7464 = vpow2.f32 %v5573_v11 }
 0xd43   :  { %7466 = vpow2.f32 %v5574_v38 }
 0xd44   :  { %7468 = vpow2.f32 %v5575_v42 }
 0xd45   :  { %7470 = vtanh.f32 %v4416_v22  ;;  %v9321_v22 = vld [vmem:[#allocation14_spill] sm:$0xff] }
 0xd4c   :  { %v7465_v19 = vpop.eup %7464 }
 0xd4d   :  { %v7467_v6 = vpop.eup %7466  ;;  %v4421_v50 = vadd.f32 1.0, %v7465_v19 }
 0xd4e   :  { %v4427_v24 = vadd.f32 1.0, %v7467_v6  ;;  %v7469_v55 = vpop.eup %7468  ;;  %v9319_v6 = vld [vmem:[#allocation12_spill] sm:$0xff] }
 0xd4f   :  { %7472 = vrcp.f32 %v4421_v50  ;;  %v7471_v28 = vpop.eup %7470  ;;  %v4434_v11 = vadd.f32 1.0, %v7469_v55  ;;  %v9322_v50 = vld [vmem:[#allocation15_spill] sm:$0xff]  ;;  %v9324_v55 = vld [vmem:[#allocation17_spill] sm:$0xff] }
 0xd50   :  { %7474 = vrcp.f32 %v4427_v24  ;;  %v9318_v24 = vld [vmem:[#allocation11_spill] sm:$0xff] }
 0xd51   :  { %7476 = vrcp.f32 %v4434_v11  ;;  %v9328_v11 = vld [vmem:[#allocation21_spill] sm:$0xff] }
 0xd59   :  { %v7473_v52 = vpop.eup %7472 }
 0xd5a   :  { %v7475_v43 = vpop.eup %7474  ;;  %v4438_v37 = vmul.f32 %v7473_v52, %v7471_v28  ;;  %v9320_v28 = vld [vmem:[#allocation13_spill] sm:$0xff]  ;;  %v9325_v52 = vld [vmem:[#allocation18_spill] sm:$0xff] }
 0xd5b   :  { %v4437_v38 = vmul.f32 %v7475_v43, %v8769_v35  ;;  %v7477_v10 = vpop.eup %7476  ;;  %v4442_v35 = vld [vmem:[#allocation2 + $0xa] sm:$0x3]  ;;  %v9326_v43 = vld [vmem:[#allocation19_spill] sm:$0xff] }
 0xd5d   :  { %v8845_v26 = vadd.f32 %v4438_v37, %v4437_v38  ;;  %v9327_v37 = vld [vmem:[#allocation20_spill] sm:$0xff]  ;;  %v9329_v38 = vld [vmem:[#allocation22_spill] sm:$0xff] }
 0xd5f   :  { %7478 = vtanh.f32 %v8845_v26 }
 0xd69   :  { %v7479_v19 = vpop.eup %7478 }
 0xd6a   :  { %v4441_v42 = vmul.f32 %v7479_v19, %v7477_v10  ;;  %v9330_v10 = vld [vmem:[#allocation23_spill] sm:$0xff]  ;;  %v9331_v19 = vld [vmem:[#allocation24_spill] sm:$0xff] }
 0xd6c   :  { %4508 = vmatmul.mubr.f32.vlgmr.msra.gmra.mrb[26].mxu0 %v4441_v42  ;;  %4579 = vmatmul.mubr.f32.vlgmr.msra.gmra.mrb[34].mxu1 %v4441_v42  ;;  %v9332_v42 = vld [vmem:[#allocation25_spill] sm:$0xff] }
 0xd6d   :  { %6857 = vmatpush1.bf16.msra.mxu0 %v8381_v59  ;;  %6889 = vmatpush1.bf16.msra.mxu1 %v9230_v54 }
 0xd6e   :  { %6859 = vmatprep.subr.bf16.mxu0 %v9231_v7  ;;  %6891 = vmatprep.subr.bf16.mxu1 %v9232_v51 }
 0xd6f   :  { %4649 = vmatprep.mubr.f32.mxu0 %v9213_v2  ;;  %4720 = vmatprep.mubr.f32.mxu1 %v9213_v2 }
 0xd71   :  { %6861 = vmatpush1.bf16.msra.mxu0 %v9233_v57  ;;  %6893 = vmatpush1.bf16.msra.mxu1 %v9234_v15 }
 0xd72   :  { %6863 = vmatprep.subr.bf16.mxu0 %v9252_v29  ;;  %6895 = vmatprep.subr.bf16.mxu1 %v9236_v1 }
 0xd75   :  { %6865 = vmatpush1.bf16.msra.mxu0 %v9237_v60  ;;  %6897 = vmatpush1.bf16.msra.mxu1 %v9238_v8 }
 0xd76   :  { %6867 = vmatprep.subr.bf16.mxu0 %v9239_v34  ;;  %6899 = vmatprep.subr.bf16.mxu1 %v9240_v3 }
 0xd79   :  { %6869 = vmatpush1.bf16.msra.mxu0 %v9241_v20  ;;  %6901 = vmatpush1.bf16.msra.mxu1 %v9242_v58 }
 0xd7a   :  { %6871 = vmatprep.subr.bf16.mxu0 %v9243_v23  ;;  %6903 = vmatprep.subr.bf16.mxu1 %v9244_v9 }
 0xd7d   :  { %6873 = vmatpush1.bf16.msra.mxu0 %v9245_v33  ;;  %6905 = vmatpush1.bf16.msra.mxu1 %v9246_v45 }
 0xd7e   :  { %6875 = vmatprep.subr.bf16.mxu0 %v8439_v62  ;;  %6907 = vmatprep.subr.bf16.mxu1 %v8441_v32 }
 0xd81   :  { %6877 = vmatpush1.bf16.msra.mxu0 %v8445_v47  ;;  %6909 = vmatpush1.bf16.msra.mxu1 %v9253_v41 }
 0xd82   :  { %6879 = vmatprep.subr.bf16.mxu0 %v8451_v27  ;;  %6911 = vmatprep.subr.bf16.mxu1 %v8453_v36 }
 0xd85   :  { %6881 = vmatpush1.bf16.msra.mxu0 %v8457_v0  ;;  %6913 = vmatpush1.bf16.msra.mxu1 %v8459_v12 }
 0xd86   :  { %6883 = vmatprep.subr.bf16.mxu0 %v8463_v16  ;;  %6915 = vmatprep.subr.bf16.mxu1 %v8465_v21 }
 0xd89   :  { %6885 = vmatpush1.bf16.msra.mxu0 %v8469_v63  ;;  %6917 = vmatpush1.bf16.msra.mxu1 %v8471_v17 }
 0xd8a   :  { %6919 = vmatprep.subr.bf16.mxu0 %v8268_v48  ;;  %6951 = vmatprep.subr.bf16.mxu1 %v8270_v49 }
 0xd8c   :  { %4650 = vmatmul.mubr.f32.vlgmr.msra.gmra.mrb[26].mxu0 %v4442_v35  ;;  %4721 = vmatmul.mubr.f32.vlgmr.msra.gmra.mrb[34].mxu1 %v4442_v35  ;;  %v9333_v35 = vld [vmem:[#allocation26_spill] sm:$0xff] }
 0xd8d   :  { %6921 = vmatpush1.bf16.msra.mxu0 %v8283_v61  ;;  %6953 = vmatpush1.bf16.msra.mxu1 %v8285_v25 }
 0xd8e   :  { %6923 = vmatprep.subr.bf16.mxu0 %v8287_v30  ;;  %6955 = vmatprep.subr.bf16.mxu1 %v8289_v31 }
 0xd8f   :  { %4820 = vmatprep.mubr.f32.mxu0 %v9213_v2  ;;  %4891 = vmatprep.mubr.f32.mxu1 %v9213_v2 }
 0xd91   :  { %6925 = vmatpush1.bf16.msra.mxu0 %v8295_v4  ;;  %6957 = vmatpush1.bf16.msra.mxu1 %v8297_v5 }
 0xd92   :  { %6927 = vmatprep.subr.bf16.mxu0 %v8301_v14  ;;  %6959 = vmatprep.subr.bf16.mxu1 %v8303_v18 }
 0xd95   :  { %6929 = vmatpush1.bf16.msra.mxu0 %v8309_v40  ;;  %6961 = vmatpush1.bf16.msra.mxu1 %v8311_v44 }
 0xd96   :  { %6931 = vmatprep.subr.bf16.mxu0 %v8315_v53  ;;  %6963 = vmatprep.subr.bf16.mxu1 %v9318_v24 }
 0xd99   :  { %6933 = vmatpush1.bf16.msra.mxu0 %v9319_v6  ;;  %6965 = vmatpush1.bf16.msra.mxu1 %v9320_v28 }
 0xd9a   :  { %6935 = vmatprep.subr.bf16.mxu0 %v9321_v22  ;;  %6967 = vmatprep.subr.bf16.mxu1 %v9322_v50  ;;  %v9339_v50 = vld [vmem:[#allocation50_spill] sm:$0xff] }
 0xd9d   :  { %6937 = vmatpush1.bf16.msra.mxu0 %v9323_v56  ;;  %6969 = vmatpush1.bf16.msra.mxu1 %v9324_v55  ;;  %v9334_v56 = vld [vmem:[#allocation27_spill] sm:$0xff]  ;;  %v9335_v55 = vld [vmem:[#allocation28_spill] sm:$0xff] }
 0xd9e   :  { %6939 = vmatprep.subr.bf16.mxu0 %v9325_v52  ;;  %6971 = vmatprep.subr.bf16.mxu1 %v9326_v43  ;;  %v9336_v52 = vld [vmem:[#allocation29_spill] sm:$0xff]  ;;  %v9337_v43 = vld [vmem:[#allocation30_spill] sm:$0xff] }
 0xda1   :  { %6941 = vmatpush1.bf16.msra.mxu0 %v9327_v37  ;;  %6973 = vmatpush1.bf16.msra.mxu1 %v9328_v11  ;;  %v9338_v37 = vld [vmem:[#allocation31_spill] sm:$0xff] }
 0xda2   :  { %6943 = vmatprep.subr.bf16.mxu0 %v9329_v38  ;;  %6975 = vmatprep.subr.bf16.mxu1 %v9330_v10 }
 0xda5   :  { %6945 = vmatpush1.bf16.msra.mxu0 %v9331_v19  ;;  %6977 = vmatpush1.bf16.msra.mxu1 %v9332_v42 }
 0xda6   :  { %6947 = vmatprep.subr.bf16.mxu0 %v9333_v35  ;;  %6979 = vmatprep.subr.bf16.mxu1 %v9334_v56 }
 0xda9   :  { %6949 = vmatpush1.bf16.msra.mxu0 %v9335_v55  ;;  %6981 = vmatpush1.bf16.msra.mxu1 %v9336_v52 }
 0xdaa   :  { %6983 = vmatprep.subr.bf16.mxu0 %v9337_v43  ;;  %7015 = vmatprep.subr.bf16.mxu1 %v9338_v37 }
 0xe5f   :  { %v4651_v11 = vpop.f32.mrb[26].mxu0  ;;  %v4722_v38 = vpop.f32.mrb[34].mxu1 }
 0xe60   :  { %v4727_v10 = vadd.f32 %v4651_v11, %v9339_v50  ;;  %v4653_v22 = vpop.f32.mrb[27].mxu0  ;;  %v4724_v19 = vpop.f32.mrb[35].mxu1  ;;  %v4729_v52 = vadd.f32 %v4722_v38, %v8538_v39  ;;  %v9358_v38 = vld [vmem:[#allocation29_spill] sm:$0xff] }
 0xe61   :  { %v4728_v42 = vadd.f32 %v4653_v22, %v8527_v13  ;;  %v4730_v55 = vadd.f32 %v4724_v19, %v8533_v46 }
 0xe62   :  { %v5576_v28 = vmul.f32 -1.442695, %v4727_v10 }
 0xe63   :  { %v5577_v35 = vmul.f32 -1.442695, %v4728_v42  ;;  %v5578_v56 = vmul.f32 -1.442695, %v4730_v55 }
 0xe64   :  { %7480 = vpow2.f32 %v5576_v28 }
 0xe65   :  { %7482 = vpow2.f32 %v5577_v35 }
 0xe66   :  { %7484 = vpow2.f32 %v5578_v56 }
 0xe67   :  { %7486 = vtanh.f32 %v4729_v52  ;;  %v9356_v52 = vld [vmem:[#allocation27_spill] sm:$0xff] }
 0xe6e   :  { %v7481_v43 = vpop.eup %7480 }
 0xe6f   :  { %v7483_v6 = vpop.eup %7482  ;;  %v4734_v37 = vadd.f32 1.0, %v7481_v43 }
 0xe70   :  { %v4740_v24 = vadd.f32 1.0, %v7483_v6  ;;  %v7485_v11 = vpop.eup %7484  ;;  %v9354_v6 = vld [vmem:[#allocation25_spill] sm:$0xff] }
 0xe71   :  { %7488 = vrcp.f32 %v4734_v37  ;;  %v7487_v50 = vpop.eup %7486  ;;  %v4747_v28 = vadd.f32 1.0, %v7485_v11  ;;  %v9357_v37 = vld [vmem:[#allocation28_spill] sm:$0xff]  ;;  %v9359_v11 = vld [vmem:[#allocation30_spill] sm:$0xff] }
 0xe72   :  { %7490 = vrcp.f32 %v4740_v24  ;;  %v9353_v24 = vld [vmem:[#allocation24_spill] sm:$0xff] }
 0xe73   :  { %7492 = vrcp.f32 %v4747_v28  ;;  %v9361_v28 = vld [vmem:[#allocation50_spill] sm:$0xff] }
 0xe7b   :  { %v7489_v22 = vpop.eup %7488 }
 0xe7c   :  { %v7491_v10 = vpop.eup %7490  ;;  %v4751_v42 = vmul.f32 %v7489_v22, %v7487_v50  ;;  %v9355_v50 = vld [vmem:[#allocation26_spill] sm:$0xff]  ;;  %v9360_v22 = vld [vmem:[#allocation31_spill] sm:$0xff] }
 0xe7d   :  { %v4750_v35 = vmul.f32 %v7491_v10, %v8845_v26  ;;  %v7493_v55 = vpop.eup %7492  ;;  %v4755_v26 = vld [vmem:[#allocation2 + $0xc] sm:$0x3] }
 0xe7f   :  { %v8921_v19 = vadd.f32 %v4751_v42, %v4750_v35 }
 0xe81   :  { %7494 = vtanh.f32 %v8921_v19 }
 0xe8b   :  { %v7495_v43 = vpop.eup %7494 }
 0xe8c   :  { %v4754_v56 = vmul.f32 %v7495_v43, %v7493_v55 }
 0xe8e   :  { %4821 = vmatmul.mubr.f32.vlgmr.msra.gmra.mrb[28].mxu0 %v4754_v56  ;;  %4892 = vmatmul.mubr.f32.vlgmr.msra.gmra.mrb[36].mxu1 %v4754_v56 }
 0xe8f   :  { %6985 = vmatpush1.bf16.msra.mxu0 %v8381_v59  ;;  %7017 = vmatpush1.bf16.msra.mxu1 %v9230_v54 }
 0xe90   :  { %6987 = vmatprep.subr.bf16.mxu0 %v9231_v7  ;;  %7019 = vmatprep.subr.bf16.mxu1 %v9232_v51 }
 0xe91   :  { %4962 = vmatprep.mubr.f32.mxu0 %v9213_v2  ;;  %5033 = vmatprep.mubr.f32.mxu1 %v9213_v2 }
 0xe93   :  { %6989 = vmatpush1.bf16.msra.mxu0 %v9233_v57  ;;  %7021 = vmatpush1.bf16.msra.mxu1 %v9234_v15 }
 0xe94   :  { %6991 = vmatprep.subr.bf16.mxu0 %v9252_v29  ;;  %7023 = vmatprep.subr.bf16.mxu1 %v9236_v1 }
 0xe97   :  { %6993 = vmatpush1.bf16.msra.mxu0 %v9237_v60  ;;  %7025 = vmatpush1.bf16.msra.mxu1 %v9238_v8 }
 0xe98   :  { %6995 = vmatprep.subr.bf16.mxu0 %v9239_v34  ;;  %7027 = vmatprep.subr.bf16.mxu1 %v9240_v3 }
 0xe9b   :  { %6997 = vmatpush1.bf16.msra.mxu0 %v9241_v20  ;;  %7029 = vmatpush1.bf16.msra.mxu1 %v9242_v58 }
 0xe9c   :  { %6999 = vmatprep.subr.bf16.mxu0 %v9243_v23  ;;  %7031 = vmatprep.subr.bf16.mxu1 %v9244_v9 }
 0xe9f   :  { %7001 = vmatpush1.bf16.msra.mxu0 %v9245_v33  ;;  %7033 = vmatpush1.bf16.msra.mxu1 %v9246_v45 }
 0xea0   :  { %7003 = vmatprep.subr.bf16.mxu0 %v8439_v62  ;;  %7035 = vmatprep.subr.bf16.mxu1 %v8441_v32 }
 0xea3   :  { %7005 = vmatpush1.bf16.msra.mxu0 %v8445_v47  ;;  %7037 = vmatpush1.bf16.msra.mxu1 %v9253_v41 }
 0xea4   :  { %7007 = vmatprep.subr.bf16.mxu0 %v8451_v27  ;;  %7039 = vmatprep.subr.bf16.mxu1 %v8453_v36 }
 0xea7   :  { %7009 = vmatpush1.bf16.msra.mxu0 %v8457_v0  ;;  %7041 = vmatpush1.bf16.msra.mxu1 %v8459_v12 }
 0xea8   :  { %7011 = vmatprep.subr.bf16.mxu0 %v8463_v16  ;;  %7043 = vmatprep.subr.bf16.mxu1 %v8465_v21 }
 0xeab   :  { %7013 = vmatpush1.bf16.msra.mxu0 %v8469_v63  ;;  %7045 = vmatpush1.bf16.msra.mxu1 %v8471_v17 }
 0xeac   :  { %7047 = vmatprep.subr.bf16.mxu0 %v8268_v48  ;;  %7079 = vmatprep.subr.bf16.mxu1 %v8270_v49  ;;  %v9340_v48 = vld [vmem:[#allocation11_spill] sm:$0xff]  ;;  %v9341_v49 = vld [vmem:[#allocation12_spill] sm:$0xff] }
 0xeae   :  { %4963 = vmatmul.mubr.f32.vlgmr.msra.gmra.mrb[28].mxu0 %v4755_v26  ;;  %5034 = vmatmul.mubr.f32.vlgmr.msra.gmra.mrb[36].mxu1 %v4755_v26 }
 0xeaf   :  { %7049 = vmatpush1.bf16.msra.mxu0 %v8283_v61  ;;  %7081 = vmatpush1.bf16.msra.mxu1 %v8285_v25  ;;  %v9342_v61 = vld [vmem:[#allocation13_spill] sm:$0xff]  ;;  %v9343_v25 = vld [vmem:[#allocation14_spill] sm:$0xff] }
 0xeb0   :  { %7051 = vmatprep.subr.bf16.mxu0 %v8287_v30  ;;  %7083 = vmatprep.subr.bf16.mxu1 %v8289_v31  ;;  %v9344_v30 = vld [vmem:[#allocation15_spill] sm:$0xff]  ;;  %v9345_v31 = vld [vmem:[#allocation16_spill] sm:$0xff] }
 0xeb1   :  { %5133 = vmatprep.mubr.f32.mxu0 %v9213_v2  ;;  %5204 = vmatprep.mubr.f32.mxu1 %v9213_v2 }
 0xeb3   :  { %7053 = vmatpush1.bf16.msra.mxu0 %v8295_v4  ;;  %7085 = vmatpush1.bf16.msra.mxu1 %v8297_v5  ;;  %v9346_v4 = vld [vmem:[#allocation17_spill] sm:$0xff]  ;;  %v9347_v5 = vld [vmem:[#allocation18_spill] sm:$0xff] }
 0xeb4   :  { %7055 = vmatprep.subr.bf16.mxu0 %v8301_v14  ;;  %7087 = vmatprep.subr.bf16.mxu1 %v8303_v18  ;;  %v9348_v14 = vld [vmem:[#allocation19_spill] sm:$0xff]  ;;  %v9349_v18 = vld [vmem:[#allocation20_spill] sm:$0xff] }
 0xeb7   :  { %7057 = vmatpush1.bf16.msra.mxu0 %v8309_v40  ;;  %7089 = vmatpush1.bf16.msra.mxu1 %v8311_v44  ;;  %v9350_v40 = vld [vmem:[#allocation21_spill] sm:$0xff]  ;;  %v9351_v44 = vld [vmem:[#allocation22_spill] sm:$0xff] }
 0xeb8   :  { %7059 = vmatprep.subr.bf16.mxu0 %v8315_v53  ;;  %7091 = vmatprep.subr.bf16.mxu1 %v9340_v48  ;;  %v9352_v53 = vld [vmem:[#allocation23_spill] sm:$0xff] }
 0xebb   :  { %7061 = vmatpush1.bf16.msra.mxu0 %v9341_v49  ;;  %7093 = vmatpush1.bf16.msra.mxu1 %v9342_v61 }
 0xebc   :  { %7063 = vmatprep.subr.bf16.mxu0 %v9343_v25  ;;  %7095 = vmatprep.subr.bf16.mxu1 %v9344_v30 }
 0xebf   :  { %7065 = vmatpush1.bf16.msra.mxu0 %v9345_v31  ;;  %7097 = vmatpush1.bf16.msra.mxu1 %v9346_v4 }
 0xec0   :  { %7067 = vmatprep.subr.bf16.mxu0 %v9347_v5  ;;  %7099 = vmatprep.subr.bf16.mxu1 %v9348_v14 }
 0xec3   :  { %7069 = vmatpush1.bf16.msra.mxu0 %v9349_v18  ;;  %7101 = vmatpush1.bf16.msra.mxu1 %v9350_v40 }
 0xec4   :  { %7071 = vmatprep.subr.bf16.mxu0 %v9351_v44  ;;  %7103 = vmatprep.subr.bf16.mxu1 %v9352_v53 }
 0xec7   :  { %7073 = vmatpush1.bf16.msra.mxu0 %v9353_v24  ;;  %7105 = vmatpush1.bf16.msra.mxu1 %v9354_v6 }
 0xec8   :  { %7075 = vmatprep.subr.bf16.mxu0 %v9355_v50  ;;  %7107 = vmatprep.subr.bf16.mxu1 %v9356_v52 }
 0xecb   :  { %7077 = vmatpush1.bf16.msra.mxu0 %v9357_v37  ;;  %7109 = vmatpush1.bf16.msra.mxu1 %v9358_v38 }
 0xecc   :  { %7111 = vmatprep.subr.bf16.mxu0 %v9359_v11  ;;  %7143 = vmatprep.subr.bf16.mxu1 %v9360_v22 }
 0xf81   :  { %v4964_v10 = vpop.f32.mrb[28].mxu0  ;;  %v5035_v42 = vpop.f32.mrb[36].mxu1 }
 0xf82   :  { %v5040_v35 = vadd.f32 %v4964_v10, %v9361_v28  ;;  %v4966_v55 = vpop.f32.mrb[29].mxu0  ;;  %v5037_v43 = vpop.f32.mrb[37].mxu1  ;;  %v5042_v25 = vadd.f32 %v5035_v42, %v8538_v39 }
 0xf83   :  { %v5041_v56 = vadd.f32 %v4966_v55, %v8527_v13  ;;  %v5043_v49 = vadd.f32 %v5037_v43, %v8533_v46 }
 0xf84   :  { %v5579_v26 = vmul.f32 -1.442695, %v5040_v35 }
 0xf85   :  { %v5580_v48 = vmul.f32 -1.442695, %v5041_v56  ;;  %v5581_v61 = vmul.f32 -1.442695, %v5043_v49 }
 0xf86   :  { %7496 = vpow2.f32 %v5579_v26 }
 0xf87   :  { %7498 = vpow2.f32 %v5580_v48 }
 0xf88   :  { %7500 = vpow2.f32 %v5581_v61 }
 0xf89   :  { %7502 = vtanh.f32 %v5042_v25 }
 0xf90   :  { %v7497_v30 = vpop.eup %7496 }
 0xf91   :  { %v7499_v31 = vpop.eup %7498  ;;  %v5047_v4 = vadd.f32 1.0, %v7497_v30 }
 0xf92   :  { %v5053_v5 = vadd.f32 1.0, %v7499_v31  ;;  %v7501_v14 = vpop.eup %7500 }
 0xf93   :  { %7504 = vrcp.f32 %v5047_v4  ;;  %v7503_v18 = vpop.eup %7502  ;;  %v5060_v24 = vadd.f32 1.0, %v7501_v14 }
 0xf94   :  { %7506 = vrcp.f32 %v5053_v5  ;;  %v5585_v5 = vld [vmem:[#allocation3] ss:$0 sm:$0xff] }
 0xf95   :  { %7508 = vrcp.f32 %v5060_v24 }
 0xf9d   :  { %v7505_v40 = vpop.eup %7504 }
 0xf9e   :  { %v7507_v44 = vpop.eup %7506  ;;  %v5064_v53 = vmul.f32 %v7505_v40, %v7503_v18 }
 0xf9f   :  { %v5063_v6 = vmul.f32 %v7507_v44, %v8921_v19  ;;  %v7509_v52 = vpop.eup %7508 }
 0xfa1   :  { %v8997_v50 = vadd.f32 %v5064_v53, %v5063_v6 }
 0xfa3   :  { %7510 = vtanh.f32 %v8997_v50 }
 0xfad   :  { %v7511_v37 = vpop.eup %7510 }
 0xfae   :  { %v5067_v38 = vmul.f32 %v7511_v37, %v7509_v52 }
 0xfb0   :  { %5134 = vmatmul.mubr.f32.vlgmr.msra.gmra.mrb[30].mxu0 %v5067_v38  ;;  %5205 = vmatmul.mubr.f32.vlgmr.msra.gmra.mrb[38].mxu1 %v5067_v38 }
 0xfb1   :  { %7113 = vmatpush1.bf16.msra.mxu0 %v8381_v59  ;;  %7145 = vmatpush1.bf16.msra.mxu1 %v9230_v54  ;;  %v5068_v59 = vld [vmem:[#allocation2 + $0xe] sm:$0x3]  ;;  %v5388_v54 = vld [vmem:[%s9096_s7 + $0x38] sm:$0xff] }
 0xfb2   :  { %7115 = vmatprep.subr.bf16.mxu0 %v9231_v7  ;;  %7147 = vmatprep.subr.bf16.mxu1 %v9232_v51  ;;  %v5389_v51 = vld [vmem:[%s9096_s7 + $0x40] sm:$0xff] }
 0xfb3   :  { %5275 = vmatprep.mubr.f32.mxu0 %v9213_v2  ;;  %5346 = vmatprep.mubr.f32.mxu1 %v9213_v2 }
 0xfb5   :  { %7117 = vmatpush1.bf16.msra.mxu0 %v9233_v57  ;;  %7149 = vmatpush1.bf16.msra.mxu1 %v9234_v15  ;;  %v5390_v57 = vld [vmem:[%s9096_s7 + $0x48] sm:$0xff] }
 0xfb6   :  { %7119 = vmatprep.subr.bf16.mxu0 %v9252_v29  ;;  %7151 = vmatprep.subr.bf16.mxu1 %v9236_v1  ;;  %v7187_v15 = vpack.c.bf16 %v5390_v57, %v5389_v51  ;;  %v5392_v1 = vld [vmem:[%s9096_s7 + $0x58] sm:$0xff] }
 0xfb9   :  { %7121 = vmatpush1.bf16.msra.mxu0 %v9237_v60  ;;  %7153 = vmatpush1.bf16.msra.mxu1 %v9238_v8  ;;  %v5393_v60 = vld [vmem:[%s9096_s7 + $0x60] sm:$0xff] }
 0xfba   :  { %7123 = vmatprep.subr.bf16.mxu0 %v9239_v34  ;;  %7155 = vmatprep.subr.bf16.mxu1 %v9240_v3  ;;  %v5394_v34 = vld [vmem:[%s9096_s7 + $0x68] sm:$0xff] }
 0xfbb   :  { %v7193_v3 = vpack.c.bf16 %v5394_v34, %v5393_v60 }
 0xfbd   :  { %7125 = vmatpush1.bf16.msra.mxu0 %v9241_v20  ;;  %7157 = vmatpush1.bf16.msra.mxu1 %v9242_v58  ;;  %v5395_v20 = vld [vmem:[%s9096_s7 + $0x70] sm:$0xff]  ;;  %v5396_v58 = vld [vmem:[%s9096_s7 + $0x78] sm:$0xff] }
 0xfbe   :  { %7127 = vmatprep.subr.bf16.mxu0 %v9243_v23  ;;  %7159 = vmatprep.subr.bf16.mxu1 %v9244_v9  ;;  %v7196_v23 = vpack.c.bf16 %v5396_v58, %v5395_v20 }
 0xfc1   :  { %7129 = vmatpush1.bf16.msra.mxu0 %v9245_v33  ;;  %7161 = vmatpush1.bf16.msra.mxu1 %v9246_v45  ;;  %v5391_v45 = vld [vmem:[%s9096_s7 + $0x50] sm:$0xff] }
 0xfc2   :  { %7131 = vmatprep.subr.bf16.mxu0 %v8439_v62  ;;  %7163 = vmatprep.subr.bf16.mxu1 %v8441_v32  ;;  %v5381_v62 = vld [vmem:[%s9096_s7] sm:$0xff]  ;;  %v5382_v32 = vld [vmem:[%s9096_s7 + $0x8] sm:$0xff]  ;;  %v7190_v8 = vpack.c.bf16 %v5392_v1, %v5391_v45 }
 0xfc5   :  { %7133 = vmatpush1.bf16.msra.mxu0 %v8445_v47  ;;  %7165 = vmatpush1.bf16.msra.mxu1 %v9253_v41  ;;  %v7175_v47 = vpack.c.bf16 %v5382_v32, %v5381_v62 }
 0xfc6   :  { %7135 = vmatprep.subr.bf16.mxu0 %v8451_v27  ;;  %7167 = vmatprep.subr.bf16.mxu1 %v8453_v36  ;;  %v7606_v27 = vmov 0.0|0.0   ;;  %v5383_v36 = vld [vmem:[%s9096_s7 + $0x10] sm:$0xff] }
 0xfc9   :  { %7137 = vmatpush1.bf16.msra.mxu0 %v8457_v0  ;;  %7169 = vmatpush1.bf16.msra.mxu1 %v8459_v12  ;;  %v5384_v0 = vld [vmem:[%s9096_s7 + $0x18] sm:$0xff] }
 0xfca   :  { %7139 = vmatprep.subr.bf16.mxu0 %v8463_v16  ;;  %7171 = vmatprep.subr.bf16.mxu1 %v8465_v21  ;;  %v7178_v12 = vpack.c.bf16 %v5384_v0, %v5383_v36  ;;  %v5385_v16 = vld [vmem:[%s9096_s7 + $0x20] sm:$0xff]  ;;  %v5386_v21 = vld [vmem:[%s9096_s7 + $0x28] sm:$0xff] }
 0xfcd   :  { %7141 = vmatpush1.bf16.msra.mxu0 %v8469_v63  ;;  %7173 = vmatpush1.bf16.msra.mxu1 %v8471_v17  ;;  %v7181_v63 = vpack.c.bf16 %v5386_v21, %v5385_v16  ;;  %v5387_v17 = vld [vmem:[%s9096_s7 + $0x30] sm:$0xff] }
 0xfce   :  { %7174 = vmatprep.subr.bf16.mxu0 %v7606_v27  ;;  %v7184_v7 = vpack.c.bf16 %v5388_v54, %v5387_v17 }
 0xfd0   :  { %5276 = vmatmul.mubr.f32.vlgmr.msra.gmra.mrb[30].mxu0 %v5068_v59  ;;  %5347 = vmatmul.mubr.f32.vlgmr.msra.gmra.mrb[38].mxu1 %v5068_v59 }
 0xfd1   :  { %7176 = vmatpush3.bf16.msra.mxu0 %v7175_v47  ;;  %5635 = vmatprep.mubr.msk.f32.mxu0 %vm7607_vm2, %v9213_v2 }
 0xfd2   :  { %7177 = vmatprep.subr.bf16.mxu0 %v7606_v27 }
 0xfd5   :  { %7179 = vmatpush3.bf16.msra.mxu0 %v7178_v12 }
 0xfd6   :  { %7180 = vmatprep.subr.bf16.mxu0 %v7606_v27 }
 0xfd9   :  { %7182 = vmatpush3.bf16.msra.mxu0 %v7181_v63 }
 0xfda   :  { %7183 = vmatprep.subr.bf16.mxu0 %v7606_v27 }
 0xfdd   :  { %7185 = vmatpush3.bf16.msra.mxu0 %v7184_v7 }
 0xfde   :  { %7186 = vmatprep.subr.bf16.mxu0 %v7606_v27 }
 0xfe1   :  { %7188 = vmatpush3.bf16.msra.mxu0 %v7187_v15 }
 0xfe2   :  { %7189 = vmatprep.subr.bf16.mxu0 %v7606_v27 }
 0xfe5   :  { %7191 = vmatpush3.bf16.msra.mxu0 %v7190_v8 }
 0xfe6   :  { %7192 = vmatprep.subr.bf16.mxu0 %v7606_v27 }
 0xfe9   :  { %7194 = vmatpush3.bf16.msra.mxu0 %v7193_v3 }
 0xfea   :  { %7195 = vmatprep.subr.bf16.mxu0 %v7606_v27 }
 0xfed   :  { %7197 = vmatpush3.bf16.msra.mxu0 %v7196_v23 }
0x10a3   :  { %v5277_v9 = vpop.f32.mrb[30].mxu0  ;;  %v5348_v33 = vpop.f32.mrb[38].mxu1 }
0x10a4   :  { %v5353_v29 = vadd.f32 %v5277_v9, %v9361_v28  ;;  %v5279_v2 = vpop.f32.mrb[31].mxu0  ;;  %v5350_v41 = vpop.f32.mrb[39].mxu1  ;;  %v5355_v35 = vadd.f32 %v5348_v33, %v8538_v39 }
0x10a5   :  { %v5354_v19 = vadd.f32 %v5279_v2, %v8527_v13  ;;  %v5356_v10 = vadd.f32 %v5350_v41, %v8533_v46 }
0x10a6   :  { %v5582_v11 = vmul.f32 -1.442695, %v5353_v29 }
0x10a7   :  { %v5583_v22 = vmul.f32 -1.442695, %v5354_v19  ;;  %v5584_v42 = vmul.f32 -1.442695, %v5356_v10 }
0x10a8   :  { %7512 = vpow2.f32 %v5582_v11 }
0x10a9   :  { %7514 = vpow2.f32 %v5583_v22 }
0x10aa   :  { %7516 = vpow2.f32 %v5584_v42 }
0x10ab   :  { %7518 = vtanh.f32 %v5355_v35 }
0x10b2   :  { %v7513_v55 = vpop.eup %7512 }
0x10b3   :  { %v7515_v43 = vpop.eup %7514  ;;  %v5360_v56 = vadd.f32 1.0, %v7513_v55 }
0x10b4   :  { %v5366_v26 = vadd.f32 1.0, %v7515_v43  ;;  %v7517_v28 = vpop.eup %7516 }
0x10b5   :  { %7520 = vrcp.f32 %v5360_v56  ;;  %v7519_v48 = vpop.eup %7518  ;;  %v5373_v25 = vadd.f32 1.0, %v7517_v28 }
0x10b6   :  { %7522 = vrcp.f32 %v5366_v26 }
0x10b7   :  { %7524 = vrcp.f32 %v5373_v25 }
0x10bf   :  { %v7521_v13 = vpop.eup %7520 }
0x10c0   :  { %v7523_v49 = vpop.eup %7522  ;;  %v5377_v61 = vmul.f32 %v7521_v13, %v7519_v48 }
0x10c1   :  { %v5376_v30 = vmul.f32 %v7523_v49, %v8997_v50  ;;  %v7525_v39 = vpop.eup %7524 }
0x10c3   :  { %v5378_v46 = vadd.f32 %v5377_v61, %v5376_v30 }
0x10c5   :  { %7526 = vtanh.f32 %v5378_v46 }
0x10cf   :  { %v7527_v31 = vpop.eup %7526 }
0x10d0   :  { %v5380_v4 = vmul.f32 %v7527_v31, %v7525_v39 }
0x10d2   :  { %5636 = vmatmul.mubr.f32.vlgmr.msra.gmra.mrb[32].mxu0 %v5380_v4 }
0x11a5   :  { %v5470_v14 = vpop.f32.mrb[32].mxu0 }
0x11a6   :  { %v5471_v18 = vadd.f32 %v5585_v5, %v5470_v14  ;;  %v5637_v40 = vpop.f32.mrb[33].mxu0 }
0x11a8   :  { %5475 = vst.msk [vmem:[%s9098_s9] sm:$0x3] %vm5474_vm3, %v5471_v18 }
0x11a9   :  { %5480 = vsyncpa [#allocation5], 1 }
0x11aa   :  { %5481 = vsyncpa [#allocation7], 1 }

</bundles_post_ra>
